<compile_context>
chip_gen: v7x
topology: tpu7x:2x2x1
jax: 0.10.0
libtpu: 0.0.40
codegen_flags: <defaults>
</compile_context>

<pallas_src>
import jax
import jax.numpy as jnp
from jax.experimental import pallas as pl
from jax.experimental.pallas import tpu as pltpu

NEG_SLOPE = 0.2
BN_EPS = 1e-5
LANE = 128
SUBLANE = 8


def _round_up(x, m):
    return (x + m - 1) // m * m


_VMEM_CFG = None


def _vmem_config():
    """Per-generation (scoped-VMEM limit, working-set budget) in bytes."""
    global _VMEM_CFG
    if _VMEM_CFG is None:
        try:
            phys = int(pltpu.get_tpu_info().vmem_capacity_bytes)
        except Exception:
            phys = 64 * 1024 * 1024                       # conservative (v7x-sized)
        if phys >= 128 * 1024 * 1024:                     # v5e / v6e
            limit = 64 * 1024 * 1024
        else:                                             # v7x (64 MiB physical)
            limit = min(48 * 1024 * 1024, (phys * 3) // 4)
        _VMEM_CFG = (limit, (limit * 3) // 4)
    return _VMEM_CFG


def _compiler_params(sem, limit):
    return pltpu.CompilerParams(dimension_semantics=sem, vmem_limit_bytes=limit)


def _pad_cols(k):
    # Don't round small K (layer 1: K=48) up to 128; full-dim blocks are legal.
    return _round_up(k, SUBLANE) if k <= LANE else _round_up(k, LANE)


def _choose_k_tiling(k, coutp, budget):
    """Return (Kp, tk): padded K and K-tile so the weight tile fits VMEM."""
    kp = _pad_cols(k)

    def w_bytes(tk):
        return 2 * tk * coutp * 2              # double-buffered bf16 weight tile

    if w_bytes(kp) <= budget // 3:
        return kp, kp                          # weight VMEM-resident, grid_k == 1
    for tk in (4096, 2048, 1024, 512, 256, 128):
        if tk < kp and w_bytes(tk) <= budget // 3:
            return _round_up(kp, tk), tk
    return _round_up(kp, 128), 128


def _pick_tile_m(m, tk, coutp, budget):
    """Largest M tile (<=2048, multiple of 8) whose working set fits VMEM."""
    m8 = _round_up(m, SUBLANE)
    for tm in (2048, 1024, 512, 256, 128, 64, 32, 16, 8):
        if tm > m8:
            continue
        need = (2 * tm * tk * 2                 # LHS patches   (bf16, double-buffered)
                + 2 * tm * coutp * 2            # bf16 output   (double-buffered)
                + tm * coutp * 4                # f32 accumulator scratch
                + 2 * tk * coutp * 2            # weight tile   (double-buffered)
                + 4 * SUBLANE * coutp * 4)      # per-tile stats partials
        if need <= budget:
            return tm
    return SUBLANE


# ----------------------------- Pallas kernels ------------------------------

def _gemm_lrelu_kernel(p_ref, w_ref, o_ref, acc_ref):
    # o = leaky_relu(P @ W); K-tiled with a VMEM f32 accumulator, bf16 output.
    k = pl.program_id(1)

    @pl.when(k == 0)
    def _():
        acc_ref[...] = jnp.zeros_like(acc_ref)

    acc_ref[...] += jnp.dot(p_ref[...], w_ref[...],
                            preferred_element_type=jnp.float32)

    @pl.when(k == pl.num_programs(1) - 1)
    def _():
        y = acc_ref[...]
        o_ref[...] = jnp.where(y >= 0, y, NEG_SLOPE * y).astype(o_ref.dtype)


def _gemm_stats_kernel(p_ref, w_ref, y_ref, s_ref, q_ref, acc_ref):
    # BN pass 1: K-tiled GEMM + per-M-tile partial sum / sum-of-squares rows.
    # No cross-tile accumulator => the M axis is "parallel" (v7x megacore-safe).
    k = pl.program_id(1)

    @pl.when(k == 0)
    def _():
        acc_ref[...] = jnp.zeros_like(acc_ref)

    acc_ref[...] += jnp.dot(p_ref[...], w_ref[...],
                            preferred_element_type=jnp.float32)

    @pl.when(k == pl.num_programs(1) - 1)
    def _():
        y = acc_ref[...]                                  # f32
        y_ref[...] = y.astype(y_ref.dtype)                # bf16 storage
        s = jnp.sum(y, axis=0, keepdims=True)             # f32 stats
        q = jnp.sum(y * y, axis=0, keepdims=True)
        cp = s.shape[-1]
        # (1, 8, Coutp) block keeps the last two dims (8, 128k)-legal.
        s_ref[...] = jnp.broadcast_to(s[None], (1, SUBLANE, cp))
        q_ref[...] = jnp.broadcast_to(q[None], (1, SUBLANE, cp))


def _affine_lrelu_kernel(y_ref, sc_ref, sh_ref, o_ref):
    # BN pass 2: folded batchnorm (scale/shift) + LeakyReLU; bf16 in/out.
    y = y_ref[...].astype(jnp.float32) * sc_ref[...] + sh_ref[...]
    o_ref[...] = jnp.where(y >= 0, y, NEG_SLOPE * y).astype(o_ref.dtype)


def _final_sigmoid_kernel(p_ref, w_ref, o_ref):
    # Final Cout=1 conv as a VPU row reduction; sigmoid = exp (EUP) + approx recip.
    p = p_ref[...].astype(jnp.float32)
    w = w_ref[...].astype(jnp.float32)
    y = jnp.sum(p * w, axis=-1, keepdims=True)
    o_ref[...] = jnp.clip(pl.reciprocal(1.0 + jnp.exp(-y), approx=True), 0.0, 1.0)


# ------------------------------- im2col glue -------------------------------

def _im2col_nhwc(x, kh, kw, stride, pad):
    """NHWC im2col (bf16 in/out): (N,H,W,C) -> (N*OH*OW, KH*KW*C)."""
    N, H, W, C = x.shape
    xp = jnp.pad(x, ((0, 0), (pad, pad), (pad, pad), (0, 0)))
    OH = (H + 2 * pad - kh) // stride + 1
    OW = (W + 2 * pad - kw) // stride + 1
    taps = []
    for i in range(kh):
        for j in range(kw):
            taps.append(xp[:, i:i + stride * OH:stride, j:j + stride * OW:stride, :])
    patches = jnp.concatenate(taps, axis=-1)              # K order = (i, j, c)
    return patches.reshape(N * OH * OW, kh * kw * C), OH, OW


# ------------------------------- conv layers -------------------------------

def _conv_layer(x, w, gamma=None, beta=None, *, stride=2, pad=1):
    """4x4 conv (NHWC bf16 in/out) [+ BatchNorm(batch stats)] + LeakyReLU(0.2)."""
    limit, budget = _vmem_config()
    N, H, W, Cin_c = x.shape                  # Cin_c: carried (possibly lane-padded)
    Cout, Cin, KH, KW = w.shape
    Coutp = _round_up(Cout, LANE)

    # Weight as a (K, Coutp) matrix in (i, j, c) order; c padded to the carried
    # channel count (zero channels on both sides => contribute exactly 0).
    wm = jnp.transpose(w, (2, 3, 1, 0))                   # (KH, KW, Cin, Cout)
    wm = jnp.pad(wm, ((0, 0), (0, 0), (0, Cin_c - Cin), (0, Coutp - Cout)))
    K = KH * KW * Cin_c
    wm = wm.reshape(K, Coutp).astype(jnp.bfloat16)

    # bf16 patches (activation was cast to bf16 BEFORE im2col).
    p, OH, OW = _im2col_nhwc(x, KH, KW, stride, pad)
    M = N * OH * OW

    Kp, tk = _choose_k_tiling(K, Coutp, budget)
    tm = _pick_tile_m(M, tk, Coutp, budget)
    Mp = _round_up(M, tm)
    grid_m, grid_k = Mp // tm, Kp // tk

    p = jnp.pad(p, ((0, Mp - M), (0, Kp - K)))            # zero pad keeps results exact
    wm = jnp.pad(wm, ((0, Kp - K), (0, 0)))

    in_specs = [pl.BlockSpec((tm, tk), lambda i, k: (i, k)),      # M/K-tiled patches
                pl.BlockSpec((tk, Coutp), lambda i, k: (k, 0))]   # K-tiled weight
    gemm_cost = pl.CostEstimate(
        flops=2 * Mp * Kp * Coutp, transcendentals=0,
        bytes_accessed=Mp * Kp * 2 + grid_m * Kp * Coutp * 2 + Mp * Coutp * 2)
    scratch = [pltpu.VMEM((tm, Coutp), jnp.float32)]
    sem2 = ("parallel", "arbitrary")                      # M megacore-shardable

    if gamma is None:
        y = pl.pallas_call(
            _gemm_lrelu_kernel,
            grid=(grid_m, grid_k),
            in_specs=in_specs,
            out_specs=pl.BlockSpec((tm, Coutp), lambda i, k: (i, 0)),
            out_shape=jax.ShapeDtypeStruct((Mp, Coutp), jnp.bfloat16),
            scratch_shapes=scratch,
            compiler_params=_compiler_params(sem2, limit),
            cost_estimate=gemm_cost,
        )(p, wm)
    else:
        y, s_part, q_part = pl.pallas_call(
            _gemm_stats_kernel,
            grid=(grid_m, grid_k),
            in_specs=in_specs,
            out_specs=(pl.BlockSpec((tm, Coutp), lambda i, k: (i, 0)),
                       pl.BlockSpec((1, SUBLANE, Coutp), lambda i, k: (i, 0, 0)),
                       pl.BlockSpec((1, SUBLANE, Coutp), lambda i, k: (i, 0, 0))),
            out_shape=(jax.ShapeDtypeStruct((Mp, Coutp), jnp.bfloat16),
                       jax.ShapeDtypeStruct((grid_m, SUBLANE, Coutp), jnp.float32),
                       jax.ShapeDtypeStruct((grid_m, SUBLANE, Coutp), jnp.float32)),
            scratch_shapes=scratch,
            compiler_params=_compiler_params(sem2, limit),
            cost_estimate=gemm_cost,
        )(p, wm)

        # Tiny per-channel math in plain JAX: reduce the grid_m partials and fold
        # BN (batch stats, biased variance == PyTorch training-mode semantics)
        # into one scale/shift pair.  Padded rows/channels are all-zero.
        inv_m = 1.0 / float(M)
        s = s_part[:, 0, :].sum(axis=0)
        q = q_part[:, 0, :].sum(axis=0)
        mean = s * inv_m
        var = jnp.maximum(q * inv_m - mean * mean, 0.0)
        gamma_p = jnp.pad(gamma, (0, Coutp - Cout))
        beta_p = jnp.pad(beta, (0, Coutp - Cout))
        scale = (gamma_p * jax.lax.rsqrt(var + BN_EPS)).reshape(1, Coutp)
        shift = (beta_p - mean * scale[0]).reshape(1, Coutp)

        # Pass 2: normalize + LeakyReLU, M axis parallel, bf16 in/out.
        y = pl.pallas_call(
            _affine_lrelu_kernel,
            grid=(grid_m,),
            in_specs=[pl.BlockSpec((tm, Coutp), lambda i: (i, 0)),
                      pl.BlockSpec((1, Coutp), lambda i: (0, 0)),
                      pl.BlockSpec((1, Coutp), lambda i: (0, 0))],
            out_specs=pl.BlockSpec((tm, Coutp), lambda i: (i, 0)),
            out_shape=jax.ShapeDtypeStruct((Mp, Coutp), jnp.bfloat16),
            compiler_params=_compiler_params(("parallel",), limit),
            cost_estimate=pl.CostEstimate(flops=3 * Mp * Coutp, transcendentals=0,
                                          bytes_accessed=2 * Mp * Coutp * 2),
        )(y, scale, shift)

    # Carry lane-padded channels forward when Cout is already lane-aligned (no
    # extra pass); otherwise drop the zero pad (XLA fuses this slice into the
    # next layer's im2col pad/concat).  Stay NHWC bf16.
    y = y[:M] if Coutp == Cout else y[:M, :Cout]
    return y.reshape(N, OH, OW, y.shape[-1])


def _pick_final_tile(mp, kp, budget):
    for tmf in (512, 256, 128, 64, 32, 16, 8):
        if tmf <= mp and (2 * tmf * kp * 2 + 2 * kp * 2 + 2 * tmf * 4) <= budget // 2:
            return tmf
    return SUBLANE


def _final_conv_sigmoid(x, w):
    """Final 4x4 / stride-1 / valid conv with Cout=1 + Sigmoid -> (N,)."""
    limit, budget = _vmem_config()
    N, H, W, Cc = x.shape
    _, Cin, KH, KW = w.shape
    assert H == KH and W == KW                     # conv covers the full 4x4 map
    K = H * W * Cc
    Kp = _pad_cols(K)
    Mp = _round_up(N, SUBLANE)
    tmf = _pick_final_tile(Mp, Kp, budget)
    Mp = _round_up(Mp, tmf)
    grid_f = Mp // tmf

    p = jnp.pad(x.reshape(N, K), ((0, Mp - N), (0, Kp - K)))      # bf16, (i,j,c) order
    wrow = jnp.transpose(w[0], (1, 2, 0))                          # (KH, KW, Cin)
    wrow = jnp.pad(wrow, ((0, 0), (0, 0), (0, Cc - Cin)))
    wrow = jnp.pad(wrow.reshape(1, K), ((0, 0), (0, Kp - K))).astype(jnp.bfloat16)

    o = pl.pallas_call(
        _final_sigmoid_kernel,
        grid=(grid_f,),
        in_specs=[pl.BlockSpec((tmf, Kp), lambda i: (i, 0)),
                  pl.BlockSpec((1, Kp), lambda i: (0, 0))],
        out_specs=pl.BlockSpec((tmf, 1), lambda i: (i, 0)),
        out_shape=jax.ShapeDtypeStruct((Mp, 1), jnp.float32),
        compiler_params=_compiler_params(("parallel",), limit),
        cost_estimate=pl.CostEstimate(flops=2 * Mp * Kp, transcendentals=Mp,
                                      bytes_accessed=Mp * Kp * 2 + Kp * 2 + Mp * 4),
    )(p, wrow)
    return o[:N, 0]


# ---------------------------- full discriminator ---------------------------

def dc_discriminator(x_nchw, params):
    w1, w2, g2, b2, w3, g3, b3, w4, g4, b4, w5 = params
    # One-time NCHW -> NHWC transpose and a single bf16 cast BEFORE any im2col.
    h = jnp.transpose(x_nchw, (0, 2, 3, 1)).astype(jnp.bfloat16)
    h = _conv_layer(h, w1)                        # Conv(3->C)    + LReLU
    h = _conv_layer(h, w2, g2, b2)                # Conv(C->2C)   + BN + LReLU
    h = _conv_layer(h, w3, g3, b3)                # Conv(2C->4C)  + BN + LReLU
    h = _conv_layer(h, w4, g4, b4)                # Conv(4C->8C)  + BN + LReLU
    return _final_conv_sigmoid(h, w5)             # Conv(8C->1)   + Sigmoid -> (N,)


def init_params(key, in_channels):
    C = in_channels
    ks = jax.random.split(key, 8)

    def conv_w(k, cout, cin):
        return 0.02 * jax.random.normal(k, (cout, cin, 4, 4), jnp.float32)

    w1 = conv_w(ks[0], C, 3)
    w2 = conv_w(ks[1], 2 * C, C)
    w3 = conv_w(ks[2], 4 * C, 2 * C)
    w4 = conv_w(ks[3], 8 * C, 4 * C)
    w5 = conv_w(ks[4], 1, 8 * C)
    g2 = 1.0 + 0.02 * jax.random.normal(ks[5], (2 * C,), jnp.float32)
    g3 = 1.0 + 0.02 * jax.random.normal(ks[6], (4 * C,), jnp.float32)
    g4 = 1.0 + 0.02 * jax.random.normal(ks[7], (8 * C,), jnp.float32)
    b2 = jnp.zeros((2 * C,), jnp.float32)
    b3 = jnp.zeros((4 * C,), jnp.float32)
    b4 = jnp.zeros((8 * C,), jnp.float32)
    return (w1, w2, g2, b2, w3, g3, b3, w4, g4, b4, w5)


if __name__ == "__main__":
    key = jax.random.PRNGKey(0)
    k_x, k_p = jax.random.split(key)

    # DCGAN discriminator requires 64x64 spatial input (64->32->16->8->4->1).
    batch, in_channels = 2, 8
    x = jax.random.normal(k_x, (batch, 3, 64, 64), jnp.float32)
    params = init_params(k_p, in_channels)

    out = jax.jit(dc_discriminator)(x, params)
    out = jax.block_until_ready(out)

    assert out.shape == (batch,), out.shape
    assert bool(jnp.all(jnp.isfinite(out)))
    assert bool(jnp.all((out >= 0.0) & (out <= 1.0)))
    print("KERNEL_OK")
</pallas_src>

<mosaic_0001>
module attributes {stable_mosaic.version = 11 : i64} {
  func.func @_gemm_lrelu_kernel(%arg0: i32, %arg1: i32, %arg2: memref<2048x48xbf16, #tpu.memory_space<vmem>>, %arg3: memref<48x128xbf16, #tpu.memory_space<vmem>>, %arg4: memref<2048x128xbf16, #tpu.memory_space<vmem>>, %arg5: memref<2048x128xf32, #tpu.memory_space<vmem>>) attributes {dimension_semantics = [#tpu.dimension_semantics<parallel>, #tpu.dimension_semantics<arbitrary>], iteration_bounds = array<i64: 1, 1>, scalar_prefetch = 0 : i64, scratch_operands = 1 : i64, tpu.core_type = #tpu.core_type<tc>, window_params = [{transform_indices = @transform_0, window_bounds = array<i64: 2048, 48>}, {transform_indices = @transform_1, window_bounds = array<i64: 48, 128>}, {transform_indices = @transform_2, window_bounds = array<i64: 2048, 128>}]} {
    %c0_i32 = arith.constant 0 : i32
    %0 = arith.cmpi eq, %arg1, %c0_i32 : i32
    %1 = arith.extui %0 : i1 to i32
    %c0_i32_0 = arith.constant 0 : i32
    %2 = arith.cmpi ne, %1, %c0_i32_0 : i32
    scf.if %2 {
      %cst_10 = arith.constant 0.000000e+00 : f32
      %12 = vector.broadcast %cst_10 : f32 to vector<2048x128xf32>
      %c0_11 = arith.constant 0 : index
      %c0_12 = arith.constant 0 : index
      %13 = vector.load %arg5[%c0_11, %c0_12] : memref<2048x128xf32, #tpu.memory_space<vmem>>, vector<2048x128xf32>
      tpu.vector_store %arg5[%c0_11, %c0_12], %12 {strides = array<i32>} : memref<2048x128xf32, #tpu.memory_space<vmem>>, vector<2048x128xf32>,
    } else {
    }
    %c0 = arith.constant 0 : index
    %c0_1 = arith.constant 0 : index
    %3 = vector.load %arg5[%c0, %c0_1] : memref<2048x128xf32, #tpu.memory_space<vmem>>, vector<2048x128xf32>
    %c0_2 = arith.constant 0 : index
    %c0_3 = arith.constant 0 : index
    %4 = vector.load %arg2[%c0_2, %c0_3] : memref<2048x48xbf16, #tpu.memory_space<vmem>>, vector<2048x48xbf16>
    %c0_4 = arith.constant 0 : index
    %c0_5 = arith.constant 0 : index
    %5 = vector.load %arg3[%c0_4, %c0_5] : memref<48x128xbf16, #tpu.memory_space<vmem>>, vector<48x128xbf16>
    %cst = arith.constant dense<0.000000e+00> : vector<2048x128xf32>
    %6 = tpu.matmul %4, %5, %cst {dimension_numbers = #tpu.dot_dimension_numbers<[1], [0], [0], [1], [0, 0, 1, 1], [], []>} : vector<2048x48xbf16>, vector<48x128xbf16>, vector<2048x128xf32> -> vector<2048x128xf32>
    %7 = arith.addf %3, %6 : vector<2048x128xf32>
    %c0_6 = arith.constant 0 : index
    %c0_7 = arith.constant 0 : index
    %8 = vector.load %arg5[%c0_6, %c0_7] : memref<2048x128xf32, #tpu.memory_space<vmem>>, vector<2048x128xf32>
    tpu.vector_store %arg5[%c0_6, %c0_7], %7 {strides = array<i32>} : memref<2048x128xf32, #tpu.memory_space<vmem>>, vector<2048x128xf32>,
    %c0_i32_8 = arith.constant 0 : i32
    %9 = arith.cmpi eq, %arg1, %c0_i32_8 : i32
    %10 = arith.extui %9 : i1 to i32
    %c0_i32_9 = arith.constant 0 : i32
    %11 = arith.cmpi ne, %10, %c0_i32_9 : i32
    scf.if %11 {
      %c0_10 = arith.constant 0 : index
      %c0_11 = arith.constant 0 : index
      %12 = vector.load %arg5[%c0_10, %c0_11] : memref<2048x128xf32, #tpu.memory_space<vmem>>, vector<2048x128xf32>
      %cst_12 = arith.constant 0.000000e+00 : f32
      %13 = vector.broadcast %cst_12 : f32 to vector<2048x128xf32>
      %14 = arith.cmpf oge, %12, %13 : vector<2048x128xf32>
      %cst_13 = arith.constant 2.000000e-01 : f32
      %15 = vector.broadcast %cst_13 : f32 to vector<2048x128xf32>
      %16 = arith.mulf %15, %12 : vector<2048x128xf32>
      %17 = arith.select %14, %12, %16 : vector<2048x128xi1>, vector<2048x128xf32>
      %18 = arith.truncf %17 : vector<2048x128xf32> to vector<2048x128xbf16>
      %c0_14 = arith.constant 0 : index
      %c0_15 = arith.constant 0 : index
      %19 = vector.load %arg4[%c0_14, %c0_15] : memref<2048x128xbf16, #tpu.memory_space<vmem>>, vector<2048x128xbf16>
      tpu.vector_store %arg4[%c0_14, %c0_15], %18 {strides = array<i32>} : memref<2048x128xbf16, #tpu.memory_space<vmem>>, vector<2048x128xbf16>,
    } else {
    }
    return
  }
  func.func @transform_0(%arg0: i32, %arg1: i32) -> (i32, i32) {
    %c0_i32 = arith.constant 0 : i32
    return %arg0, %arg1 : i32, i32
  }
  func.func @transform_1(%arg0: i32, %arg1: i32) -> (i32, i32) {
    %c0_i32 = arith.constant 0 : i32
    %c0_i32_0 = arith.constant 0 : i32
    return %arg1, %c0_i32 : i32, i32
  }
  func.func @transform_2(%arg0: i32, %arg1: i32) -> (i32, i32) {
    %c0_i32 = arith.constant 0 : i32
    %c0_i32_0 = arith.constant 0 : i32
    return %arg0, %c0_i32 : i32, i32
  }
}

module attributes {stable_mosaic.version = 11 : i64} {
  func.func @_gemm_stats_kernel(%arg0: i32, %arg1: i32, %arg2: memref<512x128xbf16, #tpu.memory_space<vmem>>, %arg3: memref<128x128xbf16, #tpu.memory_space<vmem>>, %arg4: memref<512x128xbf16, #tpu.memory_space<vmem>>, %arg5: memref<1x8x128xf32, #tpu.memory_space<vmem>>, %arg6: memref<1x8x128xf32, #tpu.memory_space<vmem>>, %arg7: memref<512x128xf32, #tpu.memory_space<vmem>>) attributes {dimension_semantics = [#tpu.dimension_semantics<parallel>, #tpu.dimension_semantics<arbitrary>], iteration_bounds = array<i64: 1, 1>, scalar_prefetch = 0 : i64, scratch_operands = 1 : i64, tpu.core_type = #tpu.core_type<tc>, window_params = [{transform_indices = @transform_0, window_bounds = array<i64: 512, 128>}, {transform_indices = @transform_1, window_bounds = array<i64: 128, 128>}, {transform_indices = @transform_2, window_bounds = array<i64: 512, 128>}, {transform_indices = @transform_3, window_bounds = array<i64: 1, 8, 128>}, {transform_indices = @transform_4, window_bounds = array<i64: 1, 8, 128>}]} {
    %c0_i32 = arith.constant 0 : i32
    %0 = arith.cmpi eq, %arg1, %c0_i32 : i32
    %1 = arith.extui %0 : i1 to i32
    %c0_i32_0 = arith.constant 0 : i32
    %2 = arith.cmpi ne, %1, %c0_i32_0 : i32
    scf.if %2 {
      %cst_10 = arith.constant 0.000000e+00 : f32
      %12 = vector.broadcast %cst_10 : f32 to vector<512x128xf32>
      %c0_11 = arith.constant 0 : index
      %c0_12 = arith.constant 0 : index
      %13 = vector.load %arg7[%c0_11, %c0_12] : memref<512x128xf32, #tpu.memory_space<vmem>>, vector<512x128xf32>
      tpu.vector_store %arg7[%c0_11, %c0_12], %12 {strides = array<i32>} : memref<512x128xf32, #tpu.memory_space<vmem>>, vector<512x128xf32>,
    } else {
    }
    %c0 = arith.constant 0 : index
    %c0_1 = arith.constant 0 : index
    %3 = vector.load %arg7[%c0, %c0_1] : memref<512x128xf32, #tpu.memory_space<vmem>>, vector<512x128xf32>
    %c0_2 = arith.constant 0 : index
    %c0_3 = arith.constant 0 : index
    %4 = vector.load %arg2[%c0_2, %c0_3] : memref<512x128xbf16, #tpu.memory_space<vmem>>, vector<512x128xbf16>
    %c0_4 = arith.constant 0 : index
    %c0_5 = arith.constant 0 : index
    %5 = vector.load %arg3[%c0_4, %c0_5] : memref<128x128xbf16, #tpu.memory_space<vmem>>, vector<128x128xbf16>
    %cst = arith.constant dense<0.000000e+00> : vector<512x128xf32>
    %6 = tpu.matmul %4, %5, %cst {dimension_numbers = #tpu.dot_dimension_numbers<[1], [0], [0], [1], [0, 0, 1, 1], [], []>} : vector<512x128xbf16>, vector<128x128xbf16>, vector<512x128xf32> -> vector<512x128xf32>
    %7 = arith.addf %3, %6 : vector<512x128xf32>
    %c0_6 = arith.constant 0 : index
    %c0_7 = arith.constant 0 : index
    %8 = vector.load %arg7[%c0_6, %c0_7] : memref<512x128xf32, #tpu.memory_space<vmem>>, vector<512x128xf32>
    tpu.vector_store %arg7[%c0_6, %c0_7], %7 {strides = array<i32>} : memref<512x128xf32, #tpu.memory_space<vmem>>, vector<512x128xf32>,
    %c0_i32_8 = arith.constant 0 : i32
    %9 = arith.cmpi eq, %arg1, %c0_i32_8 : i32
    %10 = arith.extui %9 : i1 to i32
    %c0_i32_9 = arith.constant 0 : i32
    %11 = arith.cmpi ne, %10, %c0_i32_9 : i32
    scf.if %11 {
      %c0_10 = arith.constant 0 : index
      %c0_11 = arith.constant 0 : index
      %12 = vector.load %arg7[%c0_10, %c0_11] : memref<512x128xf32, #tpu.memory_space<vmem>>, vector<512x128xf32>
      %13 = arith.truncf %12 : vector<512x128xf32> to vector<512x128xbf16>
      %c0_12 = arith.constant 0 : index
      %c0_13 = arith.constant 0 : index
      %14 = vector.load %arg4[%c0_12, %c0_13] : memref<512x128xbf16, #tpu.memory_space<vmem>>, vector<512x128xbf16>
      tpu.vector_store %arg4[%c0_12, %c0_13], %13 {strides = array<i32>} : memref<512x128xbf16, #tpu.memory_space<vmem>>, vector<512x128xbf16>,
      %cst_14 = arith.constant dense<0.000000e+00> : vector<128xf32>
      %15 = vector.multi_reduction <add>, %12, %cst_14 [0] : vector<512x128xf32> to vector<128xf32>
      %16 = vector.shape_cast %15 : vector<128xf32> to vector<1x128xf32>
      %17 = arith.mulf %12, %12 : vector<512x128xf32>
      %cst_15 = arith.constant dense<0.000000e+00> : vector<128xf32>
      %18 = vector.multi_reduction <add>, %17, %cst_15 [0] : vector<512x128xf32> to vector<128xf32>
      %19 = vector.shape_cast %18 : vector<128xf32> to vector<1x128xf32>
      %20 = vector.shape_cast %16 : vector<1x128xf32> to vector<1x1x128xf32>
      %21 = vector.shape_cast %20 : vector<1x1x128xf32> to vector<1x1x128xf32>
      %22 = vector.broadcast %21 : vector<1x1x128xf32> to vector<1x8x128xf32>
      %c0_16 = arith.constant 0 : index
      %c0_17 = arith.constant 0 : index
      %c0_18 = arith.constant 0 : index
      %23 = vector.load %arg5[%c0_16, %c0_17, %c0_18] : memref<1x8x128xf32, #tpu.memory_space<vmem>>, vector<1x8x128xf32>
      tpu.vector_store %arg5[%c0_16, %c0_17, %c0_18], %22 {strides = array<i32>} : memref<1x8x128xf32, #tpu.memory_space<vmem>>, vector<1x8x128xf32>,
      %24 = vector.shape_cast %19 : vector<1x128xf32> to vector<1x1x128xf32>
      %25 = vector.shape_cast %24 : vector<1x1x128xf32> to vector<1x1x128xf32>
      %26 = vector.broadcast %25 : vector<1x1x128xf32> to vector<1x8x128xf32>
      %c0_19 = arith.constant 0 : index
      %c0_20 = arith.constant 0 : index
      %c0_21 = arith.constant 0 : index
      %27 = vector.load %arg6[%c0_19, %c0_20, %c0_21] : memref<1x8x128xf32, #tpu.memory_space<vmem>>, vector<1x8x128xf32>
      tpu.vector_store %arg6[%c0_19, %c0_20, %c0_21], %26 {strides = array<i32>} : memref<1x8x128xf32, #tpu.memory_space<vmem>>, vector<1x8x128xf32>,
    } else {
    }
    return
  }
  func.func @transform_0(%arg0: i32, %arg1: i32) -> (i32, i32) {
    %c0_i32 = arith.constant 0 : i32
    return %arg0, %arg1 : i32, i32
  }
  func.func @transform_1(%arg0: i32, %arg1: i32) -> (i32, i32) {
    %c0_i32 = arith.constant 0 : i32
    %c0_i32_0 = arith.constant 0 : i32
    return %arg1, %c0_i32 : i32, i32
  }
  func.func @transform_2(%arg0: i32, %arg1: i32) -> (i32, i32) {
    %c0_i32 = arith.constant 0 : i32
    %c0_i32_0 = arith.constant 0 : i32
    return %arg0, %c0_i32 : i32, i32
  }
  func.func @transform_3(%arg0: i32, %arg1: i32) -> (i32, i32, i32) {
    %c0_i32 = arith.constant 0 : i32
    %c0_i32_0 = arith.constant 0 : i32
    %c0_i32_1 = arith.constant 0 : i32
    return %arg0, %c0_i32, %c0_i32_0 : i32, i32, i32
  }
  func.func @transform_4(%arg0: i32, %arg1: i32) -> (i32, i32, i32) {
    %c0_i32 = arith.constant 0 : i32
    %c0_i32_0 = arith.constant 0 : i32
    %c0_i32_1 = arith.constant 0 : i32
    return %arg0, %c0_i32, %c0_i32_0 : i32, i32, i32
  }
}

module attributes {stable_mosaic.version = 11 : i64} {
  func.func @_affine_lrelu_kernel(%arg0: i32, %arg1: memref<512x128xbf16, #tpu.memory_space<vmem>>, %arg2: memref<1x128xf32, #tpu.memory_space<vmem>>, %arg3: memref<1x128xf32, #tpu.memory_space<vmem>>, %arg4: memref<512x128xbf16, #tpu.memory_space<vmem>>) attributes {dimension_semantics = [#tpu.dimension_semantics<parallel>], iteration_bounds = array<i64: 1>, scalar_prefetch = 0 : i64, scratch_operands = 0 : i64, tpu.core_type = #tpu.core_type<tc>, window_params = [{transform_indices = @transform_0, window_bounds = array<i64: 512, 128>}, {pipeline_mode = #tpu.pipeline_mode<synchronous>, transform_indices = @transform_1, window_bounds = array<i64: 1, 128>}, {pipeline_mode = #tpu.pipeline_mode<synchronous>, transform_indices = @transform_2, window_bounds = array<i64: 1, 128>}, {transform_indices = @transform_3, window_bounds = array<i64: 512, 128>}]} {
    %c0 = arith.constant 0 : index
    %c0_0 = arith.constant 0 : index
    %0 = vector.load %arg1[%c0, %c0_0] : memref<512x128xbf16, #tpu.memory_space<vmem>>, vector<512x128xbf16>
    %1 = arith.extf %0 : vector<512x128xbf16> to vector<512x128xf32>
    %c0_1 = arith.constant 0 : index
    %c0_2 = arith.constant 0 : index
    %2 = vector.load %arg2[%c0_1, %c0_2] : memref<1x128xf32, #tpu.memory_space<vmem>>, vector<1x128xf32>
    %3 = vector.broadcast %2 : vector<1x128xf32> to vector<512x128xf32>
    %4 = arith.mulf %1, %3 : vector<512x128xf32>
    %c0_3 = arith.constant 0 : index
    %c0_4 = arith.constant 0 : index
    %5 = vector.load %arg3[%c0_3, %c0_4] : memref<1x128xf32, #tpu.memory_space<vmem>>, vector<1x128xf32>
    %6 = vector.broadcast %5 : vector<1x128xf32> to vector<512x128xf32>
    %7 = arith.addf %4, %6 : vector<512x128xf32>
    %cst = arith.constant 0.000000e+00 : f32
    %8 = vector.broadcast %cst : f32 to vector<512x128xf32>
    %9 = arith.cmpf oge, %7, %8 : vector<512x128xf32>
    %cst_5 = arith.constant 2.000000e-01 : f32
    %10 = vector.broadcast %cst_5 : f32 to vector<512x128xf32>
    %11 = arith.mulf %10, %7 : vector<512x128xf32>
    %12 = arith.select %9, %7, %11 : vector<512x128xi1>, vector<512x128xf32>
    %13 = arith.truncf %12 : vector<512x128xf32> to vector<512x128xbf16>
    %c0_6 = arith.constant 0 : index
    %c0_7 = arith.constant 0 : index
    %14 = vector.load %arg4[%c0_6, %c0_7] : memref<512x128xbf16, #tpu.memory_space<vmem>>, vector<512x128xbf16>
    tpu.vector_store %arg4[%c0_6, %c0_7], %13 {strides = array<i32>} : memref<512x128xbf16, #tpu.memory_space<vmem>>, vector<512x128xbf16>,
    return
  }
  func.func @transform_0(%arg0: i32) -> (i32, i32) {
    %c0_i32 = arith.constant 0 : i32
    %c0_i32_0 = arith.constant 0 : i32
    return %arg0, %c0_i32 : i32, i32
  }
  func.func @transform_1(%arg0: i32) -> (i32, i32) {
    %c0_i32 = arith.constant 0 : i32
    %c0_i32_0 = arith.constant 0 : i32
    %c0_i32_1 = arith.constant 0 : i32
    return %c0_i32, %c0_i32_0 : i32, i32
  }
  func.func @transform_2(%arg0: i32) -> (i32, i32) {
    %c0_i32 = arith.constant 0 : i32
    %c0_i32_0 = arith.constant 0 : i32
    %c0_i32_1 = arith.constant 0 : i32
    return %c0_i32, %c0_i32_0 : i32, i32
  }
  func.func @transform_3(%arg0: i32) -> (i32, i32) {
    %c0_i32 = arith.constant 0 : i32
    %c0_i32_0 = arith.constant 0 : i32
    return %arg0, %c0_i32 : i32, i32
  }
}

module attributes {stable_mosaic.version = 11 : i64} {
  func.func @_gemm_stats_kernel(%arg0: i32, %arg1: i32, %arg2: memref<128x256xbf16, #tpu.memory_space<vmem>>, %arg3: memref<256x128xbf16, #tpu.memory_space<vmem>>, %arg4: memref<128x128xbf16, #tpu.memory_space<vmem>>, %arg5: memref<1x8x128xf32, #tpu.memory_space<vmem>>, %arg6: memref<1x8x128xf32, #tpu.memory_space<vmem>>, %arg7: memref<128x128xf32, #tpu.memory_space<vmem>>) attributes {dimension_semantics = [#tpu.dimension_semantics<parallel>, #tpu.dimension_semantics<arbitrary>], iteration_bounds = array<i64: 1, 1>, scalar_prefetch = 0 : i64, scratch_operands = 1 : i64, tpu.core_type = #tpu.core_type<tc>, window_params = [{transform_indices = @transform_0, window_bounds = array<i64: 128, 256>}, {transform_indices = @transform_1, window_bounds = array<i64: 256, 128>}, {transform_indices = @transform_2, window_bounds = array<i64: 128, 128>}, {transform_indices = @transform_3, window_bounds = array<i64: 1, 8, 128>}, {transform_indices = @transform_4, window_bounds = array<i64: 1, 8, 128>}]} {
    %c0_i32 = arith.constant 0 : i32
    %0 = arith.cmpi eq, %arg1, %c0_i32 : i32
    %1 = arith.extui %0 : i1 to i32
    %c0_i32_0 = arith.constant 0 : i32
    %2 = arith.cmpi ne, %1, %c0_i32_0 : i32
    scf.if %2 {
      %cst_10 = arith.constant 0.000000e+00 : f32
      %12 = vector.broadcast %cst_10 : f32 to vector<128x128xf32>
      %c0_11 = arith.constant 0 : index
      %c0_12 = arith.constant 0 : index
      %13 = vector.load %arg7[%c0_11, %c0_12] : memref<128x128xf32, #tpu.memory_space<vmem>>, vector<128x128xf32>
      tpu.vector_store %arg7[%c0_11, %c0_12], %12 {strides = array<i32>} : memref<128x128xf32, #tpu.memory_space<vmem>>, vector<128x128xf32>,
    } else {
    }
    %c0 = arith.constant 0 : index
    %c0_1 = arith.constant 0 : index
    %3 = vector.load %arg7[%c0, %c0_1] : memref<128x128xf32, #tpu.memory_space<vmem>>, vector<128x128xf32>
    %c0_2 = arith.constant 0 : index
    %c0_3 = arith.constant 0 : index
    %4 = vector.load %arg2[%c0_2, %c0_3] : memref<128x256xbf16, #tpu.memory_space<vmem>>, vector<128x256xbf16>
    %c0_4 = arith.constant 0 : index
    %c0_5 = arith.constant 0 : index
    %5 = vector.load %arg3[%c0_4, %c0_5] : memref<256x128xbf16, #tpu.memory_space<vmem>>, vector<256x128xbf16>
    %cst = arith.constant dense<0.000000e+00> : vector<128x128xf32>
    %6 = tpu.matmul %4, %5, %cst {dimension_numbers = #tpu.dot_dimension_numbers<[1], [0], [0], [1], [0, 0, 1, 1], [], []>} : vector<128x256xbf16>, vector<256x128xbf16>, vector<128x128xf32> -> vector<128x128xf32>
    %7 = arith.addf %3, %6 : vector<128x128xf32>
    %c0_6 = arith.constant 0 : index
    %c0_7 = arith.constant 0 : index
    %8 = vector.load %arg7[%c0_6, %c0_7] : memref<128x128xf32, #tpu.memory_space<vmem>>, vector<128x128xf32>
    tpu.vector_store %arg7[%c0_6, %c0_7], %7 {strides = array<i32>} : memref<128x128xf32, #tpu.memory_space<vmem>>, vector<128x128xf32>,
    %c0_i32_8 = arith.constant 0 : i32
    %9 = arith.cmpi eq, %arg1, %c0_i32_8 : i32
    %10 = arith.extui %9 : i1 to i32
    %c0_i32_9 = arith.constant 0 : i32
    %11 = arith.cmpi ne, %10, %c0_i32_9 : i32
    scf.if %11 {
      %c0_10 = arith.constant 0 : index
      %c0_11 = arith.constant 0 : index
      %12 = vector.load %arg7[%c0_10, %c0_11] : memref<128x128xf32, #tpu.memory_space<vmem>>, vector<128x128xf32>
      %13 = arith.truncf %12 : vector<128x128xf32> to vector<128x128xbf16>
      %c0_12 = arith.constant 0 : index
      %c0_13 = arith.constant 0 : index
      %14 = vector.load %arg4[%c0_12, %c0_13] : memref<128x128xbf16, #tpu.memory_space<vmem>>, vector<128x128xbf16>
      tpu.vector_store %arg4[%c0_12, %c0_13], %13 {strides = array<i32>} : memref<128x128xbf16, #tpu.memory_space<vmem>>, vector<128x128xbf16>,
      %cst_14 = arith.constant dense<0.000000e+00> : vector<128xf32>
      %15 = vector.multi_reduction <add>, %12, %cst_14 [0] : vector<128x128xf32> to vector<128xf32>
      %16 = vector.shape_cast %15 : vector<128xf32> to vector<1x128xf32>
      %17 = arith.mulf %12, %12 : vector<128x128xf32>
      %cst_15 = arith.constant dense<0.000000e+00> : vector<128xf32>
      %18 = vector.multi_reduction <add>, %17, %cst_15 [0] : vector<128x128xf32> to vector<128xf32>
      %19 = vector.shape_cast %18 : vector<128xf32> to vector<1x128xf32>
      %20 = vector.shape_cast %16 : vector<1x128xf32> to vector<1x1x128xf32>
      %21 = vector.shape_cast %20 : vector<1x1x128xf32> to vector<1x1x128xf32>
      %22 = vector.broadcast %21 : vector<1x1x128xf32> to vector<1x8x128xf32>
      %c0_16 = arith.constant 0 : index
      %c0_17 = arith.constant 0 : index
      %c0_18 = arith.constant 0 : index
      %23 = vector.load %arg5[%c0_16, %c0_17, %c0_18] : memref<1x8x128xf32, #tpu.memory_space<vmem>>, vector<1x8x128xf32>
      tpu.vector_store %arg5[%c0_16, %c0_17, %c0_18], %22 {strides = array<i32>} : memref<1x8x128xf32, #tpu.memory_space<vmem>>, vector<1x8x128xf32>,
      %24 = vector.shape_cast %19 : vector<1x128xf32> to vector<1x1x128xf32>
      %25 = vector.shape_cast %24 : vector<1x1x128xf32> to vector<1x1x128xf32>
      %26 = vector.broadcast %25 : vector<1x1x128xf32> to vector<1x8x128xf32>
      %c0_19 = arith.constant 0 : index
      %c0_20 = arith.constant 0 : index
      %c0_21 = arith.constant 0 : index
      %27 = vector.load %arg6[%c0_19, %c0_20, %c0_21] : memref<1x8x128xf32, #tpu.memory_space<vmem>>, vector<1x8x128xf32>
      tpu.vector_store %arg6[%c0_19, %c0_20, %c0_21], %26 {strides = array<i32>} : memref<1x8x128xf32, #tpu.memory_space<vmem>>, vector<1x8x128xf32>,
    } else {
    }
    return
  }
  func.func @transform_0(%arg0: i32, %arg1: i32) -> (i32, i32) {
    %c0_i32 = arith.constant 0 : i32
    return %arg0, %arg1 : i32, i32
  }
  func.func @transform_1(%arg0: i32, %arg1: i32) -> (i32, i32) {
    %c0_i32 = arith.constant 0 : i32
    %c0_i32_0 = arith.constant 0 : i32
    return %arg1, %c0_i32 : i32, i32
  }
  func.func @transform_2(%arg0: i32, %arg1: i32) -> (i32, i32) {
    %c0_i32 = arith.constant 0 : i32
    %c0_i32_0 = arith.constant 0 : i32
    return %arg0, %c0_i32 : i32, i32
  }
  func.func @transform_3(%arg0: i32, %arg1: i32) -> (i32, i32, i32) {
    %c0_i32 = arith.constant 0 : i32
    %c0_i32_0 = arith.constant 0 : i32
    %c0_i32_1 = arith.constant 0 : i32
    return %arg0, %c0_i32, %c0_i32_0 : i32, i32, i32
  }
  func.func @transform_4(%arg0: i32, %arg1: i32) -> (i32, i32, i32) {
    %c0_i32 = arith.constant 0 : i32
    %c0_i32_0 = arith.constant 0 : i32
    %c0_i32_1 = arith.constant 0 : i32
    return %arg0, %c0_i32, %c0_i32_0 : i32, i32, i32
  }
}

module attributes {stable_mosaic.version = 11 : i64} {
  func.func @_affine_lrelu_kernel(%arg0: i32, %arg1: memref<128x128xbf16, #tpu.memory_space<vmem>>, %arg2: memref<1x128xf32, #tpu.memory_space<vmem>>, %arg3: memref<1x128xf32, #tpu.memory_space<vmem>>, %arg4: memref<128x128xbf16, #tpu.memory_space<vmem>>) attributes {dimension_semantics = [#tpu.dimension_semantics<parallel>], iteration_bounds = array<i64: 1>, scalar_prefetch = 0 : i64, scratch_operands = 0 : i64, tpu.core_type = #tpu.core_type<tc>, window_params = [{transform_indices = @transform_0, window_bounds = array<i64: 128, 128>}, {pipeline_mode = #tpu.pipeline_mode<synchronous>, transform_indices = @transform_1, window_bounds = array<i64: 1, 128>}, {pipeline_mode = #tpu.pipeline_mode<synchronous>, transform_indices = @transform_2, window_bounds = array<i64: 1, 128>}, {transform_indices = @transform_3, window_bounds = array<i64: 128, 128>}]} {
    %c0 = arith.constant 0 : index
    %c0_0 = arith.constant 0 : index
    %0 = vector.load %arg1[%c0, %c0_0] : memref<128x128xbf16, #tpu.memory_space<vmem>>, vector<128x128xbf16>
    %1 = arith.extf %0 : vector<128x128xbf16> to vector<128x128xf32>
    %c0_1 = arith.constant 0 : index
    %c0_2 = arith.constant 0 : index
    %2 = vector.load %arg2[%c0_1, %c0_2] : memref<1x128xf32, #tpu.memory_space<vmem>>, vector<1x128xf32>
    %3 = vector.broadcast %2 : vector<1x128xf32> to vector<128x128xf32>
    %4 = arith.mulf %1, %3 : vector<128x128xf32>
    %c0_3 = arith.constant 0 : index
    %c0_4 = arith.constant 0 : index
    %5 = vector.load %arg3[%c0_3, %c0_4] : memref<1x128xf32, #tpu.memory_space<vmem>>, vector<1x128xf32>
    %6 = vector.broadcast %5 : vector<1x128xf32> to vector<128x128xf32>
    %7 = arith.addf %4, %6 : vector<128x128xf32>
    %cst = arith.constant 0.000000e+00 : f32
    %8 = vector.broadcast %cst : f32 to vector<128x128xf32>
    %9 = arith.cmpf oge, %7, %8 : vector<128x128xf32>
    %cst_5 = arith.constant 2.000000e-01 : f32
    %10 = vector.broadcast %cst_5 : f32 to vector<128x128xf32>
    %11 = arith.mulf %10, %7 : vector<128x128xf32>
    %12 = arith.select %9, %7, %11 : vector<128x128xi1>, vector<128x128xf32>
    %13 = arith.truncf %12 : vector<128x128xf32> to vector<128x128xbf16>
    %c0_6 = arith.constant 0 : index
    %c0_7 = arith.constant 0 : index
    %14 = vector.load %arg4[%c0_6, %c0_7] : memref<128x128xbf16, #tpu.memory_space<vmem>>, vector<128x128xbf16>
    tpu.vector_store %arg4[%c0_6, %c0_7], %13 {strides = array<i32>} : memref<128x128xbf16, #tpu.memory_space<vmem>>, vector<128x128xbf16>,
    return
  }
  func.func @transform_0(%arg0: i32) -> (i32, i32) {
    %c0_i32 = arith.constant 0 : i32
    %c0_i32_0 = arith.constant 0 : i32
    return %arg0, %c0_i32 : i32, i32
  }
  func.func @transform_1(%arg0: i32) -> (i32, i32) {
    %c0_i32 = arith.constant 0 : i32
    %c0_i32_0 = arith.constant 0 : i32
    %c0_i32_1 = arith.constant 0 : i32
    return %c0_i32, %c0_i32_0 : i32, i32
  }
  func.func @transform_2(%arg0: i32) -> (i32, i32) {
    %c0_i32 = arith.constant 0 : i32
    %c0_i32_0 = arith.constant 0 : i32
    %c0_i32_1 = arith.constant 0 : i32
    return %c0_i32, %c0_i32_0 : i32, i32
  }
  func.func @transform_3(%arg0: i32) -> (i32, i32) {
    %c0_i32 = arith.constant 0 : i32
    %c0_i32_0 = arith.constant 0 : i32
    return %arg0, %c0_i32 : i32, i32
  }
}

module attributes {stable_mosaic.version = 11 : i64} {
  func.func @_gemm_stats_kernel(%arg0: i32, %arg1: i32, %arg2: memref<32x512xbf16, #tpu.memory_space<vmem>>, %arg3: memref<512x128xbf16, #tpu.memory_space<vmem>>, %arg4: memref<32x128xbf16, #tpu.memory_space<vmem>>, %arg5: memref<1x8x128xf32, #tpu.memory_space<vmem>>, %arg6: memref<1x8x128xf32, #tpu.memory_space<vmem>>, %arg7: memref<32x128xf32, #tpu.memory_space<vmem>>) attributes {dimension_semantics = [#tpu.dimension_semantics<parallel>, #tpu.dimension_semantics<arbitrary>], iteration_bounds = array<i64: 1, 1>, scalar_prefetch = 0 : i64, scratch_operands = 1 : i64, tpu.core_type = #tpu.core_type<tc>, window_params = [{transform_indices = @transform_0, window_bounds = array<i64: 32, 512>}, {transform_indices = @transform_1, window_bounds = array<i64: 512, 128>}, {transform_indices = @transform_2, window_bounds = array<i64: 32, 128>}, {transform_indices = @transform_3, window_bounds = array<i64: 1, 8, 128>}, {transform_indices = @transform_4, window_bounds = array<i64: 1, 8, 128>}]} {
    %c0_i32 = arith.constant 0 : i32
    %0 = arith.cmpi eq, %arg1, %c0_i32 : i32
    %1 = arith.extui %0 : i1 to i32
    %c0_i32_0 = arith.constant 0 : i32
    %2 = arith.cmpi ne, %1, %c0_i32_0 : i32
    scf.if %2 {
      %cst_10 = arith.constant 0.000000e+00 : f32
      %12 = vector.broadcast %cst_10 : f32 to vector<32x128xf32>
      %c0_11 = arith.constant 0 : index
      %c0_12 = arith.constant 0 : index
      %13 = vector.load %arg7[%c0_11, %c0_12] : memref<32x128xf32, #tpu.memory_space<vmem>>, vector<32x128xf32>
      tpu.vector_store %arg7[%c0_11, %c0_12], %12 {strides = array<i32>} : memref<32x128xf32, #tpu.memory_space<vmem>>, vector<32x128xf32>,
    } else {
    }
    %c0 = arith.constant 0 : index
    %c0_1 = arith.constant 0 : index
    %3 = vector.load %arg7[%c0, %c0_1] : memref<32x128xf32, #tpu.memory_space<vmem>>, vector<32x128xf32>
    %c0_2 = arith.constant 0 : index
    %c0_3 = arith.constant 0 : index
    %4 = vector.load %arg2[%c0_2, %c0_3] : memref<32x512xbf16, #tpu.memory_space<vmem>>, vector<32x512xbf16>
    %c0_4 = arith.constant 0 : index
    %c0_5 = arith.constant 0 : index
    %5 = vector.load %arg3[%c0_4, %c0_5] : memref<512x128xbf16, #tpu.memory_space<vmem>>, vector<512x128xbf16>
    %cst = arith.constant dense<0.000000e+00> : vector<32x128xf32>
    %6 = tpu.matmul %4, %5, %cst {dimension_numbers = #tpu.dot_dimension_numbers<[1], [0], [0], [1], [0, 0, 1, 1], [], []>} : vector<32x512xbf16>, vector<512x128xbf16>, vector<32x128xf32> -> vector<32x128xf32>
    %7 = arith.addf %3, %6 : vector<32x128xf32>
    %c0_6 = arith.constant 0 : index
    %c0_7 = arith.constant 0 : index
    %8 = vector.load %arg7[%c0_6, %c0_7] : memref<32x128xf32, #tpu.memory_space<vmem>>, vector<32x128xf32>
    tpu.vector_store %arg7[%c0_6, %c0_7], %7 {strides = array<i32>} : memref<32x128xf32, #tpu.memory_space<vmem>>, vector<32x128xf32>,
    %c0_i32_8 = arith.constant 0 : i32
    %9 = arith.cmpi eq, %arg1, %c0_i32_8 : i32
    %10 = arith.extui %9 : i1 to i32
    %c0_i32_9 = arith.constant 0 : i32
    %11 = arith.cmpi ne, %10, %c0_i32_9 : i32
    scf.if %11 {
      %c0_10 = arith.constant 0 : index
      %c0_11 = arith.constant 0 : index
      %12 = vector.load %arg7[%c0_10, %c0_11] : memref<32x128xf32, #tpu.memory_space<vmem>>, vector<32x128xf32>
      %13 = arith.truncf %12 : vector<32x128xf32> to vector<32x128xbf16>
      %c0_12 = arith.constant 0 : index
      %c0_13 = arith.constant 0 : index
      %14 = vector.load %arg4[%c0_12, %c0_13] : memref<32x128xbf16, #tpu.memory_space<vmem>>, vector<32x128xbf16>
      tpu.vector_store %arg4[%c0_12, %c0_13], %13 {strides = array<i32>} : memref<32x128xbf16, #tpu.memory_space<vmem>>, vector<32x128xbf16>,
      %cst_14 = arith.constant dense<0.000000e+00> : vector<128xf32>
      %15 = vector.multi_reduction <add>, %12, %cst_14 [0] : vector<32x128xf32> to vector<128xf32>
      %16 = vector.shape_cast %15 : vector<128xf32> to vector<1x128xf32>
      %17 = arith.mulf %12, %12 : vector<32x128xf32>
      %cst_15 = arith.constant dense<0.000000e+00> : vector<128xf32>
      %18 = vector.multi_reduction <add>, %17, %cst_15 [0] : vector<32x128xf32> to vector<128xf32>
      %19 = vector.shape_cast %18 : vector<128xf32> to vector<1x128xf32>
      %20 = vector.shape_cast %16 : vector<1x128xf32> to vector<1x1x128xf32>
      %21 = vector.shape_cast %20 : vector<1x1x128xf32> to vector<1x1x128xf32>
      %22 = vector.broadcast %21 : vector<1x1x128xf32> to vector<1x8x128xf32>
      %c0_16 = arith.constant 0 : index
      %c0_17 = arith.constant 0 : index
      %c0_18 = arith.constant 0 : index
      %23 = vector.load %arg5[%c0_16, %c0_17, %c0_18] : memref<1x8x128xf32, #tpu.memory_space<vmem>>, vector<1x8x128xf32>
      tpu.vector_store %arg5[%c0_16, %c0_17, %c0_18], %22 {strides = array<i32>} : memref<1x8x128xf32, #tpu.memory_space<vmem>>, vector<1x8x128xf32>,
      %24 = vector.shape_cast %19 : vector<1x128xf32> to vector<1x1x128xf32>
      %25 = vector.shape_cast %24 : vector<1x1x128xf32> to vector<1x1x128xf32>
      %26 = vector.broadcast %25 : vector<1x1x128xf32> to vector<1x8x128xf32>
      %c0_19 = arith.constant 0 : index
      %c0_20 = arith.constant 0 : index
      %c0_21 = arith.constant 0 : index
      %27 = vector.load %arg6[%c0_19, %c0_20, %c0_21] : memref<1x8x128xf32, #tpu.memory_space<vmem>>, vector<1x8x128xf32>
      tpu.vector_store %arg6[%c0_19, %c0_20, %c0_21], %26 {strides = array<i32>} : memref<1x8x128xf32, #tpu.memory_space<vmem>>, vector<1x8x128xf32>,
    } else {
    }
    return
  }
  func.func @transform_0(%arg0: i32, %arg1: i32) -> (i32, i32) {
    %c0_i32 = arith.constant 0 : i32
    return %arg0, %arg1 : i32, i32
  }
  func.func @transform_1(%arg0: i32, %arg1: i32) -> (i32, i32) {
    %c0_i32 = arith.constant 0 : i32
    %c0_i32_0 = arith.constant 0 : i32
    return %arg1, %c0_i32 : i32, i32
  }
  func.func @transform_2(%arg0: i32, %arg1: i32) -> (i32, i32) {
    %c0_i32 = arith.constant 0 : i32
    %c0_i32_0 = arith.constant 0 : i32
    return %arg0, %c0_i32 : i32, i32
  }
  func.func @transform_3(%arg0: i32, %arg1: i32) -> (i32, i32, i32) {
    %c0_i32 = arith.constant 0 : i32
    %c0_i32_0 = arith.constant 0 : i32
    %c0_i32_1 = arith.constant 0 : i32
    return %arg0, %c0_i32, %c0_i32_0 : i32, i32, i32
  }
  func.func @transform_4(%arg0: i32, %arg1: i32) -> (i32, i32, i32) {
    %c0_i32 = arith.constant 0 : i32
    %c0_i32_0 = arith.constant 0 : i32
    %c0_i32_1 = arith.constant 0 : i32
    return %arg0, %c0_i32, %c0_i32_0 : i32, i32, i32
  }
}

module attributes {stable_mosaic.version = 11 : i64} {
  func.func @_affine_lrelu_kernel(%arg0: i32, %arg1: memref<32x128xbf16, #tpu.memory_space<vmem>>, %arg2: memref<1x128xf32, #tpu.memory_space<vmem>>, %arg3: memref<1x128xf32, #tpu.memory_space<vmem>>, %arg4: memref<32x128xbf16, #tpu.memory_space<vmem>>) attributes {dimension_semantics = [#tpu.dimension_semantics<parallel>], iteration_bounds = array<i64: 1>, scalar_prefetch = 0 : i64, scratch_operands = 0 : i64, tpu.core_type = #tpu.core_type<tc>, window_params = [{transform_indices = @transform_0, window_bounds = array<i64: 32, 128>}, {pipeline_mode = #tpu.pipeline_mode<synchronous>, transform_indices = @transform_1, window_bounds = array<i64: 1, 128>}, {pipeline_mode = #tpu.pipeline_mode<synchronous>, transform_indices = @transform_2, window_bounds = array<i64: 1, 128>}, {transform_indices = @transform_3, window_bounds = array<i64: 32, 128>}]} {
    %c0 = arith.constant 0 : index
    %c0_0 = arith.constant 0 : index
    %0 = vector.load %arg1[%c0, %c0_0] : memref<32x128xbf16, #tpu.memory_space<vmem>>, vector<32x128xbf16>
    %1 = arith.extf %0 : vector<32x128xbf16> to vector<32x128xf32>
    %c0_1 = arith.constant 0 : index
    %c0_2 = arith.constant 0 : index
    %2 = vector.load %arg2[%c0_1, %c0_2] : memref<1x128xf32, #tpu.memory_space<vmem>>, vector<1x128xf32>
    %3 = vector.broadcast %2 : vector<1x128xf32> to vector<32x128xf32>
    %4 = arith.mulf %1, %3 : vector<32x128xf32>
    %c0_3 = arith.constant 0 : index
    %c0_4 = arith.constant 0 : index
    %5 = vector.load %arg3[%c0_3, %c0_4] : memref<1x128xf32, #tpu.memory_space<vmem>>, vector<1x128xf32>
    %6 = vector.broadcast %5 : vector<1x128xf32> to vector<32x128xf32>
    %7 = arith.addf %4, %6 : vector<32x128xf32>
    %cst = arith.constant 0.000000e+00 : f32
    %8 = vector.broadcast %cst : f32 to vector<32x128xf32>
    %9 = arith.cmpf oge, %7, %8 : vector<32x128xf32>
    %cst_5 = arith.constant 2.000000e-01 : f32
    %10 = vector.broadcast %cst_5 : f32 to vector<32x128xf32>
    %11 = arith.mulf %10, %7 : vector<32x128xf32>
    %12 = arith.select %9, %7, %11 : vector<32x128xi1>, vector<32x128xf32>
    %13 = arith.truncf %12 : vector<32x128xf32> to vector<32x128xbf16>
    %c0_6 = arith.constant 0 : index
    %c0_7 = arith.constant 0 : index
    %14 = vector.load %arg4[%c0_6, %c0_7] : memref<32x128xbf16, #tpu.memory_space<vmem>>, vector<32x128xbf16>
    tpu.vector_store %arg4[%c0_6, %c0_7], %13 {strides = array<i32>} : memref<32x128xbf16, #tpu.memory_space<vmem>>, vector<32x128xbf16>,
    return
  }
  func.func @transform_0(%arg0: i32) -> (i32, i32) {
    %c0_i32 = arith.constant 0 : i32
    %c0_i32_0 = arith.constant 0 : i32
    return %arg0, %c0_i32 : i32, i32
  }
  func.func @transform_1(%arg0: i32) -> (i32, i32) {
    %c0_i32 = arith.constant 0 : i32
    %c0_i32_0 = arith.constant 0 : i32
    %c0_i32_1 = arith.constant 0 : i32
    return %c0_i32, %c0_i32_0 : i32, i32
  }
  func.func @transform_2(%arg0: i32) -> (i32, i32) {
    %c0_i32 = arith.constant 0 : i32
    %c0_i32_0 = arith.constant 0 : i32
    %c0_i32_1 = arith.constant 0 : i32
    return %c0_i32, %c0_i32_0 : i32, i32
  }
  func.func @transform_3(%arg0: i32) -> (i32, i32) {
    %c0_i32 = arith.constant 0 : i32
    %c0_i32_0 = arith.constant 0 : i32
    return %arg0, %c0_i32 : i32, i32
  }
}

module attributes {stable_mosaic.version = 11 : i64} {
  func.func @_final_sigmoid_kernel(%arg0: i32, %arg1: memref<8x1024xbf16, #tpu.memory_space<vmem>>, %arg2: memref<1x1024xbf16, #tpu.memory_space<vmem>>, %arg3: memref<8x1xf32, #tpu.memory_space<vmem>>) attributes {dimension_semantics = [#tpu.dimension_semantics<parallel>], iteration_bounds = array<i64: 1>, scalar_prefetch = 0 : i64, scratch_operands = 0 : i64, tpu.core_type = #tpu.core_type<tc>, window_params = [{transform_indices = @transform_0, window_bounds = array<i64: 8, 1024>}, {pipeline_mode = #tpu.pipeline_mode<synchronous>, transform_indices = @transform_1, window_bounds = array<i64: 1, 1024>}, {transform_indices = @transform_2, window_bounds = array<i64: 8, 1>}]} {
    %c0 = arith.constant 0 : index
    %c0_0 = arith.constant 0 : index
    %0 = vector.load %arg1[%c0, %c0_0] : memref<8x1024xbf16, #tpu.memory_space<vmem>>, vector<8x1024xbf16>
    %1 = arith.extf %0 : vector<8x1024xbf16> to vector<8x1024xf32>
    %c0_1 = arith.constant 0 : index
    %c0_2 = arith.constant 0 : index
    %2 = vector.load %arg2[%c0_1, %c0_2] : memref<1x1024xbf16, #tpu.memory_space<vmem>>, vector<1x1024xbf16>
    %3 = arith.extf %2 : vector<1x1024xbf16> to vector<1x1024xf32>
    %4 = vector.broadcast %3 : vector<1x1024xf32> to vector<8x1024xf32>
    %5 = arith.mulf %1, %4 : vector<8x1024xf32>
    %cst = arith.constant dense<0.000000e+00> : vector<8xf32>
    %6 = vector.multi_reduction <add>, %5, %cst [1] : vector<8x1024xf32> to vector<8xf32>
    %7 = vector.shape_cast %6 : vector<8xf32> to vector<8x1xf32>
    %cst_3 = arith.constant 0.000000e+00 : f32
    %8 = vector.broadcast %cst_3 : f32 to vector<8x1xf32>
    %9 = arith.subf %8, %7 : vector<8x1xf32>
    %10 = math.exp %9 : vector<8x1xf32>
    %cst_4 = arith.constant 1.000000e+00 : f32
    %11 = vector.broadcast %cst_4 : f32 to vector<8x1xf32>
    %12 = arith.addf %11, %10 : vector<8x1xf32>
    %13 = tpu.reciprocal %12 {approx = true} : vector<8x1xf32> -> vector<8x1xf32>
    %cst_5 = arith.constant 0.000000e+00 : f32
    %cst_6 = arith.constant 1.000000e+00 : f32
    %14 = vector.broadcast %cst_5 : f32 to vector<8x1xf32>
    %15 = arith.maximumf %14, %13 : vector<8x1xf32>
    %16 = vector.broadcast %cst_6 : f32 to vector<8x1xf32>
    %17 = arith.minimumf %16, %15 : vector<8x1xf32>
    %c0_7 = arith.constant 0 : index
    %c0_8 = arith.constant 0 : index
    %18 = vector.load %arg3[%c0_7, %c0_8] : memref<8x1xf32, #tpu.memory_space<vmem>>, vector<8x1xf32>
    tpu.vector_store %arg3[%c0_7, %c0_8], %17 {strides = array<i32>} : memref<8x1xf32, #tpu.memory_space<vmem>>, vector<8x1xf32>,
    return
  }
  func.func @transform_0(%arg0: i32) -> (i32, i32) {
    %c0_i32 = arith.constant 0 : i32
    %c0_i32_0 = arith.constant 0 : i32
    return %arg0, %c0_i32 : i32, i32
  }
  func.func @transform_1(%arg0: i32) -> (i32, i32) {
    %c0_i32 = arith.constant 0 : i32
    %c0_i32_0 = arith.constant 0 : i32
    %c0_i32_1 = arith.constant 0 : i32
    return %c0_i32, %c0_i32_0 : i32, i32
  }
  func.func @transform_2(%arg0: i32) -> (i32, i32) {
    %c0_i32 = arith.constant 0 : i32
    %c0_i32_0 = arith.constant 0 : i32
    return %arg0, %c0_i32 : i32, i32
  }
}

</mosaic_0001>

<bundles_post_ra>
// kernel: dc_discriminator.9
= control target key start
LH: loop header
LB: loop body
LE: loop exit
PB: predicated region body
PF: predicated region fallthrough
CT: control target
= control target key end

     0   :  { %s2461_s1 = inlined_call_operand.vmem [shape: bf16[128,128], index: 1, kind: input, shape index: {}]   ;;  %s2462_s0 = inlined_call_operand.vmem [shape: bf16[512,128], index: 0, kind: input, shape index: {}]   ;;  %s2463_s2 = inlined_call_operand.vmem [shape: bf16[512,128], index: 2, kind: output, shape index: {0}]   ;;  %s2464_s3 = inlined_call_operand.vmem [shape: f32[1,8,128], index: 3, kind: output, shape index: {1}]   ;;  %s2465_s4 = inlined_call_operand.vmem [shape: f32[1,8,128], index: 4, kind: output, shape index: {2}]  }
   0x1   :  { %v1982_v0 = vld [vmem:[%s2461_s1] sm:$0xff]   ;;  %v1983_v1 = vld [vmem:[%s2461_s1 + $0x8] sm:$0xff]   ;;  %v1984_v2 = vld [vmem:[%s2461_s1 + $0x10] sm:$0xff]  }
   0x2   :  { %1886 = vmatprep.subr.bf16.mxu0 %v1982_v0  ;;  %1966 = vmatprep.subr.bf16.mxu1 %v1982_v0  ;;  %v1985_v3 = vld [vmem:[%s2461_s1 + $0x18] sm:$0xff]   ;;  %v1990_v4 = vld [vmem:[%s2462_s0] sm:$0xff]   ;;  %v1987_v6 = vld [vmem:[%s2461_s1 + $0x28] sm:$0xff]  }
   0x3   :  { %1887 = vmatpush3.bf16.msra.mxu0 %v1982_v0  ;;  %1974 = vmatpush3.bf16.msra.mxu1 %v1982_v0  ;;  %v1986_v5 = vld [vmem:[%s2461_s1 + $0x20] sm:$0xff]   ;;  %v1988_v7 = vld [vmem:[%s2461_s1 + $0x30] sm:$0xff]   ;;  %v1989_v8 = vld [vmem:[%s2461_s1 + $0x38] sm:$0xff]  }
   0x4   :  { %1888 = vmatprep.subr.bf16.mxu0 %v1983_v1  ;;  %1967 = vmatprep.subr.bf16.mxu1 %v1983_v1  ;;  %v2006_v9 = vld [vmem:[%s2462_s0 + $0x80] sm:$0xff]   ;;  %v1991_v10 = vld [vmem:[%s2462_s0 + $0x8] sm:$0xff]   ;;  %v1992_v11 = vld [vmem:[%s2462_s0 + $0x10] sm:$0xff]  }
   0x5   :  { %1902 = vmatprep.mubr.bf16.mxu0 %v1990_v4  ;;  %1934 = vmatprep.mubr.bf16.mxu1 %v2006_v9  ;;  %v2007_v12 = vld [vmem:[%s2462_s0 + $0x88] sm:$0xff]   ;;  %v2008_v13 = vld [vmem:[%s2462_s0 + $0x90] sm:$0xff]   ;;  %v1993_v14 = vld [vmem:[%s2462_s0 + $0x18] sm:$0xff]  }
   0x6   :  { %v1994_v15 = vld [vmem:[%s2462_s0 + $0x20] sm:$0xff]   ;;  %v2009_v16 = vld [vmem:[%s2462_s0 + $0x98] sm:$0xff]   ;;  %v1995_v18 = vld [vmem:[%s2462_s0 + $0x28] sm:$0xff]  }
   0x7   :  { %1889 = vmatpush3.bf16.msra.mxu0 %v1983_v1  ;;  %1975 = vmatpush3.bf16.msra.mxu1 %v1983_v1  ;;  %v2010_v17 = vld [vmem:[%s2462_s0 + $0xa0] sm:$0xff]   ;;  %v2011_v19 = vld [vmem:[%s2462_s0 + $0xa8] sm:$0xff]   ;;  %v1996_v20 = vld [vmem:[%s2462_s0 + $0x30] sm:$0xff]  }
   0x8   :  { %1890 = vmatprep.subr.bf16.mxu0 %v1984_v2  ;;  %1968 = vmatprep.subr.bf16.mxu1 %v1984_v2  ;;  %v2012_v21 = vld [vmem:[%s2462_s0 + $0xb0] sm:$0xff]   ;;  %v1997_v22 = vld [vmem:[%s2462_s0 + $0x38] sm:$0xff]   ;;  %v1998_v24 = vld [vmem:[%s2462_s0 + $0x40] sm:$0xff]  }
   0x9   :  { %v2013_v23 = vld [vmem:[%s2462_s0 + $0xb8] sm:$0xff]   ;;  %v2014_v25 = vld [vmem:[%s2462_s0 + $0xc0] sm:$0xff]   ;;  %v1999_v26 = vld [vmem:[%s2462_s0 + $0x48] sm:$0xff]  }
   0xa   :  { %v2015_v27 = vld [vmem:[%s2462_s0 + $0xc8] sm:$0xff]   ;;  %v2000_v28 = vld [vmem:[%s2462_s0 + $0x50] sm:$0xff]   ;;  %v2001_v30 = vld [vmem:[%s2462_s0 + $0x58] sm:$0xff]  }
   0xb   :  { %1891 = vmatpush3.bf16.msra.mxu0 %v1984_v2  ;;  %1976 = vmatpush3.bf16.msra.mxu1 %v1984_v2  ;;  %v2016_v29 = vld [vmem:[%s2462_s0 + $0xd0] sm:$0xff]   ;;  %v2017_v31 = vld [vmem:[%s2462_s0 + $0xd8] sm:$0xff]   ;;  %v2002_v32 = vld [vmem:[%s2462_s0 + $0x60] sm:$0xff]  }
   0xc   :  { %1892 = vmatprep.subr.bf16.mxu0 %v1985_v3  ;;  %1969 = vmatprep.subr.bf16.mxu1 %v1985_v3  ;;  %v2018_v33 = vld [vmem:[%s2462_s0 + $0xe0] sm:$0xff]   ;;  %v2003_v34 = vld [vmem:[%s2462_s0 + $0x68] sm:$0xff]   ;;  %v2004_v36 = vld [vmem:[%s2462_s0 + $0x70] sm:$0xff]  }
   0xd   :  { %v2019_v35 = vld [vmem:[%s2462_s0 + $0xe8] sm:$0xff]   ;;  %v2020_v37 = vld [vmem:[%s2462_s0 + $0xf0] sm:$0xff]   ;;  %v2005_v38 = vld [vmem:[%s2462_s0 + $0x78] sm:$0xff]  }
   0xe   :  { %v2021_v39 = vld [vmem:[%s2462_s0 + $0xf8] sm:$0xff]  }
   0xf   :  { %1893 = vmatpush3.bf16.msra.mxu0 %v1985_v3  ;;  %1977 = vmatpush3.bf16.msra.mxu1 %v1985_v3 }
  0x10   :  { %1894 = vmatprep.subr.bf16.mxu0 %v1986_v5  ;;  %1970 = vmatprep.subr.bf16.mxu1 %v1986_v5 }
  0x13   :  { %1895 = vmatpush3.bf16.msra.mxu0 %v1986_v5  ;;  %1978 = vmatpush3.bf16.msra.mxu1 %v1986_v5 }
  0x14   :  { %1896 = vmatprep.subr.bf16.mxu0 %v1987_v6  ;;  %1971 = vmatprep.subr.bf16.mxu1 %v1987_v6 }
  0x17   :  { %1897 = vmatpush3.bf16.msra.mxu0 %v1987_v6  ;;  %1979 = vmatpush3.bf16.msra.mxu1 %v1987_v6 }
  0x18   :  { %1898 = vmatprep.subr.bf16.mxu0 %v1988_v7  ;;  %1972 = vmatprep.subr.bf16.mxu1 %v1988_v7 }
  0x1b   :  { %1899 = vmatpush3.bf16.msra.mxu0 %v1988_v7  ;;  %1980 = vmatpush3.bf16.msra.mxu1 %v1988_v7 }
  0x1c   :  { %1900 = vmatprep.subr.bf16.mxu0 %v1989_v8  ;;  %1973 = vmatprep.subr.bf16.mxu1 %v1989_v8 }
  0x1f   :  { %1901 = vmatpush3.bf16.msra.mxu0 %v1989_v8  ;;  %1981 = vmatpush3.bf16.msra.mxu1 %v1989_v8 }
  0x22   :  { %1903 = vmatmul.mubr.bf16.vlgmr.msra.gmra.mrb[0].mxu0 %v1991_v10  ;;  %1935 = vmatmul.mubr.bf16.vlgmr.msra.gmra.mrb[0].mxu1 %v2007_v12 }
  0x23   :  { %1906 = vmatprep.mubr.bf16.mxu0 %v1992_v11  ;;  %1938 = vmatprep.mubr.bf16.mxu1 %v2008_v13 }
  0x2a   :  { %1907 = vmatmul.mubr.bf16.gmra.mrb[4].mxu0 %v1993_v14  ;;  %1939 = vmatmul.mubr.bf16.gmra.mrb[4].mxu1 %v2009_v16 }
  0x2b   :  { %1910 = vmatprep.mubr.bf16.mxu0 %v1994_v15  ;;  %1942 = vmatprep.mubr.bf16.mxu1 %v2010_v17 }
  0x32   :  { %1911 = vmatmul.mubr.bf16.gmra.mrb[8].mxu0 %v1995_v18  ;;  %1943 = vmatmul.mubr.bf16.gmra.mrb[8].mxu1 %v2011_v19 }
  0x33   :  { %1914 = vmatprep.mubr.bf16.mxu0 %v1996_v20  ;;  %1946 = vmatprep.mubr.bf16.mxu1 %v2012_v21 }
  0x3a   :  { %1915 = vmatmul.mubr.bf16.gmra.mrb[12].mxu0 %v1997_v22  ;;  %1947 = vmatmul.mubr.bf16.gmra.mrb[12].mxu1 %v2013_v23 }
  0x3b   :  { %1918 = vmatprep.mubr.bf16.mxu0 %v1998_v24  ;;  %1950 = vmatprep.mubr.bf16.mxu1 %v2014_v25 }
  0x42   :  { %1919 = vmatmul.mubr.bf16.gmra.mrb[16].mxu0 %v1999_v26  ;;  %1951 = vmatmul.mubr.bf16.gmra.mrb[16].mxu1 %v2015_v27 }
  0x43   :  { %1922 = vmatprep.mubr.bf16.mxu0 %v2000_v28  ;;  %1954 = vmatprep.mubr.bf16.mxu1 %v2016_v29 }
  0x4a   :  { %1923 = vmatmul.mubr.bf16.gmra.mrb[20].mxu0 %v2001_v30  ;;  %1955 = vmatmul.mubr.bf16.gmra.mrb[20].mxu1 %v2017_v31 }
  0x4b   :  { %1926 = vmatprep.mubr.bf16.mxu0 %v2002_v32  ;;  %1958 = vmatprep.mubr.bf16.mxu1 %v2018_v33 }
  0x52   :  { %1927 = vmatmul.mubr.bf16.gmra.mrb[24].mxu0 %v2003_v34  ;;  %1959 = vmatmul.mubr.bf16.gmra.mrb[24].mxu1 %v2019_v35 }
  0x53   :  { %1930 = vmatprep.mubr.bf16.mxu0 %v2004_v36  ;;  %1962 = vmatprep.mubr.bf16.mxu1 %v2020_v37 }
  0x5a   :  { %1931 = vmatmul.mubr.bf16.gmra.mrb[28].mxu0 %v2005_v38  ;;  %1963 = vmatmul.mubr.bf16.gmra.mrb[28].mxu1 %v2021_v39 }
  0xf5   :  { %v1904_v40 = vpop.f32.mrb[0].mxu0  ;;  %v2167_v41 = vpop.f32.mrb[0].mxu1 }
  0xf6   :  { %v501_v42 = vpop.f32.mrb[1].mxu0  ;;  %v2169_v43 = vpop.f32.mrb[1].mxu1  ;;  %v1342_v55 = vmul.f32 %v1904_v40, %v1904_v40 }
  0xf7   :  { %v1905_v44 = vpop.f32.mrb[2].mxu0  ;;  %v2171_v45 = vpop.f32.mrb[2].mxu1  ;;  %v1340_v46 = vmul.f32 %v501_v42, %v501_v42 }
  0xf8   :  { %v1663_v47 = vpack.c.bf16 %v1905_v44, %v1904_v40  ;;  %v504_v48 = vpop.f32.mrb[3].mxu0  ;;  %v1743_v49 = vpack.c.bf16 %v2171_v45, %v2167_v41  ;;  %v2175_v50 = vpop.f32.mrb[3].mxu1  ;;  %v1343_v58 = vmul.f32 %v1905_v44, %v1905_v44 }
  0xf9   :  { %v1658_v51 = vpack.c.bf16 %v504_v48, %v501_v42  ;;  %v1271_v52 = vadd.f32 %v504_v48, %v501_v42  ;;  %v1341_v53 = vmul.f32 %v504_v48, %v504_v48  ;;  %v1738_v54 = vpack.c.bf16 %v2175_v50, %v2169_v43 }
  0xfa   :  { %1815 = vst [vmem:[%s2463_s2 + $0x8] sm:$0xff] %v1663_v47   ;;  %1831 = vst [vmem:[%s2463_s2 + $0x88] sm:$0xff] %v1743_v49  }
  0xfb   :  { %1659 = vst [vmem:[%s2463_s2] sm:$0xff] %v1658_v51   ;;  %v1272_v56 = vadd.f32 %v1904_v40, %v1271_v52  ;;  %v1404_v57 = vadd.f32 %v1341_v53, %v1340_v46  ;;  %1830 = vst [vmem:[%s2463_s2 + $0x80] sm:$0xff] %v1738_v54  }
  0xfd   :  { %v1405_v59 = vadd.f32 %v1404_v57, %v1342_v55  ;;  %v1908_v60 = vpop.f32.mrb[4].mxu0  ;;  %v1273_v61 = vadd.f32 %v1905_v44, %v1272_v56  ;;  %v2191_v62 = vpop.f32.mrb[4].mxu1 }
  0xfe   :  { %v517_v63 = vpop.f32.mrb[5].mxu0  ;;  %v2193_v0 = vpop.f32.mrb[5].mxu1  ;;  %v1346_v15 = vmul.f32 %v1908_v60, %v1908_v60 }
  0xff   :  { %v1274_v1 = vadd.f32 %v1273_v61, %v517_v63  ;;  %v1344_v2 = vmul.f32 %v517_v63, %v517_v63  ;;  %v1406_v3 = vadd.f32 %v1405_v59, %v1343_v58  ;;  %v1909_v4 = vpop.f32.mrb[6].mxu0  ;;  %v2195_v5 = vpop.f32.mrb[6].mxu1 }
 0x100   :  { %v1673_v6 = vpack.c.bf16 %v1909_v4, %v1908_v60  ;;  %v520_v7 = vpop.f32.mrb[7].mxu0  ;;  %v1753_v8 = vpack.c.bf16 %v2195_v5, %v2191_v62  ;;  %v2199_v9 = vpop.f32.mrb[7].mxu1  ;;  %v1347_v18 = vmul.f32 %v1909_v4, %v1909_v4 }
 0x101   :  { %v1407_v10 = vadd.f32 %v1406_v3, %v1344_v2  ;;  %v1668_v11 = vpack.c.bf16 %v520_v7, %v517_v63  ;;  %v1275_v12 = vadd.f32 %v1274_v1, %v520_v7  ;;  %v1345_v13 = vmul.f32 %v520_v7, %v520_v7 }
 0x102   :  { %1817 = vst [vmem:[%s2463_s2 + $0x18] sm:$0xff] %v1673_v6   ;;  %1833 = vst [vmem:[%s2463_s2 + $0x98] sm:$0xff] %v1753_v8   ;;  %v1748_v14 = vpack.c.bf16 %v2199_v9, %v2193_v0 }
 0x103   :  { %1816 = vst [vmem:[%s2463_s2 + $0x10] sm:$0xff] %v1668_v11   ;;  %v1276_v16 = vadd.f32 %v1908_v60, %v1275_v12  ;;  %v1408_v17 = vadd.f32 %v1407_v10, %v1345_v13 }
 0x104   :  { %1832 = vst [vmem:[%s2463_s2 + $0x90] sm:$0xff] %v1748_v14  }
 0x105   :  { %v1409_v19 = vadd.f32 %v1408_v17, %v1346_v15  ;;  %v1912_v20 = vpop.f32.mrb[8].mxu0  ;;  %v1277_v21 = vadd.f32 %v1909_v4, %v1276_v16  ;;  %v2215_v22 = vpop.f32.mrb[8].mxu1 }
 0x106   :  { %v533_v23 = vpop.f32.mrb[9].mxu0  ;;  %v2217_v24 = vpop.f32.mrb[9].mxu1  ;;  %v1350_v39 = vmul.f32 %v1912_v20, %v1912_v20 }
 0x107   :  { %v1278_v25 = vadd.f32 %v1277_v21, %v533_v23  ;;  %v1348_v26 = vmul.f32 %v533_v23, %v533_v23  ;;  %v1410_v27 = vadd.f32 %v1409_v19, %v1347_v18  ;;  %v1913_v28 = vpop.f32.mrb[10].mxu0  ;;  %v2219_v29 = vpop.f32.mrb[10].mxu1 }
 0x108   :  { %v1683_v30 = vpack.c.bf16 %v1913_v28, %v1912_v20  ;;  %v536_v31 = vpop.f32.mrb[11].mxu0  ;;  %v1763_v32 = vpack.c.bf16 %v2219_v29, %v2215_v22  ;;  %v2223_v33 = vpop.f32.mrb[11].mxu1  ;;  %v1351_v44 = vmul.f32 %v1913_v28, %v1913_v28 }
 0x109   :  { %v1411_v34 = vadd.f32 %v1410_v27, %v1348_v26  ;;  %v1678_v35 = vpack.c.bf16 %v536_v31, %v533_v23  ;;  %v1279_v36 = vadd.f32 %v1278_v25, %v536_v31  ;;  %v1349_v37 = vmul.f32 %v536_v31, %v536_v31 }
 0x10a   :  { %1819 = vst [vmem:[%s2463_s2 + $0x28] sm:$0xff] %v1683_v30   ;;  %1835 = vst [vmem:[%s2463_s2 + $0xa8] sm:$0xff] %v1763_v32   ;;  %v1758_v38 = vpack.c.bf16 %v2223_v33, %v2217_v24 }
 0x10b   :  { %1818 = vst [vmem:[%s2463_s2 + $0x20] sm:$0xff] %v1678_v35   ;;  %v1280_v40 = vadd.f32 %v1912_v20, %v1279_v36  ;;  %v1412_v42 = vadd.f32 %v1411_v34, %v1349_v37 }
 0x10c   :  { %1834 = vst [vmem:[%s2463_s2 + $0xa0] sm:$0xff] %v1758_v38  }
 0x10d   :  { %v1413_v46 = vadd.f32 %v1412_v42, %v1350_v39  ;;  %v1916_v47 = vpop.f32.mrb[12].mxu0  ;;  %v1281_v48 = vadd.f32 %v1913_v28, %v1280_v40  ;;  %v2239_v49 = vpop.f32.mrb[12].mxu1 }
 0x10e   :  { %v549_v51 = vpop.f32.mrb[13].mxu0  ;;  %v2241_v52 = vpop.f32.mrb[13].mxu1  ;;  %v1354_v6 = vmul.f32 %v1916_v47, %v1916_v47 }
 0x10f   :  { %v1282_v53 = vadd.f32 %v1281_v48, %v549_v51  ;;  %v1352_v54 = vmul.f32 %v549_v51, %v549_v51  ;;  %v1414_v55 = vadd.f32 %v1413_v46, %v1351_v44  ;;  %v1917_v56 = vpop.f32.mrb[14].mxu0  ;;  %v2243_v57 = vpop.f32.mrb[14].mxu1 }
 0x110   :  { %v1693_v58 = vpack.c.bf16 %v1917_v56, %v1916_v47  ;;  %v552_v59 = vpop.f32.mrb[15].mxu0  ;;  %v1773_v60 = vpack.c.bf16 %v2243_v57, %v2239_v49  ;;  %v2247_v61 = vpop.f32.mrb[15].mxu1  ;;  %v1355_v10 = vmul.f32 %v1917_v56, %v1917_v56 }
 0x111   :  { %v1415_v63 = vadd.f32 %v1414_v55, %v1352_v54  ;;  %v1688_v1 = vpack.c.bf16 %v552_v59, %v549_v51  ;;  %v1283_v2 = vadd.f32 %v1282_v53, %v552_v59  ;;  %v1353_v3 = vmul.f32 %v552_v59, %v552_v59 }
 0x112   :  { %1821 = vst [vmem:[%s2463_s2 + $0x38] sm:$0xff] %v1693_v58   ;;  %1837 = vst [vmem:[%s2463_s2 + $0xb8] sm:$0xff] %v1773_v60   ;;  %v1768_v4 = vpack.c.bf16 %v2247_v61, %v2241_v52 }
 0x113   :  { %1820 = vst [vmem:[%s2463_s2 + $0x30] sm:$0xff] %v1688_v1   ;;  %v1284_v7 = vadd.f32 %v1916_v47, %v1283_v2  ;;  %v1416_v8 = vadd.f32 %v1415_v63, %v1353_v3 }
 0x114   :  { %1836 = vst [vmem:[%s2463_s2 + $0xb0] sm:$0xff] %v1768_v4  }
 0x115   :  { %v1417_v11 = vadd.f32 %v1416_v8, %v1354_v6  ;;  %v1920_v12 = vpop.f32.mrb[16].mxu0  ;;  %v1285_v13 = vadd.f32 %v1917_v56, %v1284_v7  ;;  %v2263_v14 = vpop.f32.mrb[16].mxu1 }
 0x116   :  { %v565_v15 = vpop.f32.mrb[17].mxu0  ;;  %v2265_v16 = vpop.f32.mrb[17].mxu1  ;;  %v1358_v35 = vmul.f32 %v1920_v12, %v1920_v12 }
 0x117   :  { %v1286_v17 = vadd.f32 %v1285_v13, %v565_v15  ;;  %v1356_v18 = vmul.f32 %v565_v15, %v565_v15  ;;  %v1418_v19 = vadd.f32 %v1417_v11, %v1355_v10  ;;  %v1921_v20 = vpop.f32.mrb[18].mxu0  ;;  %v2267_v21 = vpop.f32.mrb[18].mxu1 }
 0x118   :  { %v1703_v23 = vpack.c.bf16 %v1921_v20, %v1920_v12  ;;  %v568_v25 = vpop.f32.mrb[19].mxu0  ;;  %v1783_v26 = vpack.c.bf16 %v2267_v21, %v2263_v14  ;;  %v2271_v27 = vpop.f32.mrb[19].mxu1  ;;  %v1359_v38 = vmul.f32 %v1921_v20, %v1921_v20 }
 0x119   :  { %v1419_v28 = vadd.f32 %v1418_v19, %v1356_v18  ;;  %v1698_v30 = vpack.c.bf16 %v568_v25, %v565_v15  ;;  %v1287_v31 = vadd.f32 %v1286_v17, %v568_v25  ;;  %v1357_v32 = vmul.f32 %v568_v25, %v568_v25 }
 0x11a   :  { %1823 = vst [vmem:[%s2463_s2 + $0x48] sm:$0xff] %v1703_v23   ;;  %1839 = vst [vmem:[%s2463_s2 + $0xc8] sm:$0xff] %v1783_v26   ;;  %v1778_v34 = vpack.c.bf16 %v2271_v27, %v2265_v16 }
 0x11b   :  { %1822 = vst [vmem:[%s2463_s2 + $0x40] sm:$0xff] %v1698_v30   ;;  %v1288_v36 = vadd.f32 %v1920_v12, %v1287_v31  ;;  %v1420_v37 = vadd.f32 %v1419_v28, %v1357_v32 }
 0x11c   :  { %1838 = vst [vmem:[%s2463_s2 + $0xc0] sm:$0xff] %v1778_v34  }
 0x11d   :  { %v1421_v39 = vadd.f32 %v1420_v37, %v1358_v35  ;;  %v1924_v40 = vpop.f32.mrb[20].mxu0  ;;  %v1289_v42 = vadd.f32 %v1921_v20, %v1288_v36  ;;  %v2287_v44 = vpop.f32.mrb[20].mxu1 }
 0x11e   :  { %v581_v46 = vpop.f32.mrb[21].mxu0  ;;  %v2289_v47 = vpop.f32.mrb[21].mxu1  ;;  %v1362_v6 = vmul.f32 %v1924_v40, %v1924_v40 }
 0x11f   :  { %v1290_v48 = vadd.f32 %v1289_v42, %v581_v46  ;;  %v1360_v51 = vmul.f32 %v581_v46, %v581_v46  ;;  %v1422_v53 = vadd.f32 %v1421_v39, %v1359_v38  ;;  %v1925_v54 = vpop.f32.mrb[22].mxu0  ;;  %v2291_v55 = vpop.f32.mrb[22].mxu1 }
 0x120   :  { %v1713_v56 = vpack.c.bf16 %v1925_v54, %v1924_v40  ;;  %v584_v58 = vpop.f32.mrb[23].mxu0  ;;  %v1793_v59 = vpack.c.bf16 %v2291_v55, %v2287_v44  ;;  %v2295_v60 = vpop.f32.mrb[23].mxu1  ;;  %v1363_v10 = vmul.f32 %v1925_v54, %v1925_v54 }
 0x121   :  { %v1423_v63 = vadd.f32 %v1422_v53, %v1360_v51  ;;  %v1708_v1 = vpack.c.bf16 %v584_v58, %v581_v46  ;;  %v1291_v2 = vadd.f32 %v1290_v48, %v584_v58  ;;  %v1361_v3 = vmul.f32 %v584_v58, %v584_v58 }
 0x122   :  { %1825 = vst [vmem:[%s2463_s2 + $0x58] sm:$0xff] %v1713_v56   ;;  %1841 = vst [vmem:[%s2463_s2 + $0xd8] sm:$0xff] %v1793_v59   ;;  %v1788_v4 = vpack.c.bf16 %v2295_v60, %v2289_v47 }
 0x123   :  { %1824 = vst [vmem:[%s2463_s2 + $0x50] sm:$0xff] %v1708_v1   ;;  %v1292_v7 = vadd.f32 %v1924_v40, %v1291_v2  ;;  %v1424_v8 = vadd.f32 %v1423_v63, %v1361_v3 }
 0x124   :  { %1840 = vst [vmem:[%s2463_s2 + $0xd0] sm:$0xff] %v1788_v4  }
 0x125   :  { %v1425_v11 = vadd.f32 %v1424_v8, %v1362_v6  ;;  %v1928_v12 = vpop.f32.mrb[24].mxu0  ;;  %v1293_v13 = vadd.f32 %v1925_v54, %v1292_v7  ;;  %v2311_v15 = vpop.f32.mrb[24].mxu1 }
 0x126   :  { %v597_v17 = vpop.f32.mrb[25].mxu0  ;;  %v2313_v18 = vpop.f32.mrb[25].mxu1  ;;  %v1366_v39 = vmul.f32 %v1928_v12, %v1928_v12 }
 0x127   :  { %v1294_v19 = vadd.f32 %v1293_v13, %v597_v17  ;;  %v1364_v20 = vmul.f32 %v597_v17, %v597_v17  ;;  %v1426_v23 = vadd.f32 %v1425_v11, %v1363_v10  ;;  %v1929_v25 = vpop.f32.mrb[26].mxu0  ;;  %v2315_v26 = vpop.f32.mrb[26].mxu1 }
 0x128   :  { %v1723_v28 = vpack.c.bf16 %v1929_v25, %v1928_v12  ;;  %v600_v30 = vpop.f32.mrb[27].mxu0  ;;  %v1803_v31 = vpack.c.bf16 %v2315_v26, %v2311_v15  ;;  %v2319_v32 = vpop.f32.mrb[27].mxu1  ;;  %v1367_v46 = vmul.f32 %v1929_v25, %v1929_v25 }
 0x129   :  { %v1427_v34 = vadd.f32 %v1426_v23, %v1364_v20  ;;  %v1718_v35 = vpack.c.bf16 %v600_v30, %v597_v17  ;;  %v1295_v36 = vadd.f32 %v1294_v19, %v600_v30  ;;  %v1365_v37 = vmul.f32 %v600_v30, %v600_v30 }
 0x12a   :  { %1827 = vst [vmem:[%s2463_s2 + $0x68] sm:$0xff] %v1723_v28   ;;  %1843 = vst [vmem:[%s2463_s2 + $0xe8] sm:$0xff] %v1803_v31   ;;  %v1798_v38 = vpack.c.bf16 %v2319_v32, %v2313_v18  ;;  %v1372_v31 = vmul.f32 %v2169_v43, %v2169_v43 }
 0x12b   :  { %1826 = vst [vmem:[%s2463_s2 + $0x60] sm:$0xff] %v1718_v35   ;;  %v1296_v40 = vadd.f32 %v1928_v12, %v1295_v36  ;;  %v1428_v42 = vadd.f32 %v1427_v34, %v1365_v37 }
 0x12c   :  { %1842 = vst [vmem:[%s2463_s2 + $0xe0] sm:$0xff] %v1798_v38   ;;  %v1373_v38 = vmul.f32 %v2175_v50, %v2175_v50 }
 0x12d   :  { %v1429_v48 = vadd.f32 %v1428_v42, %v1366_v39  ;;  %v1932_v51 = vpop.f32.mrb[28].mxu0  ;;  %v1297_v53 = vadd.f32 %v1929_v25, %v1296_v40  ;;  %v2335_v54 = vpop.f32.mrb[28].mxu1  ;;  %v1374_v39 = vmul.f32 %v2167_v41, %v2167_v41 }
 0x12e   :  { %v613_v56 = vpop.f32.mrb[29].mxu0  ;;  %v2337_v58 = vpop.f32.mrb[29].mxu1  ;;  %v1370_v19 = vmul.f32 %v1932_v51, %v1932_v51 }
 0x12f   :  { %v1298_v59 = vadd.f32 %v1297_v53, %v613_v56  ;;  %v1368_v63 = vmul.f32 %v613_v56, %v613_v56  ;;  %v1430_v1 = vadd.f32 %v1429_v48, %v1367_v46  ;;  %v1933_v2 = vpop.f32.mrb[30].mxu0  ;;  %v2339_v3 = vpop.f32.mrb[30].mxu1  ;;  %v1375_v46 = vmul.f32 %v2171_v45, %v2171_v45 }
 0x130   :  { %v1733_v4 = vpack.c.bf16 %v1933_v2, %v1932_v51  ;;  %v616_v6 = vpop.f32.mrb[31].mxu0  ;;  %v1813_v7 = vpack.c.bf16 %v2339_v3, %v2335_v54  ;;  %v2343_v8 = vpop.f32.mrb[31].mxu1  ;;  %v1371_v25 = vmul.f32 %v1933_v2, %v1933_v2 }
 0x131   :  { %v1431_v10 = vadd.f32 %v1430_v1, %v1368_v63  ;;  %v1728_v11 = vpack.c.bf16 %v616_v6, %v613_v56  ;;  %v1299_v12 = vadd.f32 %v1298_v59, %v616_v6  ;;  %v1369_v13 = vmul.f32 %v616_v6, %v616_v6 }
 0x132   :  { %1829 = vst [vmem:[%s2463_s2 + $0x78] sm:$0xff] %v1733_v4   ;;  %1845 = vst [vmem:[%s2463_s2 + $0xf8] sm:$0xff] %v1813_v7   ;;  %v1808_v17 = vpack.c.bf16 %v2343_v8, %v2337_v58  ;;  %v1377_v63 = vmul.f32 %v2199_v9, %v2199_v9 }
 0x133   :  { %1828 = vst [vmem:[%s2463_s2 + $0x70] sm:$0xff] %v1728_v11   ;;  %v1300_v20 = vadd.f32 %v1932_v51, %v1299_v12  ;;  %v1432_v23 = vadd.f32 %v1431_v10, %v1369_v13  ;;  %v1381_v12 = vmul.f32 %v2223_v33, %v2223_v33 }
 0x134   :  { %1844 = vst [vmem:[%s2463_s2 + $0xf0] sm:$0xff] %v1808_v17  }
 0x135   :  { %v1433_v28 = vadd.f32 %v1432_v23, %v1370_v19  ;;  %v1301_v30 = vadd.f32 %v1933_v2, %v1300_v20 }
 0x137   :  { %v1302_v34 = vadd.f32 %v1301_v30, %v2169_v43  ;;  %v1434_v35 = vadd.f32 %v1433_v28, %v1371_v25  ;;  %v1376_v43 = vmul.f32 %v2193_v0, %v2193_v0  ;;  %v1385_v30 = vmul.f32 %v2247_v61, %v2247_v61 }
 0x139   :  { %v1435_v36 = vadd.f32 %v1434_v35, %v1372_v31  ;;  %v1303_v37 = vadd.f32 %v1302_v34, %v2175_v50 }
 0x13b   :  { %v1304_v40 = vadd.f32 %v2167_v41, %v1303_v37  ;;  %v1436_v42 = vadd.f32 %v1435_v36, %v1373_v38  ;;  %v1378_v41 = vmul.f32 %v2191_v62, %v2191_v62 }
 0x13d   :  { %v1437_v48 = vadd.f32 %v1436_v42, %v1374_v39  ;;  %v1305_v51 = vadd.f32 %v2171_v45, %v1304_v40  ;;  %v1379_v45 = vmul.f32 %v2195_v5, %v2195_v5  ;;  %v1389_v40 = vmul.f32 %v2271_v27, %v2271_v27 }
 0x13f   :  { %v1306_v53 = vadd.f32 %v1305_v51, %v2193_v0  ;;  %v1438_v56 = vadd.f32 %v1437_v48, %v1375_v46  ;;  %v1380_v0 = vmul.f32 %v2217_v24, %v2217_v24 }
 0x141   :  { %v1439_v59 = vadd.f32 %v1438_v56, %v1376_v43  ;;  %v1307_v50 = vadd.f32 %v1306_v53, %v2199_v9 }
 0x143   :  { %v1308_v1 = vadd.f32 %v2191_v62, %v1307_v50  ;;  %v1440_v2 = vadd.f32 %v1439_v59, %v1377_v63  ;;  %v1382_v62 = vmul.f32 %v2215_v22, %v2215_v22  ;;  %v1393_v59 = vmul.f32 %v2295_v60, %v2295_v60 }
 0x145   :  { %v1441_v4 = vadd.f32 %v1440_v2, %v1378_v41  ;;  %v1309_v6 = vadd.f32 %v2195_v5, %v1308_v1  ;;  %v1383_v5 = vmul.f32 %v2219_v29, %v2219_v29 }
 0x147   :  { %v1310_v7 = vadd.f32 %v1309_v6, %v2217_v24  ;;  %v1442_v10 = vadd.f32 %v1441_v4, %v1379_v45  ;;  %v1384_v24 = vmul.f32 %v2241_v52, %v2241_v52  ;;  %v1397_v6 = vmul.f32 %v2319_v32, %v2319_v32 }
 0x149   :  { %v1443_v11 = vadd.f32 %v1442_v10, %v1380_v0  ;;  %v1311_v9 = vadd.f32 %v1310_v7, %v2223_v33 }
 0x14b   :  { %v1312_v13 = vadd.f32 %v2215_v22, %v1311_v9  ;;  %v1444_v17 = vadd.f32 %v1443_v11, %v1381_v12  ;;  %v1386_v22 = vmul.f32 %v2239_v49, %v2239_v49 }
 0x14d   :  { %v1445_v19 = vadd.f32 %v1444_v17, %v1382_v62  ;;  %v1313_v20 = vadd.f32 %v2219_v29, %v1312_v13  ;;  %v1387_v29 = vmul.f32 %v2243_v57, %v2243_v57  ;;  %v1401_v13 = vmul.f32 %v2343_v8, %v2343_v8 }
 0x14f   :  { %v1314_v23 = vadd.f32 %v1313_v20, %v2241_v52  ;;  %v1446_v25 = vadd.f32 %v1445_v19, %v1383_v5  ;;  %v1388_v52 = vmul.f32 %v2265_v16, %v2265_v16 }
 0x151   :  { %v1447_v28 = vadd.f32 %v1446_v25, %v1384_v24  ;;  %v1315_v33 = vadd.f32 %v1314_v23, %v2247_v61 }
 0x153   :  { %v1316_v31 = vadd.f32 %v2239_v49, %v1315_v33  ;;  %v1448_v34 = vadd.f32 %v1447_v28, %v1385_v30  ;;  %v1390_v49 = vmul.f32 %v2263_v14, %v2263_v14 }
 0x155   :  { %v1449_v35 = vadd.f32 %v1448_v34, %v1386_v22  ;;  %v1317_v36 = vadd.f32 %v2243_v57, %v1316_v31  ;;  %v1391_v57 = vmul.f32 %v2267_v21, %v2267_v21 }
 0x157   :  { %v1318_v37 = vadd.f32 %v1317_v36, %v2265_v16  ;;  %v1450_v38 = vadd.f32 %v1449_v35, %v1387_v29  ;;  %v1392_v16 = vmul.f32 %v2289_v47, %v2289_v47 }
 0x159   :  { %v1451_v39 = vadd.f32 %v1450_v38, %v1388_v52  ;;  %v1319_v61 = vadd.f32 %v1318_v37, %v2271_v27 }
 0x15b   :  { %v1320_v42 = vadd.f32 %v2263_v14, %v1319_v61  ;;  %v1452_v46 = vadd.f32 %v1451_v39, %v1389_v40  ;;  %v1394_v14 = vmul.f32 %v2287_v44, %v2287_v44 }
 0x15d   :  { %v1453_v48 = vadd.f32 %v1452_v46, %v1390_v49  ;;  %v1321_v51 = vadd.f32 %v2267_v21, %v1320_v42  ;;  %v1395_v21 = vmul.f32 %v2291_v55, %v2291_v55 }
 0x15f   :  { %v1322_v43 = vadd.f32 %v1321_v51, %v2289_v47  ;;  %v1454_v53 = vadd.f32 %v1453_v48, %v1391_v57  ;;  %v1396_v47 = vmul.f32 %v2313_v18, %v2313_v18 }
 0x161   :  { %v1455_v56 = vadd.f32 %v1454_v53, %v1392_v16  ;;  %v1323_v27 = vadd.f32 %v1322_v43, %v2295_v60 }
 0x163   :  { %v1324_v50 = vadd.f32 %v2287_v44, %v1323_v27  ;;  %v1456_v63 = vadd.f32 %v1455_v56, %v1393_v59  ;;  %v1398_v44 = vmul.f32 %v2311_v15, %v2311_v15 }
 0x165   :  { %v1457_v41 = vadd.f32 %v1456_v63, %v1394_v14  ;;  %v1325_v1 = vadd.f32 %v2291_v55, %v1324_v50  ;;  %v1399_v55 = vmul.f32 %v2315_v26, %v2315_v26 }
 0x167   :  { %v1326_v2 = vadd.f32 %v1325_v1, %v2313_v18  ;;  %v1458_v45 = vadd.f32 %v1457_v41, %v1395_v21  ;;  %v1400_v18 = vmul.f32 %v2337_v58, %v2337_v58 }
 0x169   :  { %v1459_v4 = vadd.f32 %v1458_v45, %v1396_v47  ;;  %v1327_v60 = vadd.f32 %v1326_v2, %v2319_v32 }
 0x16b   :  { %v1328_v0 = vadd.f32 %v2311_v15, %v1327_v60  ;;  %v1460_v7 = vadd.f32 %v1459_v4, %v1397_v6  ;;  %v1402_v15 = vmul.f32 %v2335_v54, %v2335_v54 }
 0x16d   :  { %v1461_v10 = vadd.f32 %v1460_v7, %v1398_v44  ;;  %v1329_v11 = vadd.f32 %v2315_v26, %v1328_v0  ;;  %v1403_v26 = vmul.f32 %v2339_v3, %v2339_v3 }
 0x16f   :  { %v1330_v9 = vadd.f32 %v1329_v11, %v2337_v58  ;;  %v1462_v12 = vadd.f32 %v1461_v10, %v1399_v55 }
 0x171   :  { %v1463_v62 = vadd.f32 %v1462_v12, %v1400_v18  ;;  %v1331_v32 = vadd.f32 %v1330_v9, %v2343_v8 }
 0x173   :  { %v1332_v17 = vadd.f32 %v2335_v54, %v1331_v32  ;;  %v1464_v5 = vadd.f32 %v1463_v62, %v1401_v13 }
 0x175   :  { %v1333_v19 = vadd.f32 %v2339_v3, %v1332_v17  ;;  %v1465_v20 = vadd.f32 %v1464_v5, %v1402_v15 }
 0x177   :  { %v1334_v58 = vrot.slane %v1333_v19, 4  ;;  %v1466_v24 = vadd.f32 %v1465_v20, %v1403_v26 }
 0x179   :  { %v1335_v23 = vadd.f32 %v1334_v58, %v1333_v19  ;;  %v1467_v25 = vrot.slane %v1466_v24, 4 }
 0x17b   :  { %v1336_v28 = vrot.slane %v1335_v23, 2  ;;  %v1468_v33 = vadd.f32 %v1467_v25, %v1466_v24 }
 0x17d   :  { %v1337_v30 = vadd.f32 %v1336_v28, %v1335_v23  ;;  %v1469_v8 = vrot.slane %v1468_v33, 2 }
 0x17f   :  { %v1338_v22 = vrot.slane %v1337_v30, 1  ;;  %v1470_v31 = vadd.f32 %v1469_v8, %v1468_v33 }
 0x181   :  { %v1339_v34 = vadd.f32 %v1338_v22, %v1337_v30  ;;  %v1471_v29 = vrot.slane %v1470_v31, 1 }
 0x183   :  { %v1472_v54 = vadd.f32 %v1471_v29, %v1470_v31  ;;  %1473 = vst [vmem:[%s2464_s3] sm:$0xff] %v1339_v34 }
 0x185   :  { %1474 = vst [vmem:[%s2465_s4] sm:$0xff] %v1472_v54 }

// kernel: dc_discriminator.8
= control target key start
LH: loop header
LB: loop body
LE: loop exit
PB: predicated region body
PF: predicated region fallthrough
CT: control target
= control target key end

     0   :  { %vm1448_vm0 = vcmask 392192   ;;  %s8744_s1 = inlined_call_operand.vmem [shape: bf16[48,128], index: 1, kind: input, shape index: {}]   ;;  %s8745_s0 = inlined_call_operand.vmem [shape: bf16[2048,48], index: 0, kind: input, shape index: {}]   ;;  %s8746_s2 = inlined_call_operand.vmem [shape: bf16[2048,128], index: 2, kind: output, shape index: {}]  }
   0x1   :  { %v7650_v0 = vld [vmem:[%s8744_s1] sm:$0xff]   ;;  %v7651_v1 = vld [vmem:[%s8744_s1 + $0x8] sm:$0xff]   ;;  %v7652_v2 = vld [vmem:[%s8744_s1 + $0x10] sm:$0xff]  }
   0x2   :  { %7382 = vmatprep.subr.bf16.mxu0 %v7650_v0  ;;  %7644 = vmatprep.subr.bf16.mxu1 %v7650_v0  ;;  %v7653_v3 = vld [vmem:[%s8745_s0] sm:$0xff]   ;;  %v7655_v5 = vld [vmem:[%s8745_s0 + $0x8] sm:$0xff]   ;;  %v7657_v7 = vld [vmem:[%s8745_s0 + $0x10] sm:$0xff]  }
   0x3   :  { %7383 = vmatpush3.bf16.msra.mxu0 %v7650_v0  ;;  %7647 = vmatpush3.bf16.msra.mxu1 %v7650_v0  ;;  %v7654_v4 = vld [vmem:[%s8745_s0 + $0x200] sm:$0xff]   ;;  %v7656_v6 = vld [vmem:[%s8745_s0 + $0x208] sm:$0xff]   ;;  %v7658_v8 = vld [vmem:[%s8745_s0 + $0x210] sm:$0xff]  }
   0x4   :  { %7384 = vmatprep.subr.bf16.mxu0 %v7651_v1  ;;  %7645 = vmatprep.subr.bf16.mxu1 %v7651_v1  ;;  %v7659_v9 = vld [vmem:[%s8745_s0 + $0x18] sm:$0xff]   ;;  %v7661_v11 = vld [vmem:[%s8745_s0 + $0x20] sm:$0xff]   ;;  %v7663_v13 = vld [vmem:[%s8745_s0 + $0x28] sm:$0xff]  }
   0x5   :  { %7388 = vmatprep.mubr.msk.bf16.mxu0 %vm1448_vm0, %v7653_v3  ;;  %7516 = vmatprep.mubr.msk.bf16.mxu1 %vm1448_vm0, %v7654_v4  ;;  %v7660_v10 = vld [vmem:[%s8745_s0 + $0x218] sm:$0xff]   ;;  %v7662_v12 = vld [vmem:[%s8745_s0 + $0x220] sm:$0xff]   ;;  %v7664_v14 = vld [vmem:[%s8745_s0 + $0x228] sm:$0xff]  }
   0x6   :  { %v7665_v15 = vld [vmem:[%s8745_s0 + $0x30] sm:$0xff]   ;;  %v7667_v17 = vld [vmem:[%s8745_s0 + $0x38] sm:$0xff]   ;;  %v7669_v19 = vld [vmem:[%s8745_s0 + $0x40] sm:$0xff]  }
   0x7   :  { %7385 = vmatpush3.bf16.msra.mxu0 %v7651_v1  ;;  %7648 = vmatpush3.bf16.msra.mxu1 %v7651_v1  ;;  %v7666_v16 = vld [vmem:[%s8745_s0 + $0x230] sm:$0xff]   ;;  %v7668_v18 = vld [vmem:[%s8745_s0 + $0x238] sm:$0xff]   ;;  %v7670_v20 = vld [vmem:[%s8745_s0 + $0x240] sm:$0xff]  }
   0x8   :  { %7386 = vmatprep.subr.bf16.mxu0 %v7652_v2  ;;  %7646 = vmatprep.subr.bf16.mxu1 %v7652_v2  ;;  %v7671_v21 = vld [vmem:[%s8745_s0 + $0x48] sm:$0xff]   ;;  %v7673_v23 = vld [vmem:[%s8745_s0 + $0x50] sm:$0xff]   ;;  %v7675_v25 = vld [vmem:[%s8745_s0 + $0x58] sm:$0xff]  }
   0x9   :  { %v7672_v22 = vld [vmem:[%s8745_s0 + $0x248] sm:$0xff]   ;;  %v7674_v24 = vld [vmem:[%s8745_s0 + $0x250] sm:$0xff]   ;;  %v7676_v26 = vld [vmem:[%s8745_s0 + $0x258] sm:$0xff]  }
   0xa   :  { %v7677_v27 = vld [vmem:[%s8745_s0 + $0x60] sm:$0xff]   ;;  %v7679_v29 = vld [vmem:[%s8745_s0 + $0x68] sm:$0xff]   ;;  %v7681_v31 = vld [vmem:[%s8745_s0 + $0x70] sm:$0xff]  }
   0xb   :  { %7387 = vmatpush3.bf16.msra.mxu0 %v7652_v2  ;;  %7649 = vmatpush3.bf16.msra.mxu1 %v7652_v2  ;;  %v7678_v28 = vld [vmem:[%s8745_s0 + $0x260] sm:$0xff]   ;;  %v7680_v30 = vld [vmem:[%s8745_s0 + $0x268] sm:$0xff]   ;;  %v7682_v32 = vld [vmem:[%s8745_s0 + $0x270] sm:$0xff]  }
   0xc   :  { %v7683_v33 = vld [vmem:[%s8745_s0 + $0x78] sm:$0xff]   ;;  %v7685_v35 = vld [vmem:[%s8745_s0 + $0x80] sm:$0xff]   ;;  %v7687_v37 = vld [vmem:[%s8745_s0 + $0x88] sm:$0xff]  }
   0xd   :  { %v7684_v34 = vld [vmem:[%s8745_s0 + $0x278] sm:$0xff]   ;;  %v7686_v36 = vld [vmem:[%s8745_s0 + $0x280] sm:$0xff]   ;;  %v7688_v38 = vld [vmem:[%s8745_s0 + $0x288] sm:$0xff]  }
   0xe   :  { %7389 = vmatmul.mubr.msk.bf16.vlgmr.msra.gmra.mrb[0].mxu0 %vm1448_vm0, %v7655_v5  ;;  %7517 = vmatmul.mubr.msk.bf16.vlgmr.msra.gmra.mrb[0].mxu1 %vm1448_vm0, %v7656_v6  ;;  %v7689_v39 = vld [vmem:[%s8745_s0 + $0x90] sm:$0xff]   ;;  %v7691_v41 = vld [vmem:[%s8745_s0 + $0x98] sm:$0xff]   ;;  %v7693_v43 = vld [vmem:[%s8745_s0 + $0xa0] sm:$0xff]  }
   0xf   :  { %7392 = vmatprep.mubr.msk.bf16.mxu0 %vm1448_vm0, %v7657_v7  ;;  %7520 = vmatprep.mubr.msk.bf16.mxu1 %vm1448_vm0, %v7658_v8  ;;  %v7690_v40 = vld [vmem:[%s8745_s0 + $0x290] sm:$0xff]   ;;  %v7692_v42 = vld [vmem:[%s8745_s0 + $0x298] sm:$0xff]   ;;  %v7694_v44 = vld [vmem:[%s8745_s0 + $0x2a0] sm:$0xff]  }
  0x10   :  { %v7695_v45 = vld [vmem:[%s8745_s0 + $0xa8] sm:$0xff]   ;;  %v7697_v47 = vld [vmem:[%s8745_s0 + $0xb0] sm:$0xff]   ;;  %v7699_v49 = vld [vmem:[%s8745_s0 + $0xb8] sm:$0xff]  }
  0x11   :  { %v7696_v46 = vld [vmem:[%s8745_s0 + $0x2a8] sm:$0xff]   ;;  %v7698_v48 = vld [vmem:[%s8745_s0 + $0x2b0] sm:$0xff]   ;;  %v7700_v50 = vld [vmem:[%s8745_s0 + $0x2b8] sm:$0xff]  }
  0x12   :  { %v7701_v51 = vld [vmem:[%s8745_s0 + $0xc0] sm:$0xff]   ;;  %v7703_v53 = vld [vmem:[%s8745_s0 + $0xc8] sm:$0xff]   ;;  %v7705_v55 = vld [vmem:[%s8745_s0 + $0xd0] sm:$0xff]  }
  0x13   :  { %v7702_v52 = vld [vmem:[%s8745_s0 + $0x2c0] sm:$0xff]   ;;  %v7704_v54 = vld [vmem:[%s8745_s0 + $0x2c8] sm:$0xff]   ;;  %v7706_v56 = vld [vmem:[%s8745_s0 + $0x2d0] sm:$0xff]  }
  0x14   :  { %v7707_v57 = vld [vmem:[%s8745_s0 + $0xd8] sm:$0xff]   ;;  %v7709_v59 = vld [vmem:[%s8745_s0 + $0xe0] sm:$0xff]   ;;  %v7711_v61 = vld [vmem:[%s8745_s0 + $0xe8] sm:$0xff]  }
  0x15   :  { %v7708_v58 = vld [vmem:[%s8745_s0 + $0x2d8] sm:$0xff]   ;;  %v7710_v60 = vld [vmem:[%s8745_s0 + $0x2e0] sm:$0xff]   ;;  %v7712_v62 = vld [vmem:[%s8745_s0 + $0x2e8] sm:$0xff]  }
  0x16   :  { %7393 = vmatmul.mubr.msk.bf16.gmra.mrb[4].mxu0 %vm1448_vm0, %v7659_v9  ;;  %7521 = vmatmul.mubr.msk.bf16.gmra.mrb[4].mxu1 %vm1448_vm0, %v7660_v10  ;;  %v7713_v63 = vld [vmem:[%s8745_s0 + $0xf0] sm:$0xff]   ;;  %v7715_v1 = vld [vmem:[%s8745_s0 + $0xf8] sm:$0xff]   ;;  %v7717_v3 = vld [vmem:[%s8745_s0 + $0x100] sm:$0xff]  }
  0x17   :  { %7396 = vmatprep.mubr.msk.bf16.mxu0 %vm1448_vm0, %v7661_v11  ;;  %7524 = vmatprep.mubr.msk.bf16.mxu1 %vm1448_vm0, %v7662_v12  ;;  %v7714_v0 = vld [vmem:[%s8745_s0 + $0x2f0] sm:$0xff]   ;;  %v7716_v2 = vld [vmem:[%s8745_s0 + $0x2f8] sm:$0xff]   ;;  %v7718_v4 = vld [vmem:[%s8745_s0 + $0x300] sm:$0xff]  }
  0x18   :  { %v7719_v5 = vld [vmem:[%s8745_s0 + $0x108] sm:$0xff]   ;;  %v7721_v7 = vld [vmem:[%s8745_s0 + $0x110] sm:$0xff]   ;;  %v7723_v9 = vld [vmem:[%s8745_s0 + $0x118] sm:$0xff]  }
  0x19   :  { %v7720_v6 = vld [vmem:[%s8745_s0 + $0x308] sm:$0xff]   ;;  %v7722_v8 = vld [vmem:[%s8745_s0 + $0x310] sm:$0xff]   ;;  %v7724_v10 = vld [vmem:[%s8745_s0 + $0x318] sm:$0xff]  }
  0x1a   :  { %v7725_v11 = vld [vmem:[%s8745_s0 + $0x120] sm:$0xff]  }
  0x1b   :  { %v7726_v12 = vld [vmem:[%s8745_s0 + $0x320] sm:$0xff]  }
  0x1e   :  { %7397 = vmatmul.mubr.msk.bf16.gmra.mrb[8].mxu0 %vm1448_vm0, %v7663_v13  ;;  %7525 = vmatmul.mubr.msk.bf16.gmra.mrb[8].mxu1 %vm1448_vm0, %v7664_v14  ;;  %v7727_v13 = vld [vmem:[%s8745_s0 + $0x128] sm:$0xff]  }
  0x1f   :  { %7400 = vmatprep.mubr.msk.bf16.mxu0 %vm1448_vm0, %v7665_v15  ;;  %7528 = vmatprep.mubr.msk.bf16.mxu1 %vm1448_vm0, %v7666_v16  ;;  %v7728_v14 = vld [vmem:[%s8745_s0 + $0x328] sm:$0xff]   ;;  %v7729_v15 = vld [vmem:[%s8745_s0 + $0x130] sm:$0xff]  }
  0x20   :  { %v7730_v16 = vld [vmem:[%s8745_s0 + $0x330] sm:$0xff]  }
  0x26   :  { %7401 = vmatmul.mubr.msk.bf16.gmra.mrb[12].mxu0 %vm1448_vm0, %v7667_v17  ;;  %7529 = vmatmul.mubr.msk.bf16.gmra.mrb[12].mxu1 %vm1448_vm0, %v7668_v18  ;;  %v7731_v17 = vld [vmem:[%s8745_s0 + $0x138] sm:$0xff]  }
  0x27   :  { %7404 = vmatprep.mubr.msk.bf16.mxu0 %vm1448_vm0, %v7669_v19  ;;  %7532 = vmatprep.mubr.msk.bf16.mxu1 %vm1448_vm0, %v7670_v20  ;;  %v7732_v18 = vld [vmem:[%s8745_s0 + $0x338] sm:$0xff]   ;;  %v7733_v19 = vld [vmem:[%s8745_s0 + $0x140] sm:$0xff]  }
  0x28   :  { %v7734_v20 = vld [vmem:[%s8745_s0 + $0x340] sm:$0xff]  }
  0x2e   :  { %7405 = vmatmul.mubr.msk.bf16.gmra.mrb[16].mxu0 %vm1448_vm0, %v7671_v21  ;;  %7533 = vmatmul.mubr.msk.bf16.gmra.mrb[16].mxu1 %vm1448_vm0, %v7672_v22  ;;  %v7735_v21 = vld [vmem:[%s8745_s0 + $0x148] sm:$0xff]  }
  0x2f   :  { %7408 = vmatprep.mubr.msk.bf16.mxu0 %vm1448_vm0, %v7673_v23  ;;  %7536 = vmatprep.mubr.msk.bf16.mxu1 %vm1448_vm0, %v7674_v24  ;;  %v7736_v22 = vld [vmem:[%s8745_s0 + $0x348] sm:$0xff]   ;;  %v7737_v23 = vld [vmem:[%s8745_s0 + $0x150] sm:$0xff]  }
  0x30   :  { %v7738_v24 = vld [vmem:[%s8745_s0 + $0x350] sm:$0xff]  }
  0x36   :  { %7409 = vmatmul.mubr.msk.bf16.gmra.mrb[20].mxu0 %vm1448_vm0, %v7675_v25  ;;  %7537 = vmatmul.mubr.msk.bf16.gmra.mrb[20].mxu1 %vm1448_vm0, %v7676_v26  ;;  %v7739_v25 = vld [vmem:[%s8745_s0 + $0x158] sm:$0xff]  }
  0x37   :  { %7412 = vmatprep.mubr.msk.bf16.mxu0 %vm1448_vm0, %v7677_v27  ;;  %7540 = vmatprep.mubr.msk.bf16.mxu1 %vm1448_vm0, %v7678_v28  ;;  %v7740_v26 = vld [vmem:[%s8745_s0 + $0x358] sm:$0xff]   ;;  %v7741_v27 = vld [vmem:[%s8745_s0 + $0x160] sm:$0xff]  }
  0x38   :  { %v7742_v28 = vld [vmem:[%s8745_s0 + $0x360] sm:$0xff]  }
  0x3e   :  { %7413 = vmatmul.mubr.msk.bf16.gmra.mrb[24].mxu0 %vm1448_vm0, %v7679_v29  ;;  %7541 = vmatmul.mubr.msk.bf16.gmra.mrb[24].mxu1 %vm1448_vm0, %v7680_v30  ;;  %v7743_v29 = vld [vmem:[%s8745_s0 + $0x168] sm:$0xff]  }
  0x3f   :  { %7416 = vmatprep.mubr.msk.bf16.mxu0 %vm1448_vm0, %v7681_v31  ;;  %7544 = vmatprep.mubr.msk.bf16.mxu1 %vm1448_vm0, %v7682_v32  ;;  %v7744_v30 = vld [vmem:[%s8745_s0 + $0x368] sm:$0xff]   ;;  %v7745_v31 = vld [vmem:[%s8745_s0 + $0x170] sm:$0xff]  }
  0x40   :  { %v7746_v32 = vld [vmem:[%s8745_s0 + $0x370] sm:$0xff]  }
  0x46   :  { %7417 = vmatmul.mubr.msk.bf16.gmra.mrb[28].mxu0 %vm1448_vm0, %v7683_v33  ;;  %7545 = vmatmul.mubr.msk.bf16.gmra.mrb[28].mxu1 %vm1448_vm0, %v7684_v34  ;;  %v7747_v33 = vld [vmem:[%s8745_s0 + $0x178] sm:$0xff]  }
  0x47   :  { %7420 = vmatprep.mubr.msk.bf16.mxu0 %vm1448_vm0, %v7685_v35  ;;  %7548 = vmatprep.mubr.msk.bf16.mxu1 %vm1448_vm0, %v7686_v36  ;;  %v7748_v34 = vld [vmem:[%s8745_s0 + $0x378] sm:$0xff]   ;;  %v7749_v35 = vld [vmem:[%s8745_s0 + $0x180] sm:$0xff]  }
  0x48   :  { %v7750_v36 = vld [vmem:[%s8745_s0 + $0x380] sm:$0xff]  }
  0x4e   :  { %7421 = vmatmul.mubr.msk.bf16.gmra.mrb[32].mxu0 %vm1448_vm0, %v7687_v37  ;;  %7549 = vmatmul.mubr.msk.bf16.gmra.mrb[32].mxu1 %vm1448_vm0, %v7688_v38  ;;  %v7751_v37 = vld [vmem:[%s8745_s0 + $0x188] sm:$0xff]  }
  0x4f   :  { %7424 = vmatprep.mubr.msk.bf16.mxu0 %vm1448_vm0, %v7689_v39  ;;  %7552 = vmatprep.mubr.msk.bf16.mxu1 %vm1448_vm0, %v7690_v40  ;;  %v7752_v38 = vld [vmem:[%s8745_s0 + $0x388] sm:$0xff]   ;;  %v7753_v39 = vld [vmem:[%s8745_s0 + $0x190] sm:$0xff]  }
  0x50   :  { %v7754_v40 = vld [vmem:[%s8745_s0 + $0x390] sm:$0xff]  }
  0x56   :  { %7425 = vmatmul.mubr.msk.bf16.gmra.mrb[36].mxu0 %vm1448_vm0, %v7691_v41  ;;  %7553 = vmatmul.mubr.msk.bf16.gmra.mrb[36].mxu1 %vm1448_vm0, %v7692_v42  ;;  %v7755_v41 = vld [vmem:[%s8745_s0 + $0x198] sm:$0xff]  }
  0x57   :  { %7428 = vmatprep.mubr.msk.bf16.mxu0 %vm1448_vm0, %v7693_v43  ;;  %7556 = vmatprep.mubr.msk.bf16.mxu1 %vm1448_vm0, %v7694_v44  ;;  %v7756_v42 = vld [vmem:[%s8745_s0 + $0x398] sm:$0xff]   ;;  %v7757_v43 = vld [vmem:[%s8745_s0 + $0x1a0] sm:$0xff]  }
  0x58   :  { %v7758_v44 = vld [vmem:[%s8745_s0 + $0x3a0] sm:$0xff]  }
  0x5e   :  { %7429 = vmatmul.mubr.msk.bf16.gmra.mrb[40].mxu0 %vm1448_vm0, %v7695_v45  ;;  %7557 = vmatmul.mubr.msk.bf16.gmra.mrb[40].mxu1 %vm1448_vm0, %v7696_v46  ;;  %v7759_v45 = vld [vmem:[%s8745_s0 + $0x1a8] sm:$0xff]  }
  0x5f   :  { %7432 = vmatprep.mubr.msk.bf16.mxu0 %vm1448_vm0, %v7697_v47  ;;  %7560 = vmatprep.mubr.msk.bf16.mxu1 %vm1448_vm0, %v7698_v48  ;;  %v7760_v46 = vld [vmem:[%s8745_s0 + $0x3a8] sm:$0xff]   ;;  %v7761_v47 = vld [vmem:[%s8745_s0 + $0x1b0] sm:$0xff]  }
  0x60   :  { %v7762_v48 = vld [vmem:[%s8745_s0 + $0x3b0] sm:$0xff]  }
  0x66   :  { %7433 = vmatmul.mubr.msk.bf16.gmra.mrb[44].mxu0 %vm1448_vm0, %v7699_v49  ;;  %7561 = vmatmul.mubr.msk.bf16.gmra.mrb[44].mxu1 %vm1448_vm0, %v7700_v50 }
  0x67   :  { %7436 = vmatprep.mubr.msk.bf16.mxu0 %vm1448_vm0, %v7701_v51  ;;  %7564 = vmatprep.mubr.msk.bf16.mxu1 %vm1448_vm0, %v7702_v52  ;;  %v7763_v51 = vld [vmem:[%s8745_s0 + $0x1b8] sm:$0xff]  }
  0x6e   :  { %7437 = vmatmul.mubr.msk.bf16.gmra.mrb[48].mxu0 %vm1448_vm0, %v7703_v53  ;;  %7565 = vmatmul.mubr.msk.bf16.gmra.mrb[48].mxu1 %vm1448_vm0, %v7704_v54  ;;  %v7764_v54 = vld [vmem:[%s8745_s0 + $0x3b8] sm:$0xff]  }
  0x6f   :  { %7440 = vmatprep.mubr.msk.bf16.mxu0 %vm1448_vm0, %v7705_v55  ;;  %7568 = vmatprep.mubr.msk.bf16.mxu1 %vm1448_vm0, %v7706_v56 }
  0x76   :  { %7441 = vmatmul.mubr.msk.bf16.gmra.mrb[52].mxu0 %vm1448_vm0, %v7707_v57  ;;  %7569 = vmatmul.mubr.msk.bf16.gmra.mrb[52].mxu1 %vm1448_vm0, %v7708_v58  ;;  %v7765_v57 = vld [vmem:[%s8745_s0 + $0x1c0] sm:$0xff]  }
  0x77   :  { %7444 = vmatprep.mubr.msk.bf16.mxu0 %vm1448_vm0, %v7709_v59  ;;  %7572 = vmatprep.mubr.msk.bf16.mxu1 %vm1448_vm0, %v7710_v60  ;;  %v7766_v58 = vld [vmem:[%s8745_s0 + $0x3c0] sm:$0xff]  }
  0x7e   :  { %7445 = vmatmul.mubr.msk.bf16.gmra.mrb[56].mxu0 %vm1448_vm0, %v7711_v61  ;;  %7573 = vmatmul.mubr.msk.bf16.gmra.mrb[56].mxu1 %vm1448_vm0, %v7712_v62 }
  0x7f   :  { %7448 = vmatprep.mubr.msk.bf16.mxu0 %vm1448_vm0, %v7713_v63  ;;  %7576 = vmatprep.mubr.msk.bf16.mxu1 %vm1448_vm0, %v7714_v0 }
  0x86   :  { %7449 = vmatmul.mubr.msk.bf16.gmra.mrb[60].mxu0 %vm1448_vm0, %v7715_v1  ;;  %7577 = vmatmul.mubr.msk.bf16.gmra.mrb[60].mxu1 %vm1448_vm0, %v7716_v2 }
  0x87   :  { %7452 = vmatprep.mubr.msk.bf16.mxu0 %vm1448_vm0, %v7717_v3  ;;  %7580 = vmatprep.mubr.msk.bf16.mxu1 %vm1448_vm0, %v7718_v4 }
  0x8e   :  { %7453 = vmatmul.mubr.msk.bf16.gmra.mrb[64].mxu0 %vm1448_vm0, %v7719_v5  ;;  %7581 = vmatmul.mubr.msk.bf16.gmra.mrb[64].mxu1 %vm1448_vm0, %v7720_v6 }
  0x8f   :  { %7456 = vmatprep.mubr.msk.bf16.mxu0 %vm1448_vm0, %v7721_v7  ;;  %7584 = vmatprep.mubr.msk.bf16.mxu1 %vm1448_vm0, %v7722_v8 }
  0x96   :  { %7457 = vmatmul.mubr.msk.bf16.gmra.mrb[68].mxu0 %vm1448_vm0, %v7723_v9  ;;  %7585 = vmatmul.mubr.msk.bf16.gmra.mrb[68].mxu1 %vm1448_vm0, %v7724_v10 }
  0x97   :  { %7460 = vmatprep.mubr.msk.bf16.mxu0 %vm1448_vm0, %v7725_v11  ;;  %7588 = vmatprep.mubr.msk.bf16.mxu1 %vm1448_vm0, %v7726_v12 }
  0x9e   :  { %7461 = vmatmul.mubr.msk.bf16.gmra.mrb[72].mxu0 %vm1448_vm0, %v7727_v13  ;;  %7589 = vmatmul.mubr.msk.bf16.gmra.mrb[72].mxu1 %vm1448_vm0, %v7728_v14 }
  0x9f   :  { %7464 = vmatprep.mubr.msk.bf16.mxu0 %vm1448_vm0, %v7729_v15  ;;  %7592 = vmatprep.mubr.msk.bf16.mxu1 %vm1448_vm0, %v7730_v16  ;;  %v7767_v15 = vld [vmem:[%s8745_s0 + $0x1c8] sm:$0xff]  }
  0xa6   :  { %7465 = vmatmul.mubr.msk.bf16.gmra.mrb[76].mxu0 %vm1448_vm0, %v7731_v17  ;;  %7593 = vmatmul.mubr.msk.bf16.gmra.mrb[76].mxu1 %vm1448_vm0, %v7732_v18 }
  0xa7   :  { %7468 = vmatprep.mubr.msk.bf16.mxu0 %vm1448_vm0, %v7733_v19  ;;  %7596 = vmatprep.mubr.msk.bf16.mxu1 %vm1448_vm0, %v7734_v20 }
  0xae   :  { %7469 = vmatmul.mubr.msk.bf16.gmra.mrb[80].mxu0 %vm1448_vm0, %v7735_v21  ;;  %7597 = vmatmul.mubr.msk.bf16.gmra.mrb[80].mxu1 %vm1448_vm0, %v7736_v22  ;;  %v7768_v22 = vld [vmem:[%s8745_s0 + $0x3c8] sm:$0xff]  }
  0xaf   :  { %7472 = vmatprep.mubr.msk.bf16.mxu0 %vm1448_vm0, %v7737_v23  ;;  %7600 = vmatprep.mubr.msk.bf16.mxu1 %vm1448_vm0, %v7738_v24  ;;  %v7769_v23 = vld [vmem:[%s8745_s0 + $0x1d0] sm:$0xff]  }
  0xb6   :  { %7473 = vmatmul.mubr.msk.bf16.gmra.mrb[84].mxu0 %vm1448_vm0, %v7739_v25  ;;  %7601 = vmatmul.mubr.msk.bf16.gmra.mrb[84].mxu1 %vm1448_vm0, %v7740_v26 }
  0xb7   :  { %7476 = vmatprep.mubr.msk.bf16.mxu0 %vm1448_vm0, %v7741_v27  ;;  %7604 = vmatprep.mubr.msk.bf16.mxu1 %vm1448_vm0, %v7742_v28  ;;  %v7770_v28 = vld [vmem:[%s8745_s0 + $0x3d0] sm:$0xff]  }
  0xbe   :  { %7477 = vmatmul.mubr.msk.bf16.gmra.mrb[88].mxu0 %vm1448_vm0, %v7743_v29  ;;  %7605 = vmatmul.mubr.msk.bf16.gmra.mrb[88].mxu1 %vm1448_vm0, %v7744_v30 }
  0xbf   :  { %7480 = vmatprep.mubr.msk.bf16.mxu0 %vm1448_vm0, %v7745_v31  ;;  %7608 = vmatprep.mubr.msk.bf16.mxu1 %vm1448_vm0, %v7746_v32 }
  0xc6   :  { %7481 = vmatmul.mubr.msk.bf16.gmra.mrb[92].mxu0 %vm1448_vm0, %v7747_v33  ;;  %7609 = vmatmul.mubr.msk.bf16.gmra.mrb[92].mxu1 %vm1448_vm0, %v7748_v34 }
  0xc7   :  { %7484 = vmatprep.mubr.msk.bf16.mxu0 %vm1448_vm0, %v7749_v35  ;;  %7612 = vmatprep.mubr.msk.bf16.mxu1 %vm1448_vm0, %v7750_v36 }
  0xce   :  { %7485 = vmatmul.mubr.msk.bf16.gmra.mrb[96].mxu0 %vm1448_vm0, %v7751_v37  ;;  %7613 = vmatmul.mubr.msk.bf16.gmra.mrb[96].mxu1 %vm1448_vm0, %v7752_v38 }
  0xcf   :  { %7488 = vmatprep.mubr.msk.bf16.mxu0 %vm1448_vm0, %v7753_v39  ;;  %7616 = vmatprep.mubr.msk.bf16.mxu1 %vm1448_vm0, %v7754_v40 }
  0xd6   :  { %7489 = vmatmul.mubr.msk.bf16.gmra.mrb[100].mxu0 %vm1448_vm0, %v7755_v41  ;;  %7617 = vmatmul.mubr.msk.bf16.gmra.mrb[100].mxu1 %vm1448_vm0, %v7756_v42 }
  0xd7   :  { %7492 = vmatprep.mubr.msk.bf16.mxu0 %vm1448_vm0, %v7757_v43  ;;  %7620 = vmatprep.mubr.msk.bf16.mxu1 %vm1448_vm0, %v7758_v44 }
  0xde   :  { %7493 = vmatmul.mubr.msk.bf16.gmra.mrb[104].mxu0 %vm1448_vm0, %v7759_v45  ;;  %7621 = vmatmul.mubr.msk.bf16.gmra.mrb[104].mxu1 %vm1448_vm0, %v7760_v46 }
  0xdf   :  { %7496 = vmatprep.mubr.msk.bf16.mxu0 %vm1448_vm0, %v7761_v47  ;;  %7624 = vmatprep.mubr.msk.bf16.mxu1 %vm1448_vm0, %v7762_v48 }
  0xe1   :  { %v7390_v49 = vpop.f32.mrb[0].mxu0  ;;  %v7518_v50 = vpop.f32.mrb[0].mxu1 }
  0xe2   :  { %vm3663_vm1 = vcmp.ge.f32.partialorder %v7390_v49, 0.0  ;;  %v3919_v52 = vmul.f32 0.2, %v7390_v49  ;;  %v4047_v53 = vmul.f32 0.2, %v7518_v50  ;;  %vm3791_vm2 = vcmp.ge.f32.partialorder %v7518_v50, 0.0 }
  0xe3   :  { %v1867_v55 = vpop.f32.mrb[1].mxu0  ;;  %v2379_v56 = vpop.f32.mrb[1].mxu1 }
  0xe4   :  { %v3917_v59 = vmul.f32 0.2, %v1867_v55  ;;  %v7391_v60 = vpop.f32.mrb[2].mxu0  ;;  %v7519_v61 = vpop.f32.mrb[2].mxu1  ;;  %v4175_v62 = vsel %vm3663_vm1, %v7390_v49, %v3919_v52  ;;  %v4045_v63 = vmul.f32 0.2, %v2379_v56  ;;  %v4303_v1 = vsel %vm3791_vm2, %v7518_v50, %v4047_v53 }
  0xe5   :  { %vm3664_vm3 = vcmp.ge.f32.partialorder %v7391_v60, 0.0  ;;  %v3920_v0 = vmul.f32 0.2, %v7391_v60  ;;  %vm3661_vm4 = vcmp.ge.f32.partialorder %v1867_v55, 0.0  ;;  %vm3792_vm5 = vcmp.ge.f32.partialorder %v7519_v61, 0.0  ;;  %v1870_v3 = vpop.f32.mrb[3].mxu0 }
  0xe6   :  { %v4048_v2 = vmul.f32 0.2, %v7519_v61  ;;  %v2382_v4 = vpop.f32.mrb[3].mxu1  ;;  %7497 = vmatmul.mubr.msk.bf16.gmra.mrb[108].mxu0 %vm1448_vm0, %v7763_v51  ;;  %7625 = vmatmul.mubr.msk.bf16.gmra.mrb[108].mxu1 %vm1448_vm0, %v7764_v54  ;;  %vm3789_vm6 = vcmp.ge.f32.partialorder %v2379_v56, 0.0  ;;  %vm3662_vm7 = vcmp.ge.f32.partialorder %v1870_v3, 0.0  ;;  %v4173_v10 = vsel %vm3661_vm4, %v1867_v55, %v3917_v59  ;;  %v7771_v49 = vld [vmem:[%s8745_s0 + $0x1d8] sm:$0xff]  }
  0xe7   :  { %v4176_v5 = vsel %vm3664_vm3, %v7391_v60, %v3920_v0  ;;  %v3918_v6 = vmul.f32 0.2, %v1870_v3  ;;  %7500 = vmatprep.mubr.msk.bf16.mxu0 %vm1448_vm0, %v7765_v57  ;;  %7628 = vmatprep.mubr.msk.bf16.mxu1 %vm1448_vm0, %v7766_v58  ;;  %vm3790_vm8 = vcmp.ge.f32.partialorder %v2382_v4, 0.0  ;;  %v4046_v9 = vmul.f32 0.2, %v2382_v4  ;;  %v7772_v55 = vld [vmem:[%s8745_s0 + $0x3d8] sm:$0xff]  }
  0xe8   :  { %v6492_v7 = vpack.c.bf16 %v4176_v5, %v4175_v62  ;;  %v4304_v8 = vsel %vm3792_vm5, %v7519_v61, %v4048_v2  ;;  %v4301_v16 = vsel %vm3789_vm6, %v2379_v56, %v4045_v63  ;;  %v7773_v57 = vld [vmem:[%s8745_s0 + $0x1e0] sm:$0xff]  }
  0xe9   :  { %v6812_v11 = vpack.c.bf16 %v4304_v8, %v4303_v1  ;;  %v4174_v12 = vsel %vm3662_vm7, %v1870_v3, %v3918_v6  ;;  %v7394_v13 = vpop.f32.mrb[4].mxu0  ;;  %v7522_v14 = vpop.f32.mrb[4].mxu1  ;;  %v4302_v18 = vsel %vm3790_vm8, %v2382_v4, %v4046_v9  ;;  %v7774_v58 = vld [vmem:[%s8745_s0 + $0x3e0] sm:$0xff]  }
  0xea   :  { %7124 = vst [vmem:[%s8746_s2 + $0x8] sm:$0xff] %v6492_v7   ;;  %v6487_v17 = vpack.c.bf16 %v4174_v12, %v4173_v10  ;;  %v3923_v19 = vmul.f32 0.2, %v7394_v13  ;;  %v1883_v20 = vpop.f32.mrb[5].mxu0  ;;  %v2395_v21 = vpop.f32.mrb[5].mxu1  ;;  %v6807_v24 = vpack.c.bf16 %v4302_v18, %v4301_v16  ;;  %vm3667_vm9 = vcmp.ge.f32.partialorder %v7394_v13, 0.0 }
  0xeb   :  { %7188 = vst [vmem:[%s8746_s2 + $0x208] sm:$0xff] %v6812_v11   ;;  %v4051_v25 = vmul.f32 0.2, %v7522_v14  ;;  %v7395_v26 = vpop.f32.mrb[6].mxu0  ;;  %v7523_v27 = vpop.f32.mrb[6].mxu1  ;;  %vm3795_vm10 = vcmp.ge.f32.partialorder %v7522_v14, 0.0 }
  0xec   :  { %6488 = vst [vmem:[%s8746_s2] sm:$0xff] %v6487_v17   ;;  %v3921_v29 = vmul.f32 0.2, %v1883_v20  ;;  %v4049_v30 = vmul.f32 0.2, %v2395_v21  ;;  %v1886_v31 = vpop.f32.mrb[7].mxu0  ;;  %7187 = vst [vmem:[%s8746_s2 + $0x200] sm:$0xff] %v6807_v24   ;;  %v4179_v34 = vsel %vm3667_vm9, %v7394_v13, %v3923_v19 }
  0xed   :  { %vm3665_vm11 = vcmp.ge.f32.partialorder %v1883_v20, 0.0  ;;  %vm3668_vm12 = vcmp.ge.f32.partialorder %v7395_v26, 0.0  ;;  %v3924_v32 = vmul.f32 0.2, %v7395_v26  ;;  %vm3796_vm13 = vcmp.ge.f32.partialorder %v7523_v27, 0.0  ;;  %v2398_v33 = vpop.f32.mrb[7].mxu1 }
  0xee   :  { %vm3793_vm14 = vcmp.ge.f32.partialorder %v2395_v21, 0.0  ;;  %v4052_v35 = vmul.f32 0.2, %v7523_v27  ;;  %vm3666_vm15 = vcmp.ge.f32.partialorder %v1886_v31, 0.0  ;;  %7501 = vmatmul.mubr.msk.bf16.gmra.mrb[112].mxu0 %vm1448_vm0, %v7767_v15  ;;  %7629 = vmatmul.mubr.msk.bf16.gmra.mrb[112].mxu1 %vm1448_vm0, %v7768_v22  ;;  %v3922_v37 = vmul.f32 0.2, %v1886_v31 }
  0xef   :  { %v4180_v36 = vsel %vm3668_vm12, %v7395_v26, %v3924_v32  ;;  %vm3794_vm1 = vcmp.ge.f32.partialorder %v2398_v33, 0.0  ;;  %v4050_v38 = vmul.f32 0.2, %v2398_v33  ;;  %7504 = vmatprep.mubr.msk.bf16.mxu0 %vm1448_vm0, %v7769_v23  ;;  %7632 = vmatprep.mubr.msk.bf16.mxu1 %vm1448_vm0, %v7770_v28  ;;  %v4307_v39 = vsel %vm3795_vm10, %v7522_v14, %v4051_v25  ;;  %v7775_v17 = vld [vmem:[%s8745_s0 + $0x1e8] sm:$0xff]   ;;  %v7777_v25 = vld [vmem:[%s8745_s0 + $0x1f0] sm:$0xff]  }
  0xf0   :  { %v4177_v40 = vsel %vm3665_vm11, %v1883_v20, %v3921_v29  ;;  %v6502_v41 = vpack.c.bf16 %v4180_v36, %v4179_v34  ;;  %v4308_v42 = vsel %vm3796_vm13, %v7523_v27, %v4052_v35  ;;  %v4305_v43 = vsel %vm3793_vm14, %v2395_v21, %v4049_v30  ;;  %v7776_v23 = vld [vmem:[%s8745_s0 + $0x3e8] sm:$0xff]   ;;  %v7778_v26 = vld [vmem:[%s8745_s0 + $0x3f0] sm:$0xff]  }
  0xf1   :  { %v6822_v44 = vpack.c.bf16 %v4308_v42, %v4307_v39  ;;  %v4178_v45 = vsel %vm3666_vm15, %v1886_v31, %v3922_v37  ;;  %v4306_v46 = vsel %vm3794_vm1, %v2398_v33, %v4050_v38  ;;  %v7398_v47 = vpop.f32.mrb[8].mxu0  ;;  %v7526_v48 = vpop.f32.mrb[8].mxu1 }
  0xf2   :  { %7126 = vst [vmem:[%s8746_s2 + $0x18] sm:$0xff] %v6502_v41   ;;  %v6497_v50 = vpack.c.bf16 %v4178_v45, %v4177_v40  ;;  %v6817_v51 = vpack.c.bf16 %v4306_v46, %v4305_v43  ;;  %vm3671_vm2 = vcmp.ge.f32.partialorder %v7398_v47, 0.0  ;;  %v3927_v52 = vmul.f32 0.2, %v7398_v47  ;;  %v1899_v53 = vpop.f32.mrb[9].mxu0  ;;  %v2411_v54 = vpop.f32.mrb[9].mxu1 }
  0xf3   :  { %7190 = vst [vmem:[%s8746_s2 + $0x218] sm:$0xff] %v6822_v44   ;;  %vm3799_vm3 = vcmp.ge.f32.partialorder %v7526_v48, 0.0  ;;  %v4055_v56 = vmul.f32 0.2, %v7526_v48  ;;  %v3925_v59 = vmul.f32 0.2, %v1899_v53 }
  0xf4   :  { %7125 = vst [vmem:[%s8746_s2 + $0x10] sm:$0xff] %v6497_v50   ;;  %7189 = vst [vmem:[%s8746_s2 + $0x210] sm:$0xff] %v6817_v51   ;;  %v4053_v60 = vmul.f32 0.2, %v2411_v54  ;;  %v7399_v61 = vpop.f32.mrb[10].mxu0  ;;  %v7527_v62 = vpop.f32.mrb[10].mxu1  ;;  %v4183_v63 = vsel %vm3671_vm2, %v7398_v47, %v3927_v52 }
  0xf5   :  { %vm3669_vm4 = vcmp.ge.f32.partialorder %v1899_v53, 0.0  ;;  %vm3672_vm5 = vcmp.ge.f32.partialorder %v7399_v61, 0.0  ;;  %v3928_v0 = vmul.f32 0.2, %v7399_v61  ;;  %v1902_v1 = vpop.f32.mrb[11].mxu0  ;;  %v2414_v2 = vpop.f32.mrb[11].mxu1  ;;  %v4311_v7 = vsel %vm3799_vm3, %v7526_v48, %v4055_v56 }
  0xf6   :  { %vm3797_vm6 = vcmp.ge.f32.partialorder %v2411_v54, 0.0  ;;  %vm3800_vm7 = vcmp.ge.f32.partialorder %v7527_v62, 0.0  ;;  %v4056_v3 = vmul.f32 0.2, %v7527_v62  ;;  %vm3670_vm8 = vcmp.ge.f32.partialorder %v1902_v1, 0.0  ;;  %7505 = vmatmul.mubr.msk.bf16.gmra.mrb[116].mxu0 %vm1448_vm0, %v7771_v49  ;;  %7633 = vmatmul.mubr.msk.bf16.gmra.mrb[116].mxu1 %vm1448_vm0, %v7772_v55  ;;  %v7779_v49 = vld [vmem:[%s8745_s0 + $0x1f8] sm:$0xff]  }
  0xf7   :  { %v4184_v4 = vsel %vm3672_vm5, %v7399_v61, %v3928_v0  ;;  %v3926_v5 = vmul.f32 0.2, %v1902_v1  ;;  %vm3798_vm9 = vcmp.ge.f32.partialorder %v2414_v2, 0.0  ;;  %v4054_v6 = vmul.f32 0.2, %v2414_v2  ;;  %7508 = vmatprep.mubr.msk.bf16.mxu0 %vm1448_vm0, %v7773_v57  ;;  %7636 = vmatprep.mubr.msk.bf16.mxu1 %vm1448_vm0, %v7774_v58  ;;  %v7780_v55 = vld [vmem:[%s8745_s0 + $0x3f8] sm:$0xff]  }
  0xf8   :  { %v4181_v8 = vsel %vm3669_vm4, %v1899_v53, %v3925_v59  ;;  %v6512_v9 = vpack.c.bf16 %v4184_v4, %v4183_v63  ;;  %v4312_v10 = vsel %vm3800_vm7, %v7527_v62, %v4056_v3  ;;  %v4309_v11 = vsel %vm3797_vm6, %v2411_v54, %v4053_v60 }
  0xf9   :  { %v6832_v12 = vpack.c.bf16 %v4312_v10, %v4311_v7  ;;  %v4182_v13 = vsel %vm3670_vm8, %v1902_v1, %v3926_v5  ;;  %v4310_v14 = vsel %vm3798_vm9, %v2414_v2, %v4054_v6  ;;  %v7402_v15 = vpop.f32.mrb[12].mxu0  ;;  %v7530_v16 = vpop.f32.mrb[12].mxu1 }
  0xfa   :  { %7128 = vst [vmem:[%s8746_s2 + $0x28] sm:$0xff] %v6512_v9   ;;  %v6507_v18 = vpack.c.bf16 %v4182_v13, %v4181_v8  ;;  %v6827_v19 = vpack.c.bf16 %v4310_v14, %v4309_v11  ;;  %vm3675_vm10 = vcmp.ge.f32.partialorder %v7402_v15, 0.0  ;;  %v3931_v20 = vmul.f32 0.2, %v7402_v15  ;;  %v1915_v21 = vpop.f32.mrb[13].mxu0  ;;  %v2427_v22 = vpop.f32.mrb[13].mxu1 }
  0xfb   :  { %7192 = vst [vmem:[%s8746_s2 + $0x228] sm:$0xff] %v6832_v12   ;;  %vm3803_vm11 = vcmp.ge.f32.partialorder %v7530_v16, 0.0  ;;  %v4059_v24 = vmul.f32 0.2, %v7530_v16  ;;  %v3929_v27 = vmul.f32 0.2, %v1915_v21 }
  0xfc   :  { %7127 = vst [vmem:[%s8746_s2 + $0x20] sm:$0xff] %v6507_v18   ;;  %7191 = vst [vmem:[%s8746_s2 + $0x220] sm:$0xff] %v6827_v19   ;;  %v4057_v28 = vmul.f32 0.2, %v2427_v22  ;;  %v7403_v29 = vpop.f32.mrb[14].mxu0  ;;  %v7531_v30 = vpop.f32.mrb[14].mxu1  ;;  %v4187_v31 = vsel %vm3675_vm10, %v7402_v15, %v3931_v20 }
  0xfd   :  { %vm3673_vm12 = vcmp.ge.f32.partialorder %v1915_v21, 0.0  ;;  %vm3676_vm13 = vcmp.ge.f32.partialorder %v7403_v29, 0.0  ;;  %v3932_v32 = vmul.f32 0.2, %v7403_v29  ;;  %v1918_v33 = vpop.f32.mrb[15].mxu0  ;;  %v2430_v34 = vpop.f32.mrb[15].mxu1  ;;  %v4315_v39 = vsel %vm3803_vm11, %v7530_v16, %v4059_v24 }
  0xfe   :  { %vm3801_vm14 = vcmp.ge.f32.partialorder %v2427_v22, 0.0  ;;  %vm3804_vm15 = vcmp.ge.f32.partialorder %v7531_v30, 0.0  ;;  %v4060_v35 = vmul.f32 0.2, %v7531_v30  ;;  %vm3674_vm1 = vcmp.ge.f32.partialorder %v1918_v33, 0.0  ;;  %7509 = vmatmul.mubr.msk.bf16.gmra.mrb[120].mxu0 %vm1448_vm0, %v7775_v17  ;;  %7637 = vmatmul.mubr.msk.bf16.gmra.mrb[120].mxu1 %vm1448_vm0, %v7776_v23 }
  0xff   :  { %v4188_v36 = vsel %vm3676_vm13, %v7403_v29, %v3932_v32  ;;  %v3930_v37 = vmul.f32 0.2, %v1918_v33  ;;  %vm3802_vm2 = vcmp.ge.f32.partialorder %v2430_v34, 0.0  ;;  %v4058_v38 = vmul.f32 0.2, %v2430_v34  ;;  %7512 = vmatprep.mubr.msk.bf16.mxu0 %vm1448_vm0, %v7777_v25  ;;  %7640 = vmatprep.mubr.msk.bf16.mxu1 %vm1448_vm0, %v7778_v26 }
 0x100   :  { %v4185_v40 = vsel %vm3673_vm12, %v1915_v21, %v3929_v27  ;;  %v6522_v41 = vpack.c.bf16 %v4188_v36, %v4187_v31  ;;  %v4316_v42 = vsel %vm3804_vm15, %v7531_v30, %v4060_v35  ;;  %v4313_v43 = vsel %vm3801_vm14, %v2427_v22, %v4057_v28 }
 0x101   :  { %v6842_v44 = vpack.c.bf16 %v4316_v42, %v4315_v39  ;;  %v4186_v45 = vsel %vm3674_vm1, %v1918_v33, %v3930_v37  ;;  %v4314_v46 = vsel %vm3802_vm2, %v2430_v34, %v4058_v38  ;;  %v7406_v47 = vpop.f32.mrb[16].mxu0  ;;  %v7534_v48 = vpop.f32.mrb[16].mxu1 }
 0x102   :  { %7130 = vst [vmem:[%s8746_s2 + $0x38] sm:$0xff] %v6522_v41   ;;  %v6517_v50 = vpack.c.bf16 %v4186_v45, %v4185_v40  ;;  %v6837_v51 = vpack.c.bf16 %v4314_v46, %v4313_v43  ;;  %vm3679_vm3 = vcmp.ge.f32.partialorder %v7406_v47, 0.0  ;;  %v3935_v52 = vmul.f32 0.2, %v7406_v47  ;;  %v1931_v53 = vpop.f32.mrb[17].mxu0  ;;  %v2443_v54 = vpop.f32.mrb[17].mxu1 }
 0x103   :  { %7194 = vst [vmem:[%s8746_s2 + $0x238] sm:$0xff] %v6842_v44   ;;  %vm3807_vm4 = vcmp.ge.f32.partialorder %v7534_v48, 0.0  ;;  %v4063_v56 = vmul.f32 0.2, %v7534_v48  ;;  %v3933_v57 = vmul.f32 0.2, %v1931_v53 }
 0x104   :  { %7129 = vst [vmem:[%s8746_s2 + $0x30] sm:$0xff] %v6517_v50   ;;  %7193 = vst [vmem:[%s8746_s2 + $0x230] sm:$0xff] %v6837_v51   ;;  %v4061_v58 = vmul.f32 0.2, %v2443_v54  ;;  %v7407_v59 = vpop.f32.mrb[18].mxu0  ;;  %v7535_v60 = vpop.f32.mrb[18].mxu1  ;;  %v4191_v61 = vsel %vm3679_vm3, %v7406_v47, %v3935_v52 }
 0x105   :  { %vm3677_vm5 = vcmp.ge.f32.partialorder %v1931_v53, 0.0  ;;  %vm3680_vm6 = vcmp.ge.f32.partialorder %v7407_v59, 0.0  ;;  %v3936_v62 = vmul.f32 0.2, %v7407_v59  ;;  %v1934_v63 = vpop.f32.mrb[19].mxu0  ;;  %v2446_v0 = vpop.f32.mrb[19].mxu1  ;;  %v4319_v5 = vsel %vm3807_vm4, %v7534_v48, %v4063_v56 }
 0x106   :  { %vm3805_vm7 = vcmp.ge.f32.partialorder %v2443_v54, 0.0  ;;  %vm3808_vm8 = vcmp.ge.f32.partialorder %v7535_v60, 0.0  ;;  %v4064_v1 = vmul.f32 0.2, %v7535_v60  ;;  %vm3678_vm9 = vcmp.ge.f32.partialorder %v1934_v63, 0.0  ;;  %7513 = vmatmul.mubr.msk.bf16.gmra.mrb[124].mxu0 %vm1448_vm0, %v7779_v49  ;;  %7641 = vmatmul.mubr.msk.bf16.gmra.mrb[124].mxu1 %vm1448_vm0, %v7780_v55 }
 0x107   :  { %v4192_v2 = vsel %vm3680_vm6, %v7407_v59, %v3936_v62  ;;  %v3934_v3 = vmul.f32 0.2, %v1934_v63  ;;  %vm3806_vm10 = vcmp.ge.f32.partialorder %v2446_v0, 0.0  ;;  %v4062_v4 = vmul.f32 0.2, %v2446_v0 }
 0x108   :  { %v4189_v6 = vsel %vm3677_vm5, %v1931_v53, %v3933_v57  ;;  %v6532_v7 = vpack.c.bf16 %v4192_v2, %v4191_v61  ;;  %v4320_v8 = vsel %vm3808_vm8, %v7535_v60, %v4064_v1  ;;  %v4317_v9 = vsel %vm3805_vm7, %v2443_v54, %v4061_v58 }
 0x109   :  { %v6852_v10 = vpack.c.bf16 %v4320_v8, %v4319_v5  ;;  %v4190_v11 = vsel %vm3678_vm9, %v1934_v63, %v3934_v3  ;;  %v4318_v12 = vsel %vm3806_vm10, %v2446_v0, %v4062_v4  ;;  %v7410_v13 = vpop.f32.mrb[20].mxu0  ;;  %v7538_v14 = vpop.f32.mrb[20].mxu1 }
 0x10a   :  { %7132 = vst [vmem:[%s8746_s2 + $0x48] sm:$0xff] %v6532_v7   ;;  %v6527_v15 = vpack.c.bf16 %v4190_v11, %v4189_v6  ;;  %v6847_v16 = vpack.c.bf16 %v4318_v12, %v4317_v9  ;;  %vm3683_vm0 = vcmp.ge.f32.partialorder %v7410_v13, 0.0  ;;  %v3939_v17 = vmul.f32 0.2, %v7410_v13  ;;  %v1947_v18 = vpop.f32.mrb[21].mxu0  ;;  %v2459_v19 = vpop.f32.mrb[21].mxu1 }
 0x10b   :  { %7196 = vst [vmem:[%s8746_s2 + $0x248] sm:$0xff] %v6852_v10   ;;  %vm3811_vm11 = vcmp.ge.f32.partialorder %v7538_v14, 0.0  ;;  %v4067_v20 = vmul.f32 0.2, %v7538_v14  ;;  %v3937_v21 = vmul.f32 0.2, %v1947_v18 }
 0x10c   :  { %7131 = vst [vmem:[%s8746_s2 + $0x40] sm:$0xff] %v6527_v15   ;;  %7195 = vst [vmem:[%s8746_s2 + $0x240] sm:$0xff] %v6847_v16   ;;  %v4065_v22 = vmul.f32 0.2, %v2459_v19  ;;  %v7411_v23 = vpop.f32.mrb[22].mxu0  ;;  %v7539_v24 = vpop.f32.mrb[22].mxu1  ;;  %v4195_v25 = vsel %vm3683_vm0, %v7410_v13, %v3939_v17 }
 0x10d   :  { %vm3681_vm12 = vcmp.ge.f32.partialorder %v1947_v18, 0.0  ;;  %vm3684_vm13 = vcmp.ge.f32.partialorder %v7411_v23, 0.0  ;;  %v3940_v26 = vmul.f32 0.2, %v7411_v23  ;;  %v1950_v27 = vpop.f32.mrb[23].mxu0  ;;  %v2462_v28 = vpop.f32.mrb[23].mxu1  ;;  %v4323_v33 = vsel %vm3811_vm11, %v7538_v14, %v4067_v20 }
 0x10e   :  { %vm3809_vm14 = vcmp.ge.f32.partialorder %v2459_v19, 0.0  ;;  %vm3812_vm15 = vcmp.ge.f32.partialorder %v7539_v24, 0.0  ;;  %v4068_v29 = vmul.f32 0.2, %v7539_v24  ;;  %vm3682_vm1 = vcmp.ge.f32.partialorder %v1950_v27, 0.0 }
 0x10f   :  { %v4196_v30 = vsel %vm3684_vm13, %v7411_v23, %v3940_v26  ;;  %v3938_v31 = vmul.f32 0.2, %v1950_v27  ;;  %vm3810_vm2 = vcmp.ge.f32.partialorder %v2462_v28, 0.0  ;;  %v4066_v32 = vmul.f32 0.2, %v2462_v28 }
 0x110   :  { %v4193_v34 = vsel %vm3681_vm12, %v1947_v18, %v3937_v21  ;;  %v6542_v35 = vpack.c.bf16 %v4196_v30, %v4195_v25  ;;  %v4324_v36 = vsel %vm3812_vm15, %v7539_v24, %v4068_v29  ;;  %v4321_v37 = vsel %vm3809_vm14, %v2459_v19, %v4065_v22 }
 0x111   :  { %v6862_v38 = vpack.c.bf16 %v4324_v36, %v4323_v33  ;;  %v4194_v39 = vsel %vm3682_vm1, %v1950_v27, %v3938_v31  ;;  %v4322_v40 = vsel %vm3810_vm2, %v2462_v28, %v4066_v32  ;;  %v7414_v41 = vpop.f32.mrb[24].mxu0  ;;  %v7542_v42 = vpop.f32.mrb[24].mxu1 }
 0x112   :  { %7134 = vst [vmem:[%s8746_s2 + $0x58] sm:$0xff] %v6542_v35   ;;  %v6537_v43 = vpack.c.bf16 %v4194_v39, %v4193_v34  ;;  %v6857_v44 = vpack.c.bf16 %v4322_v40, %v4321_v37  ;;  %vm3687_vm3 = vcmp.ge.f32.partialorder %v7414_v41, 0.0  ;;  %v3943_v45 = vmul.f32 0.2, %v7414_v41  ;;  %v1963_v46 = vpop.f32.mrb[25].mxu0  ;;  %v2475_v47 = vpop.f32.mrb[25].mxu1 }
 0x113   :  { %7198 = vst [vmem:[%s8746_s2 + $0x258] sm:$0xff] %v6862_v38   ;;  %vm3815_vm4 = vcmp.ge.f32.partialorder %v7542_v42, 0.0  ;;  %v4071_v48 = vmul.f32 0.2, %v7542_v42  ;;  %v3941_v49 = vmul.f32 0.2, %v1963_v46 }
 0x114   :  { %7133 = vst [vmem:[%s8746_s2 + $0x50] sm:$0xff] %v6537_v43   ;;  %7197 = vst [vmem:[%s8746_s2 + $0x250] sm:$0xff] %v6857_v44   ;;  %v4069_v50 = vmul.f32 0.2, %v2475_v47  ;;  %v7415_v51 = vpop.f32.mrb[26].mxu0  ;;  %v7543_v52 = vpop.f32.mrb[26].mxu1  ;;  %v4199_v53 = vsel %vm3687_vm3, %v7414_v41, %v3943_v45 }
 0x115   :  { %vm3685_vm5 = vcmp.ge.f32.partialorder %v1963_v46, 0.0  ;;  %vm3688_vm6 = vcmp.ge.f32.partialorder %v7415_v51, 0.0  ;;  %v3944_v54 = vmul.f32 0.2, %v7415_v51  ;;  %v1966_v55 = vpop.f32.mrb[27].mxu0  ;;  %v2478_v56 = vpop.f32.mrb[27].mxu1  ;;  %v4327_v61 = vsel %vm3815_vm4, %v7542_v42, %v4071_v48 }
 0x116   :  { %vm3813_vm7 = vcmp.ge.f32.partialorder %v2475_v47, 0.0  ;;  %vm3816_vm8 = vcmp.ge.f32.partialorder %v7543_v52, 0.0  ;;  %v4072_v57 = vmul.f32 0.2, %v7543_v52  ;;  %vm3686_vm9 = vcmp.ge.f32.partialorder %v1966_v55, 0.0 }
 0x117   :  { %v4200_v58 = vsel %vm3688_vm6, %v7415_v51, %v3944_v54  ;;  %v3942_v59 = vmul.f32 0.2, %v1966_v55  ;;  %vm3814_vm10 = vcmp.ge.f32.partialorder %v2478_v56, 0.0  ;;  %v4070_v60 = vmul.f32 0.2, %v2478_v56 }
 0x118   :  { %v4197_v62 = vsel %vm3685_vm5, %v1963_v46, %v3941_v49  ;;  %v6552_v63 = vpack.c.bf16 %v4200_v58, %v4199_v53  ;;  %v4328_v0 = vsel %vm3816_vm8, %v7543_v52, %v4072_v57  ;;  %v4325_v1 = vsel %vm3813_vm7, %v2475_v47, %v4069_v50 }
 0x119   :  { %v6872_v2 = vpack.c.bf16 %v4328_v0, %v4327_v61  ;;  %v4198_v3 = vsel %vm3686_vm9, %v1966_v55, %v3942_v59  ;;  %v4326_v4 = vsel %vm3814_vm10, %v2478_v56, %v4070_v60  ;;  %v7418_v5 = vpop.f32.mrb[28].mxu0  ;;  %v7546_v6 = vpop.f32.mrb[28].mxu1 }
 0x11a   :  { %7136 = vst [vmem:[%s8746_s2 + $0x68] sm:$0xff] %v6552_v63   ;;  %v6547_v7 = vpack.c.bf16 %v4198_v3, %v4197_v62  ;;  %v6867_v8 = vpack.c.bf16 %v4326_v4, %v4325_v1  ;;  %vm3691_vm0 = vcmp.ge.f32.partialorder %v7418_v5, 0.0  ;;  %v3947_v9 = vmul.f32 0.2, %v7418_v5  ;;  %v1979_v10 = vpop.f32.mrb[29].mxu0  ;;  %v2491_v11 = vpop.f32.mrb[29].mxu1 }
 0x11b   :  { %7200 = vst [vmem:[%s8746_s2 + $0x268] sm:$0xff] %v6872_v2   ;;  %vm3819_vm11 = vcmp.ge.f32.partialorder %v7546_v6, 0.0  ;;  %v4075_v12 = vmul.f32 0.2, %v7546_v6  ;;  %v3945_v13 = vmul.f32 0.2, %v1979_v10 }
 0x11c   :  { %7135 = vst [vmem:[%s8746_s2 + $0x60] sm:$0xff] %v6547_v7   ;;  %7199 = vst [vmem:[%s8746_s2 + $0x260] sm:$0xff] %v6867_v8   ;;  %v4073_v14 = vmul.f32 0.2, %v2491_v11  ;;  %v7419_v15 = vpop.f32.mrb[30].mxu0  ;;  %v7547_v16 = vpop.f32.mrb[30].mxu1  ;;  %v4203_v17 = vsel %vm3691_vm0, %v7418_v5, %v3947_v9 }
 0x11d   :  { %vm3689_vm12 = vcmp.ge.f32.partialorder %v1979_v10, 0.0  ;;  %vm3692_vm13 = vcmp.ge.f32.partialorder %v7419_v15, 0.0  ;;  %v3948_v18 = vmul.f32 0.2, %v7419_v15  ;;  %v1982_v19 = vpop.f32.mrb[31].mxu0  ;;  %v2494_v20 = vpop.f32.mrb[31].mxu1  ;;  %v4331_v25 = vsel %vm3819_vm11, %v7546_v6, %v4075_v12 }
 0x11e   :  { %vm3817_vm14 = vcmp.ge.f32.partialorder %v2491_v11, 0.0  ;;  %vm3820_vm15 = vcmp.ge.f32.partialorder %v7547_v16, 0.0  ;;  %v4076_v21 = vmul.f32 0.2, %v7547_v16  ;;  %vm3690_vm1 = vcmp.ge.f32.partialorder %v1982_v19, 0.0 }
 0x11f   :  { %v4204_v22 = vsel %vm3692_vm13, %v7419_v15, %v3948_v18  ;;  %v3946_v23 = vmul.f32 0.2, %v1982_v19  ;;  %vm3818_vm2 = vcmp.ge.f32.partialorder %v2494_v20, 0.0  ;;  %v4074_v24 = vmul.f32 0.2, %v2494_v20 }
 0x120   :  { %v4201_v26 = vsel %vm3689_vm12, %v1979_v10, %v3945_v13  ;;  %v6562_v27 = vpack.c.bf16 %v4204_v22, %v4203_v17  ;;  %v4332_v28 = vsel %vm3820_vm15, %v7547_v16, %v4076_v21  ;;  %v4329_v29 = vsel %vm3817_vm14, %v2491_v11, %v4073_v14 }
 0x121   :  { %v6882_v30 = vpack.c.bf16 %v4332_v28, %v4331_v25  ;;  %v4202_v31 = vsel %vm3690_vm1, %v1982_v19, %v3946_v23  ;;  %v4330_v32 = vsel %vm3818_vm2, %v2494_v20, %v4074_v24  ;;  %v7422_v33 = vpop.f32.mrb[32].mxu0  ;;  %v7550_v34 = vpop.f32.mrb[32].mxu1 }
 0x122   :  { %7138 = vst [vmem:[%s8746_s2 + $0x78] sm:$0xff] %v6562_v27   ;;  %v6557_v35 = vpack.c.bf16 %v4202_v31, %v4201_v26  ;;  %v6877_v36 = vpack.c.bf16 %v4330_v32, %v4329_v29  ;;  %vm3695_vm3 = vcmp.ge.f32.partialorder %v7422_v33, 0.0  ;;  %v3951_v37 = vmul.f32 0.2, %v7422_v33  ;;  %v1995_v38 = vpop.f32.mrb[33].mxu0  ;;  %v2507_v39 = vpop.f32.mrb[33].mxu1 }
 0x123   :  { %7202 = vst [vmem:[%s8746_s2 + $0x278] sm:$0xff] %v6882_v30   ;;  %vm3823_vm4 = vcmp.ge.f32.partialorder %v7550_v34, 0.0  ;;  %v4079_v40 = vmul.f32 0.2, %v7550_v34  ;;  %v3949_v41 = vmul.f32 0.2, %v1995_v38 }
 0x124   :  { %7137 = vst [vmem:[%s8746_s2 + $0x70] sm:$0xff] %v6557_v35   ;;  %7201 = vst [vmem:[%s8746_s2 + $0x270] sm:$0xff] %v6877_v36   ;;  %v4077_v42 = vmul.f32 0.2, %v2507_v39  ;;  %v7423_v43 = vpop.f32.mrb[34].mxu0  ;;  %v7551_v44 = vpop.f32.mrb[34].mxu1  ;;  %v4207_v45 = vsel %vm3695_vm3, %v7422_v33, %v3951_v37 }
 0x125   :  { %vm3693_vm5 = vcmp.ge.f32.partialorder %v1995_v38, 0.0  ;;  %vm3696_vm6 = vcmp.ge.f32.partialorder %v7423_v43, 0.0  ;;  %v3952_v46 = vmul.f32 0.2, %v7423_v43  ;;  %v1998_v47 = vpop.f32.mrb[35].mxu0  ;;  %v2510_v48 = vpop.f32.mrb[35].mxu1  ;;  %v4335_v53 = vsel %vm3823_vm4, %v7550_v34, %v4079_v40 }
 0x126   :  { %vm3821_vm7 = vcmp.ge.f32.partialorder %v2507_v39, 0.0  ;;  %vm3824_vm8 = vcmp.ge.f32.partialorder %v7551_v44, 0.0  ;;  %v4080_v49 = vmul.f32 0.2, %v7551_v44  ;;  %vm3694_vm9 = vcmp.ge.f32.partialorder %v1998_v47, 0.0 }
 0x127   :  { %v4208_v50 = vsel %vm3696_vm6, %v7423_v43, %v3952_v46  ;;  %v3950_v51 = vmul.f32 0.2, %v1998_v47  ;;  %vm3822_vm10 = vcmp.ge.f32.partialorder %v2510_v48, 0.0  ;;  %v4078_v52 = vmul.f32 0.2, %v2510_v48 }
 0x128   :  { %v4205_v54 = vsel %vm3693_vm5, %v1995_v38, %v3949_v41  ;;  %v6572_v55 = vpack.c.bf16 %v4208_v50, %v4207_v45  ;;  %v4336_v56 = vsel %vm3824_vm8, %v7551_v44, %v4080_v49  ;;  %v4333_v57 = vsel %vm3821_vm7, %v2507_v39, %v4077_v42 }
 0x129   :  { %v6892_v58 = vpack.c.bf16 %v4336_v56, %v4335_v53  ;;  %v4206_v59 = vsel %vm3694_vm9, %v1998_v47, %v3950_v51  ;;  %v4334_v60 = vsel %vm3822_vm10, %v2510_v48, %v4078_v52  ;;  %v7426_v61 = vpop.f32.mrb[36].mxu0  ;;  %v7554_v62 = vpop.f32.mrb[36].mxu1 }
 0x12a   :  { %7140 = vst [vmem:[%s8746_s2 + $0x88] sm:$0xff] %v6572_v55   ;;  %v6567_v63 = vpack.c.bf16 %v4206_v59, %v4205_v54  ;;  %v6887_v0 = vpack.c.bf16 %v4334_v60, %v4333_v57  ;;  %vm3699_vm0 = vcmp.ge.f32.partialorder %v7426_v61, 0.0  ;;  %v3955_v1 = vmul.f32 0.2, %v7426_v61  ;;  %v2011_v2 = vpop.f32.mrb[37].mxu0  ;;  %v2523_v3 = vpop.f32.mrb[37].mxu1 }
 0x12b   :  { %7204 = vst [vmem:[%s8746_s2 + $0x288] sm:$0xff] %v6892_v58   ;;  %vm3827_vm11 = vcmp.ge.f32.partialorder %v7554_v62, 0.0  ;;  %v4083_v4 = vmul.f32 0.2, %v7554_v62  ;;  %v3953_v5 = vmul.f32 0.2, %v2011_v2 }
 0x12c   :  { %7139 = vst [vmem:[%s8746_s2 + $0x80] sm:$0xff] %v6567_v63   ;;  %7203 = vst [vmem:[%s8746_s2 + $0x280] sm:$0xff] %v6887_v0   ;;  %v4081_v6 = vmul.f32 0.2, %v2523_v3  ;;  %v7427_v7 = vpop.f32.mrb[38].mxu0  ;;  %v7555_v8 = vpop.f32.mrb[38].mxu1  ;;  %v4211_v9 = vsel %vm3699_vm0, %v7426_v61, %v3955_v1 }
 0x12d   :  { %vm3697_vm12 = vcmp.ge.f32.partialorder %v2011_v2, 0.0  ;;  %vm3700_vm13 = vcmp.ge.f32.partialorder %v7427_v7, 0.0  ;;  %v3956_v10 = vmul.f32 0.2, %v7427_v7  ;;  %v2014_v11 = vpop.f32.mrb[39].mxu0  ;;  %v2526_v12 = vpop.f32.mrb[39].mxu1  ;;  %v4339_v17 = vsel %vm3827_vm11, %v7554_v62, %v4083_v4 }
 0x12e   :  { %vm3825_vm14 = vcmp.ge.f32.partialorder %v2523_v3, 0.0  ;;  %vm3828_vm15 = vcmp.ge.f32.partialorder %v7555_v8, 0.0  ;;  %v4084_v13 = vmul.f32 0.2, %v7555_v8  ;;  %vm3698_vm1 = vcmp.ge.f32.partialorder %v2014_v11, 0.0 }
 0x12f   :  { %v4212_v14 = vsel %vm3700_vm13, %v7427_v7, %v3956_v10  ;;  %v3954_v15 = vmul.f32 0.2, %v2014_v11  ;;  %vm3826_vm2 = vcmp.ge.f32.partialorder %v2526_v12, 0.0  ;;  %v4082_v16 = vmul.f32 0.2, %v2526_v12 }
 0x130   :  { %v4209_v18 = vsel %vm3697_vm12, %v2011_v2, %v3953_v5  ;;  %v6582_v19 = vpack.c.bf16 %v4212_v14, %v4211_v9  ;;  %v4340_v20 = vsel %vm3828_vm15, %v7555_v8, %v4084_v13  ;;  %v4337_v21 = vsel %vm3825_vm14, %v2523_v3, %v4081_v6 }
 0x131   :  { %v6902_v22 = vpack.c.bf16 %v4340_v20, %v4339_v17  ;;  %v4210_v23 = vsel %vm3698_vm1, %v2014_v11, %v3954_v15  ;;  %v4338_v24 = vsel %vm3826_vm2, %v2526_v12, %v4082_v16  ;;  %v7430_v25 = vpop.f32.mrb[40].mxu0  ;;  %v7558_v26 = vpop.f32.mrb[40].mxu1 }
 0x132   :  { %7142 = vst [vmem:[%s8746_s2 + $0x98] sm:$0xff] %v6582_v19   ;;  %v6577_v27 = vpack.c.bf16 %v4210_v23, %v4209_v18  ;;  %v6897_v28 = vpack.c.bf16 %v4338_v24, %v4337_v21  ;;  %vm3703_vm3 = vcmp.ge.f32.partialorder %v7430_v25, 0.0  ;;  %v3959_v29 = vmul.f32 0.2, %v7430_v25  ;;  %v2027_v30 = vpop.f32.mrb[41].mxu0  ;;  %v2539_v31 = vpop.f32.mrb[41].mxu1 }
 0x133   :  { %7206 = vst [vmem:[%s8746_s2 + $0x298] sm:$0xff] %v6902_v22   ;;  %vm3831_vm4 = vcmp.ge.f32.partialorder %v7558_v26, 0.0  ;;  %v4087_v32 = vmul.f32 0.2, %v7558_v26  ;;  %v3957_v33 = vmul.f32 0.2, %v2027_v30 }
 0x134   :  { %7141 = vst [vmem:[%s8746_s2 + $0x90] sm:$0xff] %v6577_v27   ;;  %7205 = vst [vmem:[%s8746_s2 + $0x290] sm:$0xff] %v6897_v28   ;;  %v4085_v34 = vmul.f32 0.2, %v2539_v31  ;;  %v7431_v35 = vpop.f32.mrb[42].mxu0  ;;  %v7559_v36 = vpop.f32.mrb[42].mxu1  ;;  %v4215_v37 = vsel %vm3703_vm3, %v7430_v25, %v3959_v29 }
 0x135   :  { %vm3701_vm5 = vcmp.ge.f32.partialorder %v2027_v30, 0.0  ;;  %vm3704_vm6 = vcmp.ge.f32.partialorder %v7431_v35, 0.0  ;;  %v3960_v38 = vmul.f32 0.2, %v7431_v35  ;;  %v2030_v39 = vpop.f32.mrb[43].mxu0  ;;  %v2542_v40 = vpop.f32.mrb[43].mxu1  ;;  %v4343_v45 = vsel %vm3831_vm4, %v7558_v26, %v4087_v32 }
 0x136   :  { %vm3829_vm7 = vcmp.ge.f32.partialorder %v2539_v31, 0.0  ;;  %vm3832_vm8 = vcmp.ge.f32.partialorder %v7559_v36, 0.0  ;;  %v4088_v41 = vmul.f32 0.2, %v7559_v36  ;;  %vm3702_vm9 = vcmp.ge.f32.partialorder %v2030_v39, 0.0 }
 0x137   :  { %v4216_v42 = vsel %vm3704_vm6, %v7431_v35, %v3960_v38  ;;  %v3958_v43 = vmul.f32 0.2, %v2030_v39  ;;  %vm3830_vm10 = vcmp.ge.f32.partialorder %v2542_v40, 0.0  ;;  %v4086_v44 = vmul.f32 0.2, %v2542_v40 }
 0x138   :  { %v4213_v46 = vsel %vm3701_vm5, %v2027_v30, %v3957_v33  ;;  %v6592_v47 = vpack.c.bf16 %v4216_v42, %v4215_v37  ;;  %v4344_v48 = vsel %vm3832_vm8, %v7559_v36, %v4088_v41  ;;  %v4341_v49 = vsel %vm3829_vm7, %v2539_v31, %v4085_v34 }
 0x139   :  { %v6912_v50 = vpack.c.bf16 %v4344_v48, %v4343_v45  ;;  %v4214_v51 = vsel %vm3702_vm9, %v2030_v39, %v3958_v43  ;;  %v4342_v52 = vsel %vm3830_vm10, %v2542_v40, %v4086_v44  ;;  %v7434_v53 = vpop.f32.mrb[44].mxu0  ;;  %v7562_v54 = vpop.f32.mrb[44].mxu1 }
 0x13a   :  { %7144 = vst [vmem:[%s8746_s2 + $0xa8] sm:$0xff] %v6592_v47   ;;  %v6587_v55 = vpack.c.bf16 %v4214_v51, %v4213_v46  ;;  %v6907_v56 = vpack.c.bf16 %v4342_v52, %v4341_v49  ;;  %vm3707_vm0 = vcmp.ge.f32.partialorder %v7434_v53, 0.0  ;;  %v3963_v57 = vmul.f32 0.2, %v7434_v53  ;;  %v2043_v58 = vpop.f32.mrb[45].mxu0  ;;  %v2555_v59 = vpop.f32.mrb[45].mxu1 }
 0x13b   :  { %7208 = vst [vmem:[%s8746_s2 + $0x2a8] sm:$0xff] %v6912_v50   ;;  %vm3835_vm11 = vcmp.ge.f32.partialorder %v7562_v54, 0.0  ;;  %v4091_v60 = vmul.f32 0.2, %v7562_v54  ;;  %v3961_v61 = vmul.f32 0.2, %v2043_v58 }
 0x13c   :  { %7143 = vst [vmem:[%s8746_s2 + $0xa0] sm:$0xff] %v6587_v55   ;;  %7207 = vst [vmem:[%s8746_s2 + $0x2a0] sm:$0xff] %v6907_v56   ;;  %v4089_v62 = vmul.f32 0.2, %v2555_v59  ;;  %v7435_v63 = vpop.f32.mrb[46].mxu0  ;;  %v7563_v0 = vpop.f32.mrb[46].mxu1  ;;  %v4219_v1 = vsel %vm3707_vm0, %v7434_v53, %v3963_v57 }
 0x13d   :  { %vm3705_vm12 = vcmp.ge.f32.partialorder %v2043_v58, 0.0  ;;  %vm3708_vm13 = vcmp.ge.f32.partialorder %v7435_v63, 0.0  ;;  %v3964_v2 = vmul.f32 0.2, %v7435_v63  ;;  %v2046_v3 = vpop.f32.mrb[47].mxu0  ;;  %v2558_v4 = vpop.f32.mrb[47].mxu1  ;;  %v4347_v9 = vsel %vm3835_vm11, %v7562_v54, %v4091_v60 }
 0x13e   :  { %vm3833_vm14 = vcmp.ge.f32.partialorder %v2555_v59, 0.0  ;;  %vm3836_vm15 = vcmp.ge.f32.partialorder %v7563_v0, 0.0  ;;  %v4092_v5 = vmul.f32 0.2, %v7563_v0  ;;  %vm3706_vm1 = vcmp.ge.f32.partialorder %v2046_v3, 0.0 }
 0x13f   :  { %v4220_v6 = vsel %vm3708_vm13, %v7435_v63, %v3964_v2  ;;  %v3962_v7 = vmul.f32 0.2, %v2046_v3  ;;  %vm3834_vm2 = vcmp.ge.f32.partialorder %v2558_v4, 0.0  ;;  %v4090_v8 = vmul.f32 0.2, %v2558_v4 }
 0x140   :  { %v4217_v10 = vsel %vm3705_vm12, %v2043_v58, %v3961_v61  ;;  %v6602_v11 = vpack.c.bf16 %v4220_v6, %v4219_v1  ;;  %v4348_v12 = vsel %vm3836_vm15, %v7563_v0, %v4092_v5  ;;  %v4345_v13 = vsel %vm3833_vm14, %v2555_v59, %v4089_v62 }
 0x141   :  { %v6922_v14 = vpack.c.bf16 %v4348_v12, %v4347_v9  ;;  %v4218_v15 = vsel %vm3706_vm1, %v2046_v3, %v3962_v7  ;;  %v4346_v16 = vsel %vm3834_vm2, %v2558_v4, %v4090_v8  ;;  %v7438_v17 = vpop.f32.mrb[48].mxu0  ;;  %v7566_v18 = vpop.f32.mrb[48].mxu1 }
 0x142   :  { %7146 = vst [vmem:[%s8746_s2 + $0xb8] sm:$0xff] %v6602_v11   ;;  %v6597_v19 = vpack.c.bf16 %v4218_v15, %v4217_v10  ;;  %v6917_v20 = vpack.c.bf16 %v4346_v16, %v4345_v13  ;;  %vm3711_vm3 = vcmp.ge.f32.partialorder %v7438_v17, 0.0  ;;  %v3967_v21 = vmul.f32 0.2, %v7438_v17  ;;  %v2059_v22 = vpop.f32.mrb[49].mxu0  ;;  %v2571_v23 = vpop.f32.mrb[49].mxu1 }
 0x143   :  { %7210 = vst [vmem:[%s8746_s2 + $0x2b8] sm:$0xff] %v6922_v14   ;;  %vm3839_vm4 = vcmp.ge.f32.partialorder %v7566_v18, 0.0  ;;  %v4095_v24 = vmul.f32 0.2, %v7566_v18  ;;  %v3965_v25 = vmul.f32 0.2, %v2059_v22 }
 0x144   :  { %7145 = vst [vmem:[%s8746_s2 + $0xb0] sm:$0xff] %v6597_v19   ;;  %7209 = vst [vmem:[%s8746_s2 + $0x2b0] sm:$0xff] %v6917_v20   ;;  %v4093_v26 = vmul.f32 0.2, %v2571_v23  ;;  %v7439_v27 = vpop.f32.mrb[50].mxu0  ;;  %v7567_v28 = vpop.f32.mrb[50].mxu1  ;;  %v4223_v29 = vsel %vm3711_vm3, %v7438_v17, %v3967_v21 }
 0x145   :  { %vm3709_vm5 = vcmp.ge.f32.partialorder %v2059_v22, 0.0  ;;  %vm3712_vm6 = vcmp.ge.f32.partialorder %v7439_v27, 0.0  ;;  %v3968_v30 = vmul.f32 0.2, %v7439_v27  ;;  %v2062_v31 = vpop.f32.mrb[51].mxu0  ;;  %v2574_v32 = vpop.f32.mrb[51].mxu1  ;;  %v4351_v37 = vsel %vm3839_vm4, %v7566_v18, %v4095_v24 }
 0x146   :  { %vm3837_vm7 = vcmp.ge.f32.partialorder %v2571_v23, 0.0  ;;  %vm3840_vm8 = vcmp.ge.f32.partialorder %v7567_v28, 0.0  ;;  %v4096_v33 = vmul.f32 0.2, %v7567_v28  ;;  %vm3710_vm9 = vcmp.ge.f32.partialorder %v2062_v31, 0.0 }
 0x147   :  { %v4224_v34 = vsel %vm3712_vm6, %v7439_v27, %v3968_v30  ;;  %v3966_v35 = vmul.f32 0.2, %v2062_v31  ;;  %vm3838_vm10 = vcmp.ge.f32.partialorder %v2574_v32, 0.0  ;;  %v4094_v36 = vmul.f32 0.2, %v2574_v32 }
 0x148   :  { %v4221_v38 = vsel %vm3709_vm5, %v2059_v22, %v3965_v25  ;;  %v6612_v39 = vpack.c.bf16 %v4224_v34, %v4223_v29  ;;  %v4352_v40 = vsel %vm3840_vm8, %v7567_v28, %v4096_v33  ;;  %v4349_v41 = vsel %vm3837_vm7, %v2571_v23, %v4093_v26 }
 0x149   :  { %v6932_v42 = vpack.c.bf16 %v4352_v40, %v4351_v37  ;;  %v4222_v43 = vsel %vm3710_vm9, %v2062_v31, %v3966_v35  ;;  %v4350_v44 = vsel %vm3838_vm10, %v2574_v32, %v4094_v36  ;;  %v7442_v45 = vpop.f32.mrb[52].mxu0  ;;  %v7570_v46 = vpop.f32.mrb[52].mxu1 }
 0x14a   :  { %7148 = vst [vmem:[%s8746_s2 + $0xc8] sm:$0xff] %v6612_v39   ;;  %v6607_v47 = vpack.c.bf16 %v4222_v43, %v4221_v38  ;;  %v6927_v48 = vpack.c.bf16 %v4350_v44, %v4349_v41  ;;  %vm3715_vm0 = vcmp.ge.f32.partialorder %v7442_v45, 0.0  ;;  %v3971_v49 = vmul.f32 0.2, %v7442_v45  ;;  %v2075_v50 = vpop.f32.mrb[53].mxu0  ;;  %v2587_v51 = vpop.f32.mrb[53].mxu1 }
 0x14b   :  { %7212 = vst [vmem:[%s8746_s2 + $0x2c8] sm:$0xff] %v6932_v42   ;;  %vm3843_vm11 = vcmp.ge.f32.partialorder %v7570_v46, 0.0  ;;  %v4099_v52 = vmul.f32 0.2, %v7570_v46  ;;  %v3969_v53 = vmul.f32 0.2, %v2075_v50 }
 0x14c   :  { %7147 = vst [vmem:[%s8746_s2 + $0xc0] sm:$0xff] %v6607_v47   ;;  %7211 = vst [vmem:[%s8746_s2 + $0x2c0] sm:$0xff] %v6927_v48   ;;  %v4097_v54 = vmul.f32 0.2, %v2587_v51  ;;  %v7443_v55 = vpop.f32.mrb[54].mxu0  ;;  %v7571_v56 = vpop.f32.mrb[54].mxu1  ;;  %v4227_v57 = vsel %vm3715_vm0, %v7442_v45, %v3971_v49 }
 0x14d   :  { %vm3713_vm12 = vcmp.ge.f32.partialorder %v2075_v50, 0.0  ;;  %vm3716_vm13 = vcmp.ge.f32.partialorder %v7443_v55, 0.0  ;;  %v3972_v58 = vmul.f32 0.2, %v7443_v55  ;;  %v2078_v59 = vpop.f32.mrb[55].mxu0  ;;  %v2590_v60 = vpop.f32.mrb[55].mxu1  ;;  %v4355_v1 = vsel %vm3843_vm11, %v7570_v46, %v4099_v52 }
 0x14e   :  { %vm3841_vm14 = vcmp.ge.f32.partialorder %v2587_v51, 0.0  ;;  %vm3844_vm15 = vcmp.ge.f32.partialorder %v7571_v56, 0.0  ;;  %v4100_v61 = vmul.f32 0.2, %v7571_v56  ;;  %vm3714_vm1 = vcmp.ge.f32.partialorder %v2078_v59, 0.0 }
 0x14f   :  { %v4228_v62 = vsel %vm3716_vm13, %v7443_v55, %v3972_v58  ;;  %v3970_v63 = vmul.f32 0.2, %v2078_v59  ;;  %vm3842_vm2 = vcmp.ge.f32.partialorder %v2590_v60, 0.0  ;;  %v4098_v0 = vmul.f32 0.2, %v2590_v60 }
 0x150   :  { %v4225_v2 = vsel %vm3713_vm12, %v2075_v50, %v3969_v53  ;;  %v6622_v3 = vpack.c.bf16 %v4228_v62, %v4227_v57  ;;  %v4356_v4 = vsel %vm3844_vm15, %v7571_v56, %v4100_v61  ;;  %v4353_v5 = vsel %vm3841_vm14, %v2587_v51, %v4097_v54 }
 0x151   :  { %v6942_v6 = vpack.c.bf16 %v4356_v4, %v4355_v1  ;;  %v4226_v7 = vsel %vm3714_vm1, %v2078_v59, %v3970_v63  ;;  %v4354_v8 = vsel %vm3842_vm2, %v2590_v60, %v4098_v0  ;;  %v7446_v9 = vpop.f32.mrb[56].mxu0  ;;  %v7574_v10 = vpop.f32.mrb[56].mxu1 }
 0x152   :  { %7150 = vst [vmem:[%s8746_s2 + $0xd8] sm:$0xff] %v6622_v3   ;;  %v6617_v11 = vpack.c.bf16 %v4226_v7, %v4225_v2  ;;  %v6937_v12 = vpack.c.bf16 %v4354_v8, %v4353_v5  ;;  %vm3719_vm3 = vcmp.ge.f32.partialorder %v7446_v9, 0.0  ;;  %v3975_v13 = vmul.f32 0.2, %v7446_v9  ;;  %v2091_v14 = vpop.f32.mrb[57].mxu0  ;;  %v2603_v15 = vpop.f32.mrb[57].mxu1 }
 0x153   :  { %7214 = vst [vmem:[%s8746_s2 + $0x2d8] sm:$0xff] %v6942_v6   ;;  %vm3847_vm4 = vcmp.ge.f32.partialorder %v7574_v10, 0.0  ;;  %v4103_v16 = vmul.f32 0.2, %v7574_v10  ;;  %v3973_v17 = vmul.f32 0.2, %v2091_v14 }
 0x154   :  { %7149 = vst [vmem:[%s8746_s2 + $0xd0] sm:$0xff] %v6617_v11   ;;  %7213 = vst [vmem:[%s8746_s2 + $0x2d0] sm:$0xff] %v6937_v12   ;;  %v4101_v18 = vmul.f32 0.2, %v2603_v15  ;;  %v7447_v19 = vpop.f32.mrb[58].mxu0  ;;  %v7575_v20 = vpop.f32.mrb[58].mxu1  ;;  %v4231_v21 = vsel %vm3719_vm3, %v7446_v9, %v3975_v13 }
 0x155   :  { %vm3717_vm5 = vcmp.ge.f32.partialorder %v2091_v14, 0.0  ;;  %vm3720_vm6 = vcmp.ge.f32.partialorder %v7447_v19, 0.0  ;;  %v3976_v22 = vmul.f32 0.2, %v7447_v19  ;;  %v2094_v23 = vpop.f32.mrb[59].mxu0  ;;  %v2606_v24 = vpop.f32.mrb[59].mxu1  ;;  %v4359_v29 = vsel %vm3847_vm4, %v7574_v10, %v4103_v16 }
 0x156   :  { %vm3845_vm7 = vcmp.ge.f32.partialorder %v2603_v15, 0.0  ;;  %vm3848_vm8 = vcmp.ge.f32.partialorder %v7575_v20, 0.0  ;;  %v4104_v25 = vmul.f32 0.2, %v7575_v20  ;;  %vm3718_vm9 = vcmp.ge.f32.partialorder %v2094_v23, 0.0 }
 0x157   :  { %v4232_v26 = vsel %vm3720_vm6, %v7447_v19, %v3976_v22  ;;  %v3974_v27 = vmul.f32 0.2, %v2094_v23  ;;  %vm3846_vm10 = vcmp.ge.f32.partialorder %v2606_v24, 0.0  ;;  %v4102_v28 = vmul.f32 0.2, %v2606_v24 }
 0x158   :  { %v4229_v30 = vsel %vm3717_vm5, %v2091_v14, %v3973_v17  ;;  %v6632_v31 = vpack.c.bf16 %v4232_v26, %v4231_v21  ;;  %v4360_v32 = vsel %vm3848_vm8, %v7575_v20, %v4104_v25  ;;  %v4357_v33 = vsel %vm3845_vm7, %v2603_v15, %v4101_v18 }
 0x159   :  { %v6952_v34 = vpack.c.bf16 %v4360_v32, %v4359_v29  ;;  %v4230_v35 = vsel %vm3718_vm9, %v2094_v23, %v3974_v27  ;;  %v4358_v36 = vsel %vm3846_vm10, %v2606_v24, %v4102_v28  ;;  %v7450_v37 = vpop.f32.mrb[60].mxu0  ;;  %v7578_v38 = vpop.f32.mrb[60].mxu1 }
 0x15a   :  { %7152 = vst [vmem:[%s8746_s2 + $0xe8] sm:$0xff] %v6632_v31   ;;  %v6627_v39 = vpack.c.bf16 %v4230_v35, %v4229_v30  ;;  %v6947_v40 = vpack.c.bf16 %v4358_v36, %v4357_v33  ;;  %vm3723_vm0 = vcmp.ge.f32.partialorder %v7450_v37, 0.0  ;;  %v3979_v41 = vmul.f32 0.2, %v7450_v37  ;;  %v2107_v42 = vpop.f32.mrb[61].mxu0  ;;  %v2619_v43 = vpop.f32.mrb[61].mxu1 }
 0x15b   :  { %7216 = vst [vmem:[%s8746_s2 + $0x2e8] sm:$0xff] %v6952_v34   ;;  %vm3851_vm11 = vcmp.ge.f32.partialorder %v7578_v38, 0.0  ;;  %v4107_v44 = vmul.f32 0.2, %v7578_v38  ;;  %v3977_v45 = vmul.f32 0.2, %v2107_v42 }
 0x15c   :  { %7151 = vst [vmem:[%s8746_s2 + $0xe0] sm:$0xff] %v6627_v39   ;;  %7215 = vst [vmem:[%s8746_s2 + $0x2e0] sm:$0xff] %v6947_v40   ;;  %v4105_v46 = vmul.f32 0.2, %v2619_v43  ;;  %v7451_v47 = vpop.f32.mrb[62].mxu0  ;;  %v7579_v48 = vpop.f32.mrb[62].mxu1  ;;  %v4235_v49 = vsel %vm3723_vm0, %v7450_v37, %v3979_v41 }
 0x15d   :  { %vm3721_vm12 = vcmp.ge.f32.partialorder %v2107_v42, 0.0  ;;  %vm3724_vm13 = vcmp.ge.f32.partialorder %v7451_v47, 0.0  ;;  %v3980_v50 = vmul.f32 0.2, %v7451_v47  ;;  %v2110_v51 = vpop.f32.mrb[63].mxu0  ;;  %v2622_v52 = vpop.f32.mrb[63].mxu1  ;;  %v4363_v57 = vsel %vm3851_vm11, %v7578_v38, %v4107_v44 }
 0x15e   :  { %vm3849_vm14 = vcmp.ge.f32.partialorder %v2619_v43, 0.0  ;;  %vm3852_vm15 = vcmp.ge.f32.partialorder %v7579_v48, 0.0  ;;  %v4108_v53 = vmul.f32 0.2, %v7579_v48  ;;  %vm3722_vm1 = vcmp.ge.f32.partialorder %v2110_v51, 0.0 }
 0x15f   :  { %v4236_v54 = vsel %vm3724_vm13, %v7451_v47, %v3980_v50  ;;  %v3978_v55 = vmul.f32 0.2, %v2110_v51  ;;  %vm3850_vm2 = vcmp.ge.f32.partialorder %v2622_v52, 0.0  ;;  %v4106_v56 = vmul.f32 0.2, %v2622_v52 }
 0x160   :  { %v4233_v58 = vsel %vm3721_vm12, %v2107_v42, %v3977_v45  ;;  %v6642_v59 = vpack.c.bf16 %v4236_v54, %v4235_v49  ;;  %v4364_v60 = vsel %vm3852_vm15, %v7579_v48, %v4108_v53  ;;  %v4361_v61 = vsel %vm3849_vm14, %v2619_v43, %v4105_v46 }
 0x161   :  { %v6962_v62 = vpack.c.bf16 %v4364_v60, %v4363_v57  ;;  %v4234_v63 = vsel %vm3722_vm1, %v2110_v51, %v3978_v55  ;;  %v4362_v0 = vsel %vm3850_vm2, %v2622_v52, %v4106_v56  ;;  %v7454_v1 = vpop.f32.mrb[64].mxu0  ;;  %v7582_v2 = vpop.f32.mrb[64].mxu1 }
 0x162   :  { %7154 = vst [vmem:[%s8746_s2 + $0xf8] sm:$0xff] %v6642_v59   ;;  %v6637_v3 = vpack.c.bf16 %v4234_v63, %v4233_v58  ;;  %v6957_v4 = vpack.c.bf16 %v4362_v0, %v4361_v61  ;;  %vm3727_vm3 = vcmp.ge.f32.partialorder %v7454_v1, 0.0  ;;  %v3983_v5 = vmul.f32 0.2, %v7454_v1  ;;  %v2123_v6 = vpop.f32.mrb[65].mxu0  ;;  %v2635_v7 = vpop.f32.mrb[65].mxu1 }
 0x163   :  { %7218 = vst [vmem:[%s8746_s2 + $0x2f8] sm:$0xff] %v6962_v62   ;;  %vm3855_vm4 = vcmp.ge.f32.partialorder %v7582_v2, 0.0  ;;  %v4111_v8 = vmul.f32 0.2, %v7582_v2  ;;  %v3981_v9 = vmul.f32 0.2, %v2123_v6 }
 0x164   :  { %7153 = vst [vmem:[%s8746_s2 + $0xf0] sm:$0xff] %v6637_v3   ;;  %7217 = vst [vmem:[%s8746_s2 + $0x2f0] sm:$0xff] %v6957_v4   ;;  %v4109_v10 = vmul.f32 0.2, %v2635_v7  ;;  %v7455_v11 = vpop.f32.mrb[66].mxu0  ;;  %v7583_v12 = vpop.f32.mrb[66].mxu1  ;;  %v4239_v13 = vsel %vm3727_vm3, %v7454_v1, %v3983_v5 }
 0x165   :  { %vm3725_vm5 = vcmp.ge.f32.partialorder %v2123_v6, 0.0  ;;  %vm3728_vm6 = vcmp.ge.f32.partialorder %v7455_v11, 0.0  ;;  %v3984_v14 = vmul.f32 0.2, %v7455_v11  ;;  %v2126_v15 = vpop.f32.mrb[67].mxu0  ;;  %v2638_v16 = vpop.f32.mrb[67].mxu1  ;;  %v4367_v21 = vsel %vm3855_vm4, %v7582_v2, %v4111_v8 }
 0x166   :  { %vm3853_vm7 = vcmp.ge.f32.partialorder %v2635_v7, 0.0  ;;  %vm3856_vm8 = vcmp.ge.f32.partialorder %v7583_v12, 0.0  ;;  %v4112_v17 = vmul.f32 0.2, %v7583_v12  ;;  %vm3726_vm9 = vcmp.ge.f32.partialorder %v2126_v15, 0.0 }
 0x167   :  { %v4240_v18 = vsel %vm3728_vm6, %v7455_v11, %v3984_v14  ;;  %v3982_v19 = vmul.f32 0.2, %v2126_v15  ;;  %vm3854_vm10 = vcmp.ge.f32.partialorder %v2638_v16, 0.0  ;;  %v4110_v20 = vmul.f32 0.2, %v2638_v16 }
 0x168   :  { %v4237_v22 = vsel %vm3725_vm5, %v2123_v6, %v3981_v9  ;;  %v6652_v23 = vpack.c.bf16 %v4240_v18, %v4239_v13  ;;  %v4368_v24 = vsel %vm3856_vm8, %v7583_v12, %v4112_v17  ;;  %v4365_v25 = vsel %vm3853_vm7, %v2635_v7, %v4109_v10 }
 0x169   :  { %v6972_v26 = vpack.c.bf16 %v4368_v24, %v4367_v21  ;;  %v4238_v27 = vsel %vm3726_vm9, %v2126_v15, %v3982_v19  ;;  %v4366_v28 = vsel %vm3854_vm10, %v2638_v16, %v4110_v20  ;;  %v7458_v29 = vpop.f32.mrb[68].mxu0  ;;  %v7586_v30 = vpop.f32.mrb[68].mxu1 }
 0x16a   :  { %7156 = vst [vmem:[%s8746_s2 + $0x108] sm:$0xff] %v6652_v23   ;;  %v6647_v31 = vpack.c.bf16 %v4238_v27, %v4237_v22  ;;  %v6967_v32 = vpack.c.bf16 %v4366_v28, %v4365_v25  ;;  %vm3731_vm0 = vcmp.ge.f32.partialorder %v7458_v29, 0.0  ;;  %v3987_v33 = vmul.f32 0.2, %v7458_v29  ;;  %v2139_v34 = vpop.f32.mrb[69].mxu0  ;;  %v2651_v35 = vpop.f32.mrb[69].mxu1 }
 0x16b   :  { %7220 = vst [vmem:[%s8746_s2 + $0x308] sm:$0xff] %v6972_v26   ;;  %vm3859_vm11 = vcmp.ge.f32.partialorder %v7586_v30, 0.0  ;;  %v4115_v36 = vmul.f32 0.2, %v7586_v30  ;;  %v3985_v37 = vmul.f32 0.2, %v2139_v34 }
 0x16c   :  { %7155 = vst [vmem:[%s8746_s2 + $0x100] sm:$0xff] %v6647_v31   ;;  %7219 = vst [vmem:[%s8746_s2 + $0x300] sm:$0xff] %v6967_v32   ;;  %v4113_v38 = vmul.f32 0.2, %v2651_v35  ;;  %v7459_v39 = vpop.f32.mrb[70].mxu0  ;;  %v7587_v40 = vpop.f32.mrb[70].mxu1  ;;  %v4243_v41 = vsel %vm3731_vm0, %v7458_v29, %v3987_v33 }
 0x16d   :  { %vm3729_vm12 = vcmp.ge.f32.partialorder %v2139_v34, 0.0  ;;  %vm3732_vm13 = vcmp.ge.f32.partialorder %v7459_v39, 0.0  ;;  %v3988_v42 = vmul.f32 0.2, %v7459_v39  ;;  %v2142_v43 = vpop.f32.mrb[71].mxu0  ;;  %v2654_v44 = vpop.f32.mrb[71].mxu1  ;;  %v4371_v49 = vsel %vm3859_vm11, %v7586_v30, %v4115_v36 }
 0x16e   :  { %vm3857_vm14 = vcmp.ge.f32.partialorder %v2651_v35, 0.0  ;;  %vm3860_vm15 = vcmp.ge.f32.partialorder %v7587_v40, 0.0  ;;  %v4116_v45 = vmul.f32 0.2, %v7587_v40  ;;  %vm3730_vm1 = vcmp.ge.f32.partialorder %v2142_v43, 0.0 }
 0x16f   :  { %v4244_v46 = vsel %vm3732_vm13, %v7459_v39, %v3988_v42  ;;  %v3986_v47 = vmul.f32 0.2, %v2142_v43  ;;  %vm3858_vm2 = vcmp.ge.f32.partialorder %v2654_v44, 0.0  ;;  %v4114_v48 = vmul.f32 0.2, %v2654_v44 }
 0x170   :  { %v4241_v50 = vsel %vm3729_vm12, %v2139_v34, %v3985_v37  ;;  %v6662_v51 = vpack.c.bf16 %v4244_v46, %v4243_v41  ;;  %v4372_v52 = vsel %vm3860_vm15, %v7587_v40, %v4116_v45  ;;  %v4369_v53 = vsel %vm3857_vm14, %v2651_v35, %v4113_v38 }
 0x171   :  { %v6982_v54 = vpack.c.bf16 %v4372_v52, %v4371_v49  ;;  %v4242_v55 = vsel %vm3730_vm1, %v2142_v43, %v3986_v47  ;;  %v4370_v56 = vsel %vm3858_vm2, %v2654_v44, %v4114_v48  ;;  %v7462_v57 = vpop.f32.mrb[72].mxu0  ;;  %v7590_v58 = vpop.f32.mrb[72].mxu1 }
 0x172   :  { %7158 = vst [vmem:[%s8746_s2 + $0x118] sm:$0xff] %v6662_v51   ;;  %v6657_v59 = vpack.c.bf16 %v4242_v55, %v4241_v50  ;;  %v6977_v60 = vpack.c.bf16 %v4370_v56, %v4369_v53  ;;  %vm3735_vm3 = vcmp.ge.f32.partialorder %v7462_v57, 0.0  ;;  %v3991_v61 = vmul.f32 0.2, %v7462_v57  ;;  %v2155_v62 = vpop.f32.mrb[73].mxu0  ;;  %v2667_v63 = vpop.f32.mrb[73].mxu1 }
 0x173   :  { %7222 = vst [vmem:[%s8746_s2 + $0x318] sm:$0xff] %v6982_v54   ;;  %vm3863_vm4 = vcmp.ge.f32.partialorder %v7590_v58, 0.0  ;;  %v4119_v0 = vmul.f32 0.2, %v7590_v58  ;;  %v3989_v1 = vmul.f32 0.2, %v2155_v62 }
 0x174   :  { %7157 = vst [vmem:[%s8746_s2 + $0x110] sm:$0xff] %v6657_v59   ;;  %7221 = vst [vmem:[%s8746_s2 + $0x310] sm:$0xff] %v6977_v60   ;;  %v4117_v2 = vmul.f32 0.2, %v2667_v63  ;;  %v7463_v3 = vpop.f32.mrb[74].mxu0  ;;  %v7591_v4 = vpop.f32.mrb[74].mxu1  ;;  %v4247_v5 = vsel %vm3735_vm3, %v7462_v57, %v3991_v61 }
 0x175   :  { %vm3733_vm5 = vcmp.ge.f32.partialorder %v2155_v62, 0.0  ;;  %vm3736_vm6 = vcmp.ge.f32.partialorder %v7463_v3, 0.0  ;;  %v3992_v6 = vmul.f32 0.2, %v7463_v3  ;;  %v2158_v7 = vpop.f32.mrb[75].mxu0  ;;  %v2670_v8 = vpop.f32.mrb[75].mxu1  ;;  %v4375_v13 = vsel %vm3863_vm4, %v7590_v58, %v4119_v0 }
 0x176   :  { %vm3861_vm7 = vcmp.ge.f32.partialorder %v2667_v63, 0.0  ;;  %vm3864_vm8 = vcmp.ge.f32.partialorder %v7591_v4, 0.0  ;;  %v4120_v9 = vmul.f32 0.2, %v7591_v4  ;;  %vm3734_vm9 = vcmp.ge.f32.partialorder %v2158_v7, 0.0 }
 0x177   :  { %v4248_v10 = vsel %vm3736_vm6, %v7463_v3, %v3992_v6  ;;  %v3990_v11 = vmul.f32 0.2, %v2158_v7  ;;  %vm3862_vm10 = vcmp.ge.f32.partialorder %v2670_v8, 0.0  ;;  %v4118_v12 = vmul.f32 0.2, %v2670_v8 }
 0x178   :  { %v4245_v14 = vsel %vm3733_vm5, %v2155_v62, %v3989_v1  ;;  %v6672_v15 = vpack.c.bf16 %v4248_v10, %v4247_v5  ;;  %v4376_v16 = vsel %vm3864_vm8, %v7591_v4, %v4120_v9  ;;  %v4373_v17 = vsel %vm3861_vm7, %v2667_v63, %v4117_v2 }
 0x179   :  { %v6992_v18 = vpack.c.bf16 %v4376_v16, %v4375_v13  ;;  %v4246_v19 = vsel %vm3734_vm9, %v2158_v7, %v3990_v11  ;;  %v4374_v20 = vsel %vm3862_vm10, %v2670_v8, %v4118_v12  ;;  %v7466_v21 = vpop.f32.mrb[76].mxu0  ;;  %v7594_v22 = vpop.f32.mrb[76].mxu1 }
 0x17a   :  { %7160 = vst [vmem:[%s8746_s2 + $0x128] sm:$0xff] %v6672_v15   ;;  %v6667_v23 = vpack.c.bf16 %v4246_v19, %v4245_v14  ;;  %v6987_v24 = vpack.c.bf16 %v4374_v20, %v4373_v17  ;;  %vm3739_vm0 = vcmp.ge.f32.partialorder %v7466_v21, 0.0  ;;  %v3995_v25 = vmul.f32 0.2, %v7466_v21  ;;  %v2171_v26 = vpop.f32.mrb[77].mxu0  ;;  %v2683_v27 = vpop.f32.mrb[77].mxu1 }
 0x17b   :  { %7224 = vst [vmem:[%s8746_s2 + $0x328] sm:$0xff] %v6992_v18   ;;  %vm3867_vm11 = vcmp.ge.f32.partialorder %v7594_v22, 0.0  ;;  %v4123_v28 = vmul.f32 0.2, %v7594_v22  ;;  %v3993_v29 = vmul.f32 0.2, %v2171_v26 }
 0x17c   :  { %7159 = vst [vmem:[%s8746_s2 + $0x120] sm:$0xff] %v6667_v23   ;;  %7223 = vst [vmem:[%s8746_s2 + $0x320] sm:$0xff] %v6987_v24   ;;  %v4121_v30 = vmul.f32 0.2, %v2683_v27  ;;  %v7467_v31 = vpop.f32.mrb[78].mxu0  ;;  %v7595_v32 = vpop.f32.mrb[78].mxu1  ;;  %v4251_v33 = vsel %vm3739_vm0, %v7466_v21, %v3995_v25 }
 0x17d   :  { %vm3737_vm12 = vcmp.ge.f32.partialorder %v2171_v26, 0.0  ;;  %vm3740_vm13 = vcmp.ge.f32.partialorder %v7467_v31, 0.0  ;;  %v3996_v34 = vmul.f32 0.2, %v7467_v31  ;;  %v2174_v35 = vpop.f32.mrb[79].mxu0  ;;  %v2686_v36 = vpop.f32.mrb[79].mxu1  ;;  %v4379_v41 = vsel %vm3867_vm11, %v7594_v22, %v4123_v28 }
 0x17e   :  { %vm3865_vm14 = vcmp.ge.f32.partialorder %v2683_v27, 0.0  ;;  %vm3868_vm15 = vcmp.ge.f32.partialorder %v7595_v32, 0.0  ;;  %v4124_v37 = vmul.f32 0.2, %v7595_v32  ;;  %vm3738_vm1 = vcmp.ge.f32.partialorder %v2174_v35, 0.0 }
 0x17f   :  { %v4252_v38 = vsel %vm3740_vm13, %v7467_v31, %v3996_v34  ;;  %v3994_v39 = vmul.f32 0.2, %v2174_v35  ;;  %vm3866_vm2 = vcmp.ge.f32.partialorder %v2686_v36, 0.0  ;;  %v4122_v40 = vmul.f32 0.2, %v2686_v36 }
 0x180   :  { %v4249_v42 = vsel %vm3737_vm12, %v2171_v26, %v3993_v29  ;;  %v6682_v43 = vpack.c.bf16 %v4252_v38, %v4251_v33  ;;  %v4380_v44 = vsel %vm3868_vm15, %v7595_v32, %v4124_v37  ;;  %v4377_v45 = vsel %vm3865_vm14, %v2683_v27, %v4121_v30 }
 0x181   :  { %v7002_v46 = vpack.c.bf16 %v4380_v44, %v4379_v41  ;;  %v4250_v47 = vsel %vm3738_vm1, %v2174_v35, %v3994_v39  ;;  %v4378_v48 = vsel %vm3866_vm2, %v2686_v36, %v4122_v40  ;;  %v7470_v49 = vpop.f32.mrb[80].mxu0  ;;  %v7598_v50 = vpop.f32.mrb[80].mxu1 }
 0x182   :  { %7162 = vst [vmem:[%s8746_s2 + $0x138] sm:$0xff] %v6682_v43   ;;  %v6677_v51 = vpack.c.bf16 %v4250_v47, %v4249_v42  ;;  %v6997_v52 = vpack.c.bf16 %v4378_v48, %v4377_v45  ;;  %vm3743_vm3 = vcmp.ge.f32.partialorder %v7470_v49, 0.0  ;;  %v3999_v53 = vmul.f32 0.2, %v7470_v49  ;;  %v2187_v54 = vpop.f32.mrb[81].mxu0  ;;  %v2699_v55 = vpop.f32.mrb[81].mxu1 }
 0x183   :  { %7226 = vst [vmem:[%s8746_s2 + $0x338] sm:$0xff] %v7002_v46   ;;  %vm3871_vm4 = vcmp.ge.f32.partialorder %v7598_v50, 0.0  ;;  %v4127_v56 = vmul.f32 0.2, %v7598_v50  ;;  %v3997_v57 = vmul.f32 0.2, %v2187_v54 }
 0x184   :  { %7161 = vst [vmem:[%s8746_s2 + $0x130] sm:$0xff] %v6677_v51   ;;  %7225 = vst [vmem:[%s8746_s2 + $0x330] sm:$0xff] %v6997_v52   ;;  %v4125_v58 = vmul.f32 0.2, %v2699_v55  ;;  %v7471_v59 = vpop.f32.mrb[82].mxu0  ;;  %v7599_v60 = vpop.f32.mrb[82].mxu1  ;;  %v4255_v61 = vsel %vm3743_vm3, %v7470_v49, %v3999_v53 }
 0x185   :  { %vm3741_vm5 = vcmp.ge.f32.partialorder %v2187_v54, 0.0  ;;  %vm3744_vm6 = vcmp.ge.f32.partialorder %v7471_v59, 0.0  ;;  %v4000_v62 = vmul.f32 0.2, %v7471_v59  ;;  %v2190_v63 = vpop.f32.mrb[83].mxu0  ;;  %v2702_v0 = vpop.f32.mrb[83].mxu1  ;;  %v4383_v5 = vsel %vm3871_vm4, %v7598_v50, %v4127_v56 }
 0x186   :  { %vm3869_vm7 = vcmp.ge.f32.partialorder %v2699_v55, 0.0  ;;  %vm3872_vm8 = vcmp.ge.f32.partialorder %v7599_v60, 0.0  ;;  %v4128_v1 = vmul.f32 0.2, %v7599_v60  ;;  %vm3742_vm9 = vcmp.ge.f32.partialorder %v2190_v63, 0.0 }
 0x187   :  { %v4256_v2 = vsel %vm3744_vm6, %v7471_v59, %v4000_v62  ;;  %v3998_v3 = vmul.f32 0.2, %v2190_v63  ;;  %vm3870_vm10 = vcmp.ge.f32.partialorder %v2702_v0, 0.0  ;;  %v4126_v4 = vmul.f32 0.2, %v2702_v0 }
 0x188   :  { %v4253_v6 = vsel %vm3741_vm5, %v2187_v54, %v3997_v57  ;;  %v6692_v7 = vpack.c.bf16 %v4256_v2, %v4255_v61  ;;  %v4384_v8 = vsel %vm3872_vm8, %v7599_v60, %v4128_v1  ;;  %v4381_v9 = vsel %vm3869_vm7, %v2699_v55, %v4125_v58 }
 0x189   :  { %v7012_v10 = vpack.c.bf16 %v4384_v8, %v4383_v5  ;;  %v4254_v11 = vsel %vm3742_vm9, %v2190_v63, %v3998_v3  ;;  %v4382_v12 = vsel %vm3870_vm10, %v2702_v0, %v4126_v4  ;;  %v7474_v13 = vpop.f32.mrb[84].mxu0  ;;  %v7602_v14 = vpop.f32.mrb[84].mxu1 }
 0x18a   :  { %7164 = vst [vmem:[%s8746_s2 + $0x148] sm:$0xff] %v6692_v7   ;;  %v6687_v15 = vpack.c.bf16 %v4254_v11, %v4253_v6  ;;  %v7007_v16 = vpack.c.bf16 %v4382_v12, %v4381_v9  ;;  %vm3747_vm0 = vcmp.ge.f32.partialorder %v7474_v13, 0.0  ;;  %v4003_v17 = vmul.f32 0.2, %v7474_v13  ;;  %v2203_v18 = vpop.f32.mrb[85].mxu0  ;;  %v2715_v19 = vpop.f32.mrb[85].mxu1 }
 0x18b   :  { %7228 = vst [vmem:[%s8746_s2 + $0x348] sm:$0xff] %v7012_v10   ;;  %vm3875_vm11 = vcmp.ge.f32.partialorder %v7602_v14, 0.0  ;;  %v4131_v20 = vmul.f32 0.2, %v7602_v14  ;;  %v4001_v21 = vmul.f32 0.2, %v2203_v18 }
 0x18c   :  { %7163 = vst [vmem:[%s8746_s2 + $0x140] sm:$0xff] %v6687_v15   ;;  %7227 = vst [vmem:[%s8746_s2 + $0x340] sm:$0xff] %v7007_v16   ;;  %v4129_v22 = vmul.f32 0.2, %v2715_v19  ;;  %v7475_v23 = vpop.f32.mrb[86].mxu0  ;;  %v7603_v24 = vpop.f32.mrb[86].mxu1  ;;  %v4259_v25 = vsel %vm3747_vm0, %v7474_v13, %v4003_v17 }
 0x18d   :  { %vm3745_vm12 = vcmp.ge.f32.partialorder %v2203_v18, 0.0  ;;  %vm3748_vm13 = vcmp.ge.f32.partialorder %v7475_v23, 0.0  ;;  %v4004_v26 = vmul.f32 0.2, %v7475_v23  ;;  %v2206_v27 = vpop.f32.mrb[87].mxu0  ;;  %v2718_v28 = vpop.f32.mrb[87].mxu1  ;;  %v4387_v33 = vsel %vm3875_vm11, %v7602_v14, %v4131_v20 }
 0x18e   :  { %vm3873_vm14 = vcmp.ge.f32.partialorder %v2715_v19, 0.0  ;;  %vm3876_vm15 = vcmp.ge.f32.partialorder %v7603_v24, 0.0  ;;  %v4132_v29 = vmul.f32 0.2, %v7603_v24  ;;  %vm3746_vm1 = vcmp.ge.f32.partialorder %v2206_v27, 0.0 }
 0x18f   :  { %v4260_v30 = vsel %vm3748_vm13, %v7475_v23, %v4004_v26  ;;  %v4002_v31 = vmul.f32 0.2, %v2206_v27  ;;  %vm3874_vm2 = vcmp.ge.f32.partialorder %v2718_v28, 0.0  ;;  %v4130_v32 = vmul.f32 0.2, %v2718_v28 }
 0x190   :  { %v4257_v34 = vsel %vm3745_vm12, %v2203_v18, %v4001_v21  ;;  %v6702_v35 = vpack.c.bf16 %v4260_v30, %v4259_v25  ;;  %v4388_v36 = vsel %vm3876_vm15, %v7603_v24, %v4132_v29  ;;  %v4385_v37 = vsel %vm3873_vm14, %v2715_v19, %v4129_v22 }
 0x191   :  { %v7022_v38 = vpack.c.bf16 %v4388_v36, %v4387_v33  ;;  %v4258_v39 = vsel %vm3746_vm1, %v2206_v27, %v4002_v31  ;;  %v4386_v40 = vsel %vm3874_vm2, %v2718_v28, %v4130_v32  ;;  %v7478_v41 = vpop.f32.mrb[88].mxu0  ;;  %v7606_v42 = vpop.f32.mrb[88].mxu1 }
 0x192   :  { %7166 = vst [vmem:[%s8746_s2 + $0x158] sm:$0xff] %v6702_v35   ;;  %v6697_v43 = vpack.c.bf16 %v4258_v39, %v4257_v34  ;;  %v7017_v44 = vpack.c.bf16 %v4386_v40, %v4385_v37  ;;  %vm3751_vm3 = vcmp.ge.f32.partialorder %v7478_v41, 0.0  ;;  %v4007_v45 = vmul.f32 0.2, %v7478_v41  ;;  %v2219_v46 = vpop.f32.mrb[89].mxu0  ;;  %v2731_v47 = vpop.f32.mrb[89].mxu1 }
 0x193   :  { %7230 = vst [vmem:[%s8746_s2 + $0x358] sm:$0xff] %v7022_v38   ;;  %vm3879_vm4 = vcmp.ge.f32.partialorder %v7606_v42, 0.0  ;;  %v4135_v48 = vmul.f32 0.2, %v7606_v42  ;;  %v4005_v49 = vmul.f32 0.2, %v2219_v46 }
 0x194   :  { %7165 = vst [vmem:[%s8746_s2 + $0x150] sm:$0xff] %v6697_v43   ;;  %7229 = vst [vmem:[%s8746_s2 + $0x350] sm:$0xff] %v7017_v44   ;;  %v4133_v50 = vmul.f32 0.2, %v2731_v47  ;;  %v7479_v51 = vpop.f32.mrb[90].mxu0  ;;  %v7607_v52 = vpop.f32.mrb[90].mxu1  ;;  %v4263_v53 = vsel %vm3751_vm3, %v7478_v41, %v4007_v45 }
 0x195   :  { %vm3749_vm5 = vcmp.ge.f32.partialorder %v2219_v46, 0.0  ;;  %vm3752_vm6 = vcmp.ge.f32.partialorder %v7479_v51, 0.0  ;;  %v4008_v54 = vmul.f32 0.2, %v7479_v51  ;;  %v2222_v55 = vpop.f32.mrb[91].mxu0  ;;  %v2734_v56 = vpop.f32.mrb[91].mxu1  ;;  %v4391_v61 = vsel %vm3879_vm4, %v7606_v42, %v4135_v48 }
 0x196   :  { %vm3877_vm7 = vcmp.ge.f32.partialorder %v2731_v47, 0.0  ;;  %vm3880_vm8 = vcmp.ge.f32.partialorder %v7607_v52, 0.0  ;;  %v4136_v57 = vmul.f32 0.2, %v7607_v52  ;;  %vm3750_vm9 = vcmp.ge.f32.partialorder %v2222_v55, 0.0 }
 0x197   :  { %v4264_v58 = vsel %vm3752_vm6, %v7479_v51, %v4008_v54  ;;  %v4006_v59 = vmul.f32 0.2, %v2222_v55  ;;  %vm3878_vm10 = vcmp.ge.f32.partialorder %v2734_v56, 0.0  ;;  %v4134_v60 = vmul.f32 0.2, %v2734_v56 }
 0x198   :  { %v4261_v62 = vsel %vm3749_vm5, %v2219_v46, %v4005_v49  ;;  %v6712_v63 = vpack.c.bf16 %v4264_v58, %v4263_v53  ;;  %v4392_v0 = vsel %vm3880_vm8, %v7607_v52, %v4136_v57  ;;  %v4389_v1 = vsel %vm3877_vm7, %v2731_v47, %v4133_v50 }
 0x199   :  { %v7032_v2 = vpack.c.bf16 %v4392_v0, %v4391_v61  ;;  %v4262_v3 = vsel %vm3750_vm9, %v2222_v55, %v4006_v59  ;;  %v4390_v4 = vsel %vm3878_vm10, %v2734_v56, %v4134_v60  ;;  %v7482_v5 = vpop.f32.mrb[92].mxu0  ;;  %v7610_v6 = vpop.f32.mrb[92].mxu1 }
 0x19a   :  { %7168 = vst [vmem:[%s8746_s2 + $0x168] sm:$0xff] %v6712_v63   ;;  %v6707_v7 = vpack.c.bf16 %v4262_v3, %v4261_v62  ;;  %v7027_v8 = vpack.c.bf16 %v4390_v4, %v4389_v1  ;;  %vm3755_vm0 = vcmp.ge.f32.partialorder %v7482_v5, 0.0  ;;  %v4011_v9 = vmul.f32 0.2, %v7482_v5  ;;  %v2235_v10 = vpop.f32.mrb[93].mxu0  ;;  %v2747_v11 = vpop.f32.mrb[93].mxu1 }
 0x19b   :  { %7232 = vst [vmem:[%s8746_s2 + $0x368] sm:$0xff] %v7032_v2   ;;  %vm3883_vm11 = vcmp.ge.f32.partialorder %v7610_v6, 0.0  ;;  %v4139_v12 = vmul.f32 0.2, %v7610_v6  ;;  %v4009_v13 = vmul.f32 0.2, %v2235_v10 }
 0x19c   :  { %7167 = vst [vmem:[%s8746_s2 + $0x160] sm:$0xff] %v6707_v7   ;;  %7231 = vst [vmem:[%s8746_s2 + $0x360] sm:$0xff] %v7027_v8   ;;  %v4137_v14 = vmul.f32 0.2, %v2747_v11  ;;  %v7483_v15 = vpop.f32.mrb[94].mxu0  ;;  %v7611_v16 = vpop.f32.mrb[94].mxu1  ;;  %v4267_v17 = vsel %vm3755_vm0, %v7482_v5, %v4011_v9 }
 0x19d   :  { %vm3753_vm12 = vcmp.ge.f32.partialorder %v2235_v10, 0.0  ;;  %vm3756_vm13 = vcmp.ge.f32.partialorder %v7483_v15, 0.0  ;;  %v4012_v18 = vmul.f32 0.2, %v7483_v15  ;;  %v2238_v19 = vpop.f32.mrb[95].mxu0  ;;  %v2750_v20 = vpop.f32.mrb[95].mxu1  ;;  %v4395_v25 = vsel %vm3883_vm11, %v7610_v6, %v4139_v12 }
 0x19e   :  { %vm3881_vm14 = vcmp.ge.f32.partialorder %v2747_v11, 0.0  ;;  %vm3884_vm15 = vcmp.ge.f32.partialorder %v7611_v16, 0.0  ;;  %v4140_v21 = vmul.f32 0.2, %v7611_v16  ;;  %vm3754_vm1 = vcmp.ge.f32.partialorder %v2238_v19, 0.0 }
 0x19f   :  { %v4268_v22 = vsel %vm3756_vm13, %v7483_v15, %v4012_v18  ;;  %v4010_v23 = vmul.f32 0.2, %v2238_v19  ;;  %vm3882_vm2 = vcmp.ge.f32.partialorder %v2750_v20, 0.0  ;;  %v4138_v24 = vmul.f32 0.2, %v2750_v20 }
 0x1a0   :  { %v4265_v26 = vsel %vm3753_vm12, %v2235_v10, %v4009_v13  ;;  %v6722_v27 = vpack.c.bf16 %v4268_v22, %v4267_v17  ;;  %v4396_v28 = vsel %vm3884_vm15, %v7611_v16, %v4140_v21  ;;  %v4393_v29 = vsel %vm3881_vm14, %v2747_v11, %v4137_v14 }
 0x1a1   :  { %v7042_v30 = vpack.c.bf16 %v4396_v28, %v4395_v25  ;;  %v4266_v31 = vsel %vm3754_vm1, %v2238_v19, %v4010_v23  ;;  %v4394_v32 = vsel %vm3882_vm2, %v2750_v20, %v4138_v24  ;;  %v7486_v33 = vpop.f32.mrb[96].mxu0  ;;  %v7614_v34 = vpop.f32.mrb[96].mxu1 }
 0x1a2   :  { %7170 = vst [vmem:[%s8746_s2 + $0x178] sm:$0xff] %v6722_v27   ;;  %v6717_v35 = vpack.c.bf16 %v4266_v31, %v4265_v26  ;;  %v7037_v36 = vpack.c.bf16 %v4394_v32, %v4393_v29  ;;  %vm3759_vm3 = vcmp.ge.f32.partialorder %v7486_v33, 0.0  ;;  %v4015_v37 = vmul.f32 0.2, %v7486_v33  ;;  %v2251_v38 = vpop.f32.mrb[97].mxu0  ;;  %v2763_v39 = vpop.f32.mrb[97].mxu1 }
 0x1a3   :  { %7234 = vst [vmem:[%s8746_s2 + $0x378] sm:$0xff] %v7042_v30   ;;  %vm3887_vm4 = vcmp.ge.f32.partialorder %v7614_v34, 0.0  ;;  %v4143_v40 = vmul.f32 0.2, %v7614_v34  ;;  %v4013_v41 = vmul.f32 0.2, %v2251_v38 }
 0x1a4   :  { %7169 = vst [vmem:[%s8746_s2 + $0x170] sm:$0xff] %v6717_v35   ;;  %7233 = vst [vmem:[%s8746_s2 + $0x370] sm:$0xff] %v7037_v36   ;;  %v4141_v42 = vmul.f32 0.2, %v2763_v39  ;;  %v7487_v43 = vpop.f32.mrb[98].mxu0  ;;  %v7615_v44 = vpop.f32.mrb[98].mxu1  ;;  %v4271_v45 = vsel %vm3759_vm3, %v7486_v33, %v4015_v37 }
 0x1a5   :  { %vm3757_vm5 = vcmp.ge.f32.partialorder %v2251_v38, 0.0  ;;  %vm3760_vm6 = vcmp.ge.f32.partialorder %v7487_v43, 0.0  ;;  %v4016_v46 = vmul.f32 0.2, %v7487_v43  ;;  %v2254_v47 = vpop.f32.mrb[99].mxu0  ;;  %v2766_v48 = vpop.f32.mrb[99].mxu1  ;;  %v4399_v53 = vsel %vm3887_vm4, %v7614_v34, %v4143_v40 }
 0x1a6   :  { %vm3885_vm7 = vcmp.ge.f32.partialorder %v2763_v39, 0.0  ;;  %vm3888_vm8 = vcmp.ge.f32.partialorder %v7615_v44, 0.0  ;;  %v4144_v49 = vmul.f32 0.2, %v7615_v44  ;;  %vm3758_vm9 = vcmp.ge.f32.partialorder %v2254_v47, 0.0 }
 0x1a7   :  { %v4272_v50 = vsel %vm3760_vm6, %v7487_v43, %v4016_v46  ;;  %v4014_v51 = vmul.f32 0.2, %v2254_v47  ;;  %vm3886_vm10 = vcmp.ge.f32.partialorder %v2766_v48, 0.0  ;;  %v4142_v52 = vmul.f32 0.2, %v2766_v48 }
 0x1a8   :  { %v4269_v54 = vsel %vm3757_vm5, %v2251_v38, %v4013_v41  ;;  %v6732_v55 = vpack.c.bf16 %v4272_v50, %v4271_v45  ;;  %v4400_v56 = vsel %vm3888_vm8, %v7615_v44, %v4144_v49  ;;  %v4397_v57 = vsel %vm3885_vm7, %v2763_v39, %v4141_v42 }
 0x1a9   :  { %v7052_v58 = vpack.c.bf16 %v4400_v56, %v4399_v53  ;;  %v4270_v59 = vsel %vm3758_vm9, %v2254_v47, %v4014_v51  ;;  %v4398_v60 = vsel %vm3886_vm10, %v2766_v48, %v4142_v52  ;;  %v7490_v61 = vpop.f32.mrb[100].mxu0  ;;  %v7618_v62 = vpop.f32.mrb[100].mxu1 }
 0x1aa   :  { %7172 = vst [vmem:[%s8746_s2 + $0x188] sm:$0xff] %v6732_v55   ;;  %v6727_v63 = vpack.c.bf16 %v4270_v59, %v4269_v54  ;;  %v7047_v0 = vpack.c.bf16 %v4398_v60, %v4397_v57  ;;  %vm3763_vm0 = vcmp.ge.f32.partialorder %v7490_v61, 0.0  ;;  %v4019_v1 = vmul.f32 0.2, %v7490_v61  ;;  %v2267_v2 = vpop.f32.mrb[101].mxu0  ;;  %v2779_v3 = vpop.f32.mrb[101].mxu1 }
 0x1ab   :  { %7236 = vst [vmem:[%s8746_s2 + $0x388] sm:$0xff] %v7052_v58   ;;  %vm3891_vm11 = vcmp.ge.f32.partialorder %v7618_v62, 0.0  ;;  %v4147_v4 = vmul.f32 0.2, %v7618_v62  ;;  %v4017_v5 = vmul.f32 0.2, %v2267_v2 }
 0x1ac   :  { %7171 = vst [vmem:[%s8746_s2 + $0x180] sm:$0xff] %v6727_v63   ;;  %7235 = vst [vmem:[%s8746_s2 + $0x380] sm:$0xff] %v7047_v0   ;;  %v4145_v6 = vmul.f32 0.2, %v2779_v3  ;;  %v7491_v7 = vpop.f32.mrb[102].mxu0  ;;  %v7619_v8 = vpop.f32.mrb[102].mxu1  ;;  %v4275_v9 = vsel %vm3763_vm0, %v7490_v61, %v4019_v1 }
 0x1ad   :  { %vm3761_vm12 = vcmp.ge.f32.partialorder %v2267_v2, 0.0  ;;  %vm3764_vm13 = vcmp.ge.f32.partialorder %v7491_v7, 0.0  ;;  %v4020_v10 = vmul.f32 0.2, %v7491_v7  ;;  %v2270_v11 = vpop.f32.mrb[103].mxu0  ;;  %v2782_v12 = vpop.f32.mrb[103].mxu1  ;;  %v4403_v17 = vsel %vm3891_vm11, %v7618_v62, %v4147_v4 }
 0x1ae   :  { %vm3889_vm14 = vcmp.ge.f32.partialorder %v2779_v3, 0.0  ;;  %vm3892_vm15 = vcmp.ge.f32.partialorder %v7619_v8, 0.0  ;;  %v4148_v13 = vmul.f32 0.2, %v7619_v8  ;;  %vm3762_vm1 = vcmp.ge.f32.partialorder %v2270_v11, 0.0 }
 0x1af   :  { %v4276_v14 = vsel %vm3764_vm13, %v7491_v7, %v4020_v10  ;;  %v4018_v15 = vmul.f32 0.2, %v2270_v11  ;;  %vm3890_vm2 = vcmp.ge.f32.partialorder %v2782_v12, 0.0  ;;  %v4146_v16 = vmul.f32 0.2, %v2782_v12 }
 0x1b0   :  { %v4273_v18 = vsel %vm3761_vm12, %v2267_v2, %v4017_v5  ;;  %v6742_v19 = vpack.c.bf16 %v4276_v14, %v4275_v9  ;;  %v4404_v20 = vsel %vm3892_vm15, %v7619_v8, %v4148_v13  ;;  %v4401_v21 = vsel %vm3889_vm14, %v2779_v3, %v4145_v6 }
 0x1b1   :  { %v7062_v22 = vpack.c.bf16 %v4404_v20, %v4403_v17  ;;  %v4274_v23 = vsel %vm3762_vm1, %v2270_v11, %v4018_v15  ;;  %v4402_v24 = vsel %vm3890_vm2, %v2782_v12, %v4146_v16  ;;  %v7494_v25 = vpop.f32.mrb[104].mxu0  ;;  %v7622_v26 = vpop.f32.mrb[104].mxu1 }
 0x1b2   :  { %7174 = vst [vmem:[%s8746_s2 + $0x198] sm:$0xff] %v6742_v19   ;;  %v6737_v27 = vpack.c.bf16 %v4274_v23, %v4273_v18  ;;  %v7057_v28 = vpack.c.bf16 %v4402_v24, %v4401_v21  ;;  %vm3767_vm3 = vcmp.ge.f32.partialorder %v7494_v25, 0.0  ;;  %v4023_v29 = vmul.f32 0.2, %v7494_v25  ;;  %v2283_v30 = vpop.f32.mrb[105].mxu0  ;;  %v2795_v31 = vpop.f32.mrb[105].mxu1 }
 0x1b3   :  { %7238 = vst [vmem:[%s8746_s2 + $0x398] sm:$0xff] %v7062_v22   ;;  %vm3895_vm4 = vcmp.ge.f32.partialorder %v7622_v26, 0.0  ;;  %v4151_v32 = vmul.f32 0.2, %v7622_v26  ;;  %v4021_v33 = vmul.f32 0.2, %v2283_v30 }
 0x1b4   :  { %7173 = vst [vmem:[%s8746_s2 + $0x190] sm:$0xff] %v6737_v27   ;;  %7237 = vst [vmem:[%s8746_s2 + $0x390] sm:$0xff] %v7057_v28   ;;  %v4149_v34 = vmul.f32 0.2, %v2795_v31  ;;  %v7495_v35 = vpop.f32.mrb[106].mxu0  ;;  %v7623_v36 = vpop.f32.mrb[106].mxu1  ;;  %v4279_v37 = vsel %vm3767_vm3, %v7494_v25, %v4023_v29 }
 0x1b5   :  { %vm3765_vm5 = vcmp.ge.f32.partialorder %v2283_v30, 0.0  ;;  %vm3768_vm6 = vcmp.ge.f32.partialorder %v7495_v35, 0.0  ;;  %v4024_v38 = vmul.f32 0.2, %v7495_v35  ;;  %v2286_v39 = vpop.f32.mrb[107].mxu0  ;;  %v2798_v40 = vpop.f32.mrb[107].mxu1  ;;  %v4407_v45 = vsel %vm3895_vm4, %v7622_v26, %v4151_v32 }
 0x1b6   :  { %vm3893_vm7 = vcmp.ge.f32.partialorder %v2795_v31, 0.0  ;;  %vm3896_vm8 = vcmp.ge.f32.partialorder %v7623_v36, 0.0  ;;  %v4152_v41 = vmul.f32 0.2, %v7623_v36  ;;  %vm3766_vm9 = vcmp.ge.f32.partialorder %v2286_v39, 0.0 }
 0x1b7   :  { %v4280_v42 = vsel %vm3768_vm6, %v7495_v35, %v4024_v38  ;;  %v4022_v43 = vmul.f32 0.2, %v2286_v39  ;;  %vm3894_vm10 = vcmp.ge.f32.partialorder %v2798_v40, 0.0  ;;  %v4150_v44 = vmul.f32 0.2, %v2798_v40 }
 0x1b8   :  { %v4277_v46 = vsel %vm3765_vm5, %v2283_v30, %v4021_v33  ;;  %v6752_v47 = vpack.c.bf16 %v4280_v42, %v4279_v37  ;;  %v4408_v48 = vsel %vm3896_vm8, %v7623_v36, %v4152_v41  ;;  %v4405_v49 = vsel %vm3893_vm7, %v2795_v31, %v4149_v34 }
 0x1b9   :  { %v7072_v50 = vpack.c.bf16 %v4408_v48, %v4407_v45  ;;  %v4278_v51 = vsel %vm3766_vm9, %v2286_v39, %v4022_v43  ;;  %v4406_v52 = vsel %vm3894_vm10, %v2798_v40, %v4150_v44  ;;  %v7498_v53 = vpop.f32.mrb[108].mxu0  ;;  %v7626_v54 = vpop.f32.mrb[108].mxu1 }
 0x1ba   :  { %7176 = vst [vmem:[%s8746_s2 + $0x1a8] sm:$0xff] %v6752_v47   ;;  %v6747_v55 = vpack.c.bf16 %v4278_v51, %v4277_v46  ;;  %v7067_v56 = vpack.c.bf16 %v4406_v52, %v4405_v49  ;;  %vm3771_vm0 = vcmp.ge.f32.partialorder %v7498_v53, 0.0  ;;  %v4027_v57 = vmul.f32 0.2, %v7498_v53  ;;  %v2299_v58 = vpop.f32.mrb[109].mxu0  ;;  %v2811_v59 = vpop.f32.mrb[109].mxu1 }
 0x1bb   :  { %7240 = vst [vmem:[%s8746_s2 + $0x3a8] sm:$0xff] %v7072_v50   ;;  %vm3899_vm11 = vcmp.ge.f32.partialorder %v7626_v54, 0.0  ;;  %v4155_v60 = vmul.f32 0.2, %v7626_v54  ;;  %v4025_v61 = vmul.f32 0.2, %v2299_v58 }
 0x1bc   :  { %7175 = vst [vmem:[%s8746_s2 + $0x1a0] sm:$0xff] %v6747_v55   ;;  %7239 = vst [vmem:[%s8746_s2 + $0x3a0] sm:$0xff] %v7067_v56   ;;  %v4153_v62 = vmul.f32 0.2, %v2811_v59  ;;  %v7499_v63 = vpop.f32.mrb[110].mxu0  ;;  %v7627_v0 = vpop.f32.mrb[110].mxu1  ;;  %v4283_v1 = vsel %vm3771_vm0, %v7498_v53, %v4027_v57 }
 0x1bd   :  { %vm3769_vm12 = vcmp.ge.f32.partialorder %v2299_v58, 0.0  ;;  %vm3772_vm13 = vcmp.ge.f32.partialorder %v7499_v63, 0.0  ;;  %v4028_v2 = vmul.f32 0.2, %v7499_v63  ;;  %v2302_v3 = vpop.f32.mrb[111].mxu0  ;;  %v2814_v4 = vpop.f32.mrb[111].mxu1  ;;  %v4411_v9 = vsel %vm3899_vm11, %v7626_v54, %v4155_v60 }
 0x1be   :  { %vm3897_vm14 = vcmp.ge.f32.partialorder %v2811_v59, 0.0  ;;  %vm3900_vm15 = vcmp.ge.f32.partialorder %v7627_v0, 0.0  ;;  %v4156_v5 = vmul.f32 0.2, %v7627_v0  ;;  %vm3770_vm1 = vcmp.ge.f32.partialorder %v2302_v3, 0.0 }
 0x1bf   :  { %v4284_v6 = vsel %vm3772_vm13, %v7499_v63, %v4028_v2  ;;  %v4026_v7 = vmul.f32 0.2, %v2302_v3  ;;  %vm3898_vm2 = vcmp.ge.f32.partialorder %v2814_v4, 0.0  ;;  %v4154_v8 = vmul.f32 0.2, %v2814_v4 }
 0x1c0   :  { %v4281_v10 = vsel %vm3769_vm12, %v2299_v58, %v4025_v61  ;;  %v6762_v11 = vpack.c.bf16 %v4284_v6, %v4283_v1  ;;  %v4412_v12 = vsel %vm3900_vm15, %v7627_v0, %v4156_v5  ;;  %v4409_v13 = vsel %vm3897_vm14, %v2811_v59, %v4153_v62 }
 0x1c1   :  { %v7082_v14 = vpack.c.bf16 %v4412_v12, %v4411_v9  ;;  %v4282_v15 = vsel %vm3770_vm1, %v2302_v3, %v4026_v7  ;;  %v4410_v16 = vsel %vm3898_vm2, %v2814_v4, %v4154_v8  ;;  %v7502_v17 = vpop.f32.mrb[112].mxu0  ;;  %v7630_v18 = vpop.f32.mrb[112].mxu1 }
 0x1c2   :  { %7178 = vst [vmem:[%s8746_s2 + $0x1b8] sm:$0xff] %v6762_v11   ;;  %v6757_v19 = vpack.c.bf16 %v4282_v15, %v4281_v10  ;;  %v7077_v20 = vpack.c.bf16 %v4410_v16, %v4409_v13  ;;  %vm3775_vm3 = vcmp.ge.f32.partialorder %v7502_v17, 0.0  ;;  %v4031_v21 = vmul.f32 0.2, %v7502_v17  ;;  %v2315_v22 = vpop.f32.mrb[113].mxu0  ;;  %v2827_v23 = vpop.f32.mrb[113].mxu1 }
 0x1c3   :  { %7242 = vst [vmem:[%s8746_s2 + $0x3b8] sm:$0xff] %v7082_v14   ;;  %vm3903_vm4 = vcmp.ge.f32.partialorder %v7630_v18, 0.0  ;;  %v4159_v24 = vmul.f32 0.2, %v7630_v18  ;;  %v4029_v25 = vmul.f32 0.2, %v2315_v22 }
 0x1c4   :  { %7177 = vst [vmem:[%s8746_s2 + $0x1b0] sm:$0xff] %v6757_v19   ;;  %7241 = vst [vmem:[%s8746_s2 + $0x3b0] sm:$0xff] %v7077_v20   ;;  %v4157_v26 = vmul.f32 0.2, %v2827_v23  ;;  %v7503_v27 = vpop.f32.mrb[114].mxu0  ;;  %v7631_v28 = vpop.f32.mrb[114].mxu1  ;;  %v4287_v29 = vsel %vm3775_vm3, %v7502_v17, %v4031_v21 }
 0x1c5   :  { %vm3773_vm5 = vcmp.ge.f32.partialorder %v2315_v22, 0.0  ;;  %vm3776_vm6 = vcmp.ge.f32.partialorder %v7503_v27, 0.0  ;;  %v4032_v30 = vmul.f32 0.2, %v7503_v27  ;;  %v2318_v31 = vpop.f32.mrb[115].mxu0  ;;  %v2830_v32 = vpop.f32.mrb[115].mxu1  ;;  %v4415_v37 = vsel %vm3903_vm4, %v7630_v18, %v4159_v24 }
 0x1c6   :  { %vm3901_vm7 = vcmp.ge.f32.partialorder %v2827_v23, 0.0  ;;  %vm3904_vm8 = vcmp.ge.f32.partialorder %v7631_v28, 0.0  ;;  %v4160_v33 = vmul.f32 0.2, %v7631_v28  ;;  %vm3774_vm9 = vcmp.ge.f32.partialorder %v2318_v31, 0.0 }
 0x1c7   :  { %v4288_v34 = vsel %vm3776_vm6, %v7503_v27, %v4032_v30  ;;  %v4030_v35 = vmul.f32 0.2, %v2318_v31  ;;  %vm3902_vm10 = vcmp.ge.f32.partialorder %v2830_v32, 0.0  ;;  %v4158_v36 = vmul.f32 0.2, %v2830_v32 }
 0x1c8   :  { %v4285_v38 = vsel %vm3773_vm5, %v2315_v22, %v4029_v25  ;;  %v6772_v39 = vpack.c.bf16 %v4288_v34, %v4287_v29  ;;  %v4416_v40 = vsel %vm3904_vm8, %v7631_v28, %v4160_v33  ;;  %v4413_v41 = vsel %vm3901_vm7, %v2827_v23, %v4157_v26 }
 0x1c9   :  { %v7092_v42 = vpack.c.bf16 %v4416_v40, %v4415_v37  ;;  %v4286_v43 = vsel %vm3774_vm9, %v2318_v31, %v4030_v35  ;;  %v4414_v44 = vsel %vm3902_vm10, %v2830_v32, %v4158_v36  ;;  %v7506_v45 = vpop.f32.mrb[116].mxu0  ;;  %v7634_v46 = vpop.f32.mrb[116].mxu1 }
 0x1ca   :  { %7180 = vst [vmem:[%s8746_s2 + $0x1c8] sm:$0xff] %v6772_v39   ;;  %v6767_v47 = vpack.c.bf16 %v4286_v43, %v4285_v38  ;;  %v7087_v48 = vpack.c.bf16 %v4414_v44, %v4413_v41  ;;  %vm3779_vm0 = vcmp.ge.f32.partialorder %v7506_v45, 0.0  ;;  %v4035_v49 = vmul.f32 0.2, %v7506_v45  ;;  %v2331_v50 = vpop.f32.mrb[117].mxu0  ;;  %v2843_v51 = vpop.f32.mrb[117].mxu1 }
 0x1cb   :  { %7244 = vst [vmem:[%s8746_s2 + $0x3c8] sm:$0xff] %v7092_v42   ;;  %vm3907_vm11 = vcmp.ge.f32.partialorder %v7634_v46, 0.0  ;;  %v4163_v52 = vmul.f32 0.2, %v7634_v46  ;;  %v4033_v53 = vmul.f32 0.2, %v2331_v50 }
 0x1cc   :  { %7179 = vst [vmem:[%s8746_s2 + $0x1c0] sm:$0xff] %v6767_v47   ;;  %7243 = vst [vmem:[%s8746_s2 + $0x3c0] sm:$0xff] %v7087_v48   ;;  %v4161_v54 = vmul.f32 0.2, %v2843_v51  ;;  %v7507_v55 = vpop.f32.mrb[118].mxu0  ;;  %v7635_v56 = vpop.f32.mrb[118].mxu1  ;;  %v4291_v57 = vsel %vm3779_vm0, %v7506_v45, %v4035_v49 }
 0x1cd   :  { %vm3777_vm12 = vcmp.ge.f32.partialorder %v2331_v50, 0.0  ;;  %vm3780_vm13 = vcmp.ge.f32.partialorder %v7507_v55, 0.0  ;;  %v4036_v58 = vmul.f32 0.2, %v7507_v55  ;;  %v2334_v59 = vpop.f32.mrb[119].mxu0  ;;  %v2846_v60 = vpop.f32.mrb[119].mxu1  ;;  %v4419_v1 = vsel %vm3907_vm11, %v7634_v46, %v4163_v52 }
 0x1ce   :  { %vm3905_vm14 = vcmp.ge.f32.partialorder %v2843_v51, 0.0  ;;  %vm3908_vm15 = vcmp.ge.f32.partialorder %v7635_v56, 0.0  ;;  %v4164_v61 = vmul.f32 0.2, %v7635_v56  ;;  %vm3778_vm1 = vcmp.ge.f32.partialorder %v2334_v59, 0.0 }
 0x1cf   :  { %v4292_v62 = vsel %vm3780_vm13, %v7507_v55, %v4036_v58  ;;  %v4034_v63 = vmul.f32 0.2, %v2334_v59  ;;  %vm3906_vm2 = vcmp.ge.f32.partialorder %v2846_v60, 0.0  ;;  %v4162_v0 = vmul.f32 0.2, %v2846_v60 }
 0x1d0   :  { %v4289_v2 = vsel %vm3777_vm12, %v2331_v50, %v4033_v53  ;;  %v6782_v3 = vpack.c.bf16 %v4292_v62, %v4291_v57  ;;  %v4420_v4 = vsel %vm3908_vm15, %v7635_v56, %v4164_v61  ;;  %v4417_v5 = vsel %vm3905_vm14, %v2843_v51, %v4161_v54 }
 0x1d1   :  { %v7102_v6 = vpack.c.bf16 %v4420_v4, %v4419_v1  ;;  %v4290_v7 = vsel %vm3778_vm1, %v2334_v59, %v4034_v63  ;;  %v4418_v8 = vsel %vm3906_vm2, %v2846_v60, %v4162_v0  ;;  %v7510_v9 = vpop.f32.mrb[120].mxu0  ;;  %v7638_v10 = vpop.f32.mrb[120].mxu1 }
 0x1d2   :  { %7182 = vst [vmem:[%s8746_s2 + $0x1d8] sm:$0xff] %v6782_v3   ;;  %v6777_v11 = vpack.c.bf16 %v4290_v7, %v4289_v2  ;;  %v7097_v12 = vpack.c.bf16 %v4418_v8, %v4417_v5  ;;  %vm3783_vm3 = vcmp.ge.f32.partialorder %v7510_v9, 0.0  ;;  %v4039_v13 = vmul.f32 0.2, %v7510_v9  ;;  %v2347_v14 = vpop.f32.mrb[121].mxu0  ;;  %v2859_v15 = vpop.f32.mrb[121].mxu1 }
 0x1d3   :  { %7246 = vst [vmem:[%s8746_s2 + $0x3d8] sm:$0xff] %v7102_v6   ;;  %vm3911_vm4 = vcmp.ge.f32.partialorder %v7638_v10, 0.0  ;;  %v4167_v16 = vmul.f32 0.2, %v7638_v10  ;;  %v4037_v17 = vmul.f32 0.2, %v2347_v14 }
 0x1d4   :  { %7181 = vst [vmem:[%s8746_s2 + $0x1d0] sm:$0xff] %v6777_v11   ;;  %7245 = vst [vmem:[%s8746_s2 + $0x3d0] sm:$0xff] %v7097_v12   ;;  %v4165_v18 = vmul.f32 0.2, %v2859_v15  ;;  %v7511_v19 = vpop.f32.mrb[122].mxu0  ;;  %v7639_v20 = vpop.f32.mrb[122].mxu1  ;;  %v4295_v21 = vsel %vm3783_vm3, %v7510_v9, %v4039_v13 }
 0x1d5   :  { %vm3781_vm5 = vcmp.ge.f32.partialorder %v2347_v14, 0.0  ;;  %vm3784_vm6 = vcmp.ge.f32.partialorder %v7511_v19, 0.0  ;;  %v4040_v22 = vmul.f32 0.2, %v7511_v19  ;;  %v2350_v23 = vpop.f32.mrb[123].mxu0  ;;  %v2862_v24 = vpop.f32.mrb[123].mxu1  ;;  %v4423_v29 = vsel %vm3911_vm4, %v7638_v10, %v4167_v16 }
 0x1d6   :  { %vm3909_vm7 = vcmp.ge.f32.partialorder %v2859_v15, 0.0  ;;  %vm3912_vm8 = vcmp.ge.f32.partialorder %v7639_v20, 0.0  ;;  %v4168_v25 = vmul.f32 0.2, %v7639_v20  ;;  %vm3782_vm9 = vcmp.ge.f32.partialorder %v2350_v23, 0.0 }
 0x1d7   :  { %v4296_v26 = vsel %vm3784_vm6, %v7511_v19, %v4040_v22  ;;  %v4038_v27 = vmul.f32 0.2, %v2350_v23  ;;  %vm3910_vm10 = vcmp.ge.f32.partialorder %v2862_v24, 0.0  ;;  %v4166_v28 = vmul.f32 0.2, %v2862_v24 }
 0x1d8   :  { %v4293_v30 = vsel %vm3781_vm5, %v2347_v14, %v4037_v17  ;;  %v6792_v31 = vpack.c.bf16 %v4296_v26, %v4295_v21  ;;  %v4424_v32 = vsel %vm3912_vm8, %v7639_v20, %v4168_v25  ;;  %v4421_v33 = vsel %vm3909_vm7, %v2859_v15, %v4165_v18 }
 0x1d9   :  { %v7112_v34 = vpack.c.bf16 %v4424_v32, %v4423_v29  ;;  %v4294_v35 = vsel %vm3782_vm9, %v2350_v23, %v4038_v27  ;;  %v4422_v36 = vsel %vm3910_vm10, %v2862_v24, %v4166_v28  ;;  %v7514_v37 = vpop.f32.mrb[124].mxu0  ;;  %v7642_v38 = vpop.f32.mrb[124].mxu1 }
 0x1da   :  { %7184 = vst [vmem:[%s8746_s2 + $0x1e8] sm:$0xff] %v6792_v31   ;;  %v6787_v39 = vpack.c.bf16 %v4294_v35, %v4293_v30  ;;  %v7107_v40 = vpack.c.bf16 %v4422_v36, %v4421_v33  ;;  %vm3787_vm0 = vcmp.ge.f32.partialorder %v7514_v37, 0.0  ;;  %v4043_v41 = vmul.f32 0.2, %v7514_v37  ;;  %v2363_v42 = vpop.f32.mrb[125].mxu0  ;;  %v2875_v43 = vpop.f32.mrb[125].mxu1 }
 0x1db   :  { %7248 = vst [vmem:[%s8746_s2 + $0x3e8] sm:$0xff] %v7112_v34   ;;  %vm3915_vm11 = vcmp.ge.f32.partialorder %v7642_v38, 0.0  ;;  %v4171_v44 = vmul.f32 0.2, %v7642_v38  ;;  %v4041_v45 = vmul.f32 0.2, %v2363_v42 }
 0x1dc   :  { %7183 = vst [vmem:[%s8746_s2 + $0x1e0] sm:$0xff] %v6787_v39   ;;  %7247 = vst [vmem:[%s8746_s2 + $0x3e0] sm:$0xff] %v7107_v40   ;;  %v4169_v46 = vmul.f32 0.2, %v2875_v43  ;;  %v7515_v47 = vpop.f32.mrb[126].mxu0  ;;  %v7643_v48 = vpop.f32.mrb[126].mxu1  ;;  %v4299_v49 = vsel %vm3787_vm0, %v7514_v37, %v4043_v41 }
 0x1dd   :  { %vm3785_vm12 = vcmp.ge.f32.partialorder %v2363_v42, 0.0  ;;  %vm3788_vm13 = vcmp.ge.f32.partialorder %v7515_v47, 0.0  ;;  %v4044_v50 = vmul.f32 0.2, %v7515_v47  ;;  %v2366_v51 = vpop.f32.mrb[127].mxu0  ;;  %v2878_v52 = vpop.f32.mrb[127].mxu1  ;;  %v4427_v57 = vsel %vm3915_vm11, %v7642_v38, %v4171_v44 }
 0x1de   :  { %vm3913_vm14 = vcmp.ge.f32.partialorder %v2875_v43, 0.0  ;;  %vm3916_vm15 = vcmp.ge.f32.partialorder %v7643_v48, 0.0  ;;  %v4172_v53 = vmul.f32 0.2, %v7643_v48  ;;  %vm3786_vm1 = vcmp.ge.f32.partialorder %v2366_v51, 0.0 }
 0x1df   :  { %v4300_v54 = vsel %vm3788_vm13, %v7515_v47, %v4044_v50  ;;  %v4042_v55 = vmul.f32 0.2, %v2366_v51  ;;  %vm3914_vm2 = vcmp.ge.f32.partialorder %v2878_v52, 0.0  ;;  %v4170_v56 = vmul.f32 0.2, %v2878_v52 }
 0x1e0   :  { %v4297_v58 = vsel %vm3785_vm12, %v2363_v42, %v4041_v45  ;;  %v6802_v59 = vpack.c.bf16 %v4300_v54, %v4299_v49  ;;  %v4428_v60 = vsel %vm3916_vm15, %v7643_v48, %v4172_v53  ;;  %v4425_v61 = vsel %vm3913_vm14, %v2875_v43, %v4169_v46 }
 0x1e1   :  { %v7122_v62 = vpack.c.bf16 %v4428_v60, %v4427_v57  ;;  %v4298_v63 = vsel %vm3786_vm1, %v2366_v51, %v4042_v55  ;;  %v4426_v0 = vsel %vm3914_vm2, %v2878_v52, %v4170_v56 }
 0x1e2   :  { %7186 = vst [vmem:[%s8746_s2 + $0x1f8] sm:$0xff] %v6802_v59   ;;  %v6797_v1 = vpack.c.bf16 %v4298_v63, %v4297_v58  ;;  %v7117_v2 = vpack.c.bf16 %v4426_v0, %v4425_v61 }
 0x1e3   :  { %7250 = vst [vmem:[%s8746_s2 + $0x3f8] sm:$0xff] %v7122_v62  }
 0x1e4   :  { %7185 = vst [vmem:[%s8746_s2 + $0x1f0] sm:$0xff] %v6797_v1   ;;  %7249 = vst [vmem:[%s8746_s2 + $0x3f0] sm:$0xff] %v7117_v2  }

// kernel: dc_discriminator.10
= control target key start
LH: loop header
LB: loop body
LE: loop exit
PB: predicated region body
PF: predicated region fallthrough
CT: control target
= control target key end

     0   :  { %s1631_s0 = inlined_call_operand.vmem [shape: bf16[512,128], index: 0, kind: input, shape index: {}]   ;;  %s1632_s1 = inlined_call_operand.vmem [shape: f32[1,128], index: 1, kind: input, shape index: {}]   ;;  %s1633_s2 = inlined_call_operand.vmem [shape: f32[1,128], index: 2, kind: input, shape index: {}]   ;;  %s1634_s3 = inlined_call_operand.vmem [shape: bf16[512,128], index: 3, kind: output, shape index: {}]  }
   0x1   :  { %v931_v0 = vld [vmem:[%s1631_s0] sm:$0xff]   ;;  %v1218_v4 = vld [vmem:[%s1631_s0 + $0x8] sm:$0xff]   ;;  %v1219_v5 = vld [vmem:[%s1631_s0 + $0x10] sm:$0xff]  }
   0x2   :  { %v1306_v1 = vld [vmem:[%s1632_s1] ss:$0 sm:$0xff]  ;;  %v932_v2 = vunpack.c.l.bf16 %v931_v0  ;;  %v933_v3 = vunpack.c.h.bf16 %v931_v0  ;;  %v1220_v6 = vld [vmem:[%s1631_s0 + $0x18] sm:$0xff]   ;;  %v936_v8 = vunpack.c.l.bf16 %v1218_v4  ;;  %v937_v9 = vunpack.c.h.bf16 %v1218_v4  ;;  %v1222_v35 = vld [vmem:[%s1631_s0 + $0x28] sm:$0xff]  }
   0x3   :  { %v1320_v7 = vld [vmem:[%s1633_s2] ss:$0 sm:$0xff]  ;;  %v940_v10 = vunpack.c.l.bf16 %v1219_v5  ;;  %v941_v11 = vunpack.c.h.bf16 %v1219_v5  ;;  %v944_v14 = vunpack.c.l.bf16 %v1220_v6  ;;  %v945_v15 = vunpack.c.h.bf16 %v1220_v6  ;;  %v1223_v48 = vld [vmem:[%s1631_s0 + $0x30] sm:$0xff]   ;;  %v1224_v4 = vld [vmem:[%s1631_s0 + $0x38] sm:$0xff]  }
   0x4   :  { %v149_v12 = vmul.f32 %v932_v2, %v1306_v1  ;;  %v150_v13 = vmul.f32 %v933_v3, %v1306_v1  ;;  %v151_v16 = vmul.f32 %v936_v8, %v1306_v1  ;;  %v152_v17 = vmul.f32 %v937_v9, %v1306_v1  ;;  %v1221_v34 = vld [vmem:[%s1631_s0 + $0x20] sm:$0xff]  }
   0x5   :  { %v153_v18 = vmul.f32 %v940_v10, %v1306_v1  ;;  %v154_v19 = vmul.f32 %v941_v11, %v1306_v1  ;;  %v155_v22 = vmul.f32 %v944_v14, %v1306_v1  ;;  %v156_v23 = vmul.f32 %v945_v15, %v1306_v1  ;;  %v1225_v15 = vld [vmem:[%s1631_s0 + $0x40] sm:$0xff]  }
   0x6   :  { %v220_v20 = vadd.f32 %v1320_v7, %v149_v12  ;;  %v221_v21 = vadd.f32 %v1320_v7, %v150_v13  ;;  %v222_v24 = vadd.f32 %v1320_v7, %v151_v16  ;;  %v223_v25 = vadd.f32 %v1320_v7, %v152_v17 }
   0x7   :  { %v224_v26 = vadd.f32 %v1320_v7, %v153_v18  ;;  %v225_v27 = vadd.f32 %v1320_v7, %v154_v19  ;;  %v226_v42 = vadd.f32 %v1320_v7, %v155_v22  ;;  %v227_v43 = vadd.f32 %v1320_v7, %v156_v23 }
   0x8   :  { %vm284_vm0 = vcmp.ge.f32.partialorder %v220_v20, 0.0  ;;  %vm285_vm1 = vcmp.ge.f32.partialorder %v221_v21, 0.0  ;;  %v348_v28 = vmul.f32 0.2, %v220_v20  ;;  %v349_v29 = vmul.f32 0.2, %v221_v21 }
   0x9   :  { %vm286_vm2 = vcmp.ge.f32.partialorder %v222_v24, 0.0  ;;  %vm287_vm3 = vcmp.ge.f32.partialorder %v223_v25, 0.0  ;;  %v350_v30 = vmul.f32 0.2, %v222_v24  ;;  %v351_v31 = vmul.f32 0.2, %v223_v25 }
   0xa   :  { %v412_v32 = vsel %vm284_vm0, %v220_v20, %v348_v28  ;;  %v413_v33 = vsel %vm285_vm1, %v221_v21, %v349_v29  ;;  %vm288_vm4 = vcmp.ge.f32.partialorder %v224_v26, 0.0  ;;  %vm289_vm5 = vcmp.ge.f32.partialorder %v225_v27, 0.0 }
   0xb   :  { %v1061_v36 = vpack.c.bf16 %v413_v33, %v412_v32  ;;  %v414_v37 = vsel %vm286_vm2, %v222_v24, %v350_v30  ;;  %v415_v38 = vsel %vm287_vm3, %v223_v25, %v351_v31  ;;  %v352_v39 = vmul.f32 0.2, %v224_v26 }
   0xc   :  { %v1066_v40 = vpack.c.bf16 %v415_v38, %v414_v37  ;;  %v353_v41 = vmul.f32 0.2, %v225_v27  ;;  %v948_v45 = vunpack.c.l.bf16 %v1221_v34  ;;  %v949_v46 = vunpack.c.h.bf16 %v1221_v34 }
   0xd   :  { %1062 = vst [vmem:[%s1634_s3] sm:$0xff] %v1061_v36   ;;  %v416_v44 = vsel %vm288_vm4, %v224_v26, %v352_v39  ;;  %v952_v47 = vunpack.c.l.bf16 %v1222_v35  ;;  %vm290_vm6 = vcmp.ge.f32.partialorder %v226_v42, 0.0  ;;  %vm291_vm7 = vcmp.ge.f32.partialorder %v227_v43, 0.0  ;;  %v1226_v26 = vld [vmem:[%s1631_s0 + $0x48] sm:$0xff]  }
   0xe   :  { %1249 = vst [vmem:[%s1634_s3 + $0x8] sm:$0xff] %v1066_v40   ;;  %v417_v49 = vsel %vm289_vm5, %v225_v27, %v353_v41  ;;  %v354_v50 = vmul.f32 0.2, %v226_v42  ;;  %v355_v52 = vmul.f32 0.2, %v227_v43  ;;  %v157_v53 = vmul.f32 %v948_v45, %v1306_v1  ;;  %v1227_v27 = vld [vmem:[%s1631_s0 + $0x50] sm:$0xff]  }
   0xf   :  { %v1071_v51 = vpack.c.bf16 %v417_v49, %v416_v44  ;;  %v158_v54 = vmul.f32 %v949_v46, %v1306_v1  ;;  %v953_v56 = vunpack.c.h.bf16 %v1222_v35  ;;  %v159_v57 = vmul.f32 %v952_v47, %v1306_v1 }
  0x10   :  { %v418_v55 = vsel %vm290_vm6, %v226_v42, %v354_v50  ;;  %v956_v58 = vunpack.c.l.bf16 %v1223_v48  ;;  %v419_v59 = vsel %vm291_vm7, %v227_v43, %v355_v52  ;;  %v228_v60 = vadd.f32 %v1320_v7, %v157_v53 }
  0x11   :  { %1250 = vst [vmem:[%s1634_s3 + $0x10] sm:$0xff] %v1071_v51   ;;  %v229_v61 = vadd.f32 %v1320_v7, %v158_v54  ;;  %v957_v62 = vunpack.c.h.bf16 %v1223_v48  ;;  %v1076_v63 = vpack.c.bf16 %v419_v59, %v418_v55  ;;  %v160_v0 = vmul.f32 %v953_v56, %v1306_v1  ;;  %v1228_v55 = vld [vmem:[%s1631_s0 + $0x58] sm:$0xff]  }
  0x12   :  { %v230_v2 = vadd.f32 %v1320_v7, %v159_v57  ;;  %v161_v3 = vmul.f32 %v956_v58, %v1306_v1  ;;  %vm292_vm8 = vcmp.ge.f32.partialorder %v228_v60, 0.0  ;;  %v356_v5 = vmul.f32 0.2, %v228_v60 }
  0x13   :  { %vm293_vm9 = vcmp.ge.f32.partialorder %v229_v61, 0.0  ;;  %v357_v6 = vmul.f32 0.2, %v229_v61  ;;  %1251 = vst [vmem:[%s1634_s3 + $0x18] sm:$0xff] %v1076_v63   ;;  %v231_v8 = vadd.f32 %v1320_v7, %v160_v0  ;;  %v162_v10 = vmul.f32 %v957_v62, %v1306_v1 }
  0x14   :  { %vm294_vm10 = vcmp.ge.f32.partialorder %v230_v2, 0.0  ;;  %v358_v9 = vmul.f32 0.2, %v230_v2  ;;  %v420_v11 = vsel %vm292_vm8, %v228_v60, %v356_v5  ;;  %v232_v13 = vadd.f32 %v1320_v7, %v161_v3  ;;  %v1229_v60 = vld [vmem:[%s1631_s0 + $0x60] sm:$0xff]  }
  0x15   :  { %v421_v12 = vsel %vm293_vm9, %v229_v61, %v357_v6  ;;  %v960_v14 = vunpack.c.l.bf16 %v1224_v4  ;;  %vm295_vm11 = vcmp.ge.f32.partialorder %v231_v8, 0.0  ;;  %v359_v17 = vmul.f32 0.2, %v231_v8 }
  0x16   :  { %v1081_v16 = vpack.c.bf16 %v421_v12, %v420_v11  ;;  %v422_v18 = vsel %vm294_vm10, %v230_v2, %v358_v9  ;;  %v233_v19 = vadd.f32 %v1320_v7, %v162_v10  ;;  %vm296_vm12 = vcmp.ge.f32.partialorder %v232_v13, 0.0  ;;  %v1230_v9 = vld [vmem:[%s1631_s0 + $0x68] sm:$0xff]  }
  0x17   :  { %v360_v20 = vmul.f32 0.2, %v232_v13  ;;  %v961_v21 = vunpack.c.h.bf16 %v1224_v4  ;;  %v423_v22 = vsel %vm295_vm11, %v231_v8, %v359_v17  ;;  %v163_v23 = vmul.f32 %v960_v14, %v1306_v1 }
  0x18   :  { %1252 = vst [vmem:[%s1634_s3 + $0x20] sm:$0xff] %v1081_v16   ;;  %v964_v24 = vunpack.c.l.bf16 %v1225_v15  ;;  %v965_v25 = vunpack.c.h.bf16 %v1225_v15  ;;  %v1086_v28 = vpack.c.bf16 %v423_v22, %v422_v18  ;;  %vm297_vm13 = vcmp.ge.f32.partialorder %v233_v19, 0.0 }
  0x19   :  { %v361_v29 = vmul.f32 0.2, %v233_v19  ;;  %v424_v30 = vsel %vm296_vm12, %v232_v13, %v360_v20  ;;  %v164_v31 = vmul.f32 %v961_v21, %v1306_v1  ;;  %v234_v32 = vadd.f32 %v1320_v7, %v163_v23 }
  0x1a   :  { %v165_v33 = vmul.f32 %v964_v24, %v1306_v1  ;;  %v166_v34 = vmul.f32 %v965_v25, %v1306_v1  ;;  %1253 = vst [vmem:[%s1634_s3 + $0x28] sm:$0xff] %v1086_v28   ;;  %v968_v36 = vunpack.c.l.bf16 %v1226_v26  ;;  %v969_v37 = vunpack.c.h.bf16 %v1226_v26  ;;  %v1231_v28 = vld [vmem:[%s1631_s0 + $0x70] sm:$0xff]  }
  0x1b   :  { %v425_v35 = vsel %vm297_vm13, %v233_v19, %v361_v29  ;;  %v972_v38 = vunpack.c.l.bf16 %v1227_v27  ;;  %v235_v40 = vadd.f32 %v1320_v7, %v164_v31  ;;  %vm298_vm14 = vcmp.ge.f32.partialorder %v234_v32, 0.0 }
  0x1c   :  { %v1091_v39 = vpack.c.bf16 %v425_v35, %v424_v30  ;;  %v362_v41 = vmul.f32 0.2, %v234_v32  ;;  %v236_v42 = vadd.f32 %v1320_v7, %v165_v33  ;;  %v237_v43 = vadd.f32 %v1320_v7, %v166_v34 }
  0x1d   :  { %v167_v44 = vmul.f32 %v968_v36, %v1306_v1  ;;  %v168_v45 = vmul.f32 %v969_v37, %v1306_v1  ;;  %vm299_vm15 = vcmp.ge.f32.partialorder %v235_v40, 0.0  ;;  %v363_v46 = vmul.f32 0.2, %v235_v40  ;;  %v1232_v37 = vld [vmem:[%s1631_s0 + $0x78] sm:$0xff]  }
  0x1e   :  { %1254 = vst [vmem:[%s1634_s3 + $0x30] sm:$0xff] %v1091_v39   ;;  %v426_v47 = vsel %vm298_vm14, %v234_v32, %v362_v41  ;;  %v973_v48 = vunpack.c.h.bf16 %v1227_v27  ;;  %vm300_vm0 = vcmp.ge.f32.partialorder %v236_v42, 0.0  ;;  %vm301_vm1 = vcmp.ge.f32.partialorder %v237_v43, 0.0 }
  0x1f   :  { %v364_v49 = vmul.f32 0.2, %v236_v42  ;;  %v365_v50 = vmul.f32 0.2, %v237_v43  ;;  %v427_v51 = vsel %vm299_vm15, %v235_v40, %v363_v46  ;;  %v238_v52 = vadd.f32 %v1320_v7, %v167_v44 }
  0x20   :  { %v239_v53 = vadd.f32 %v1320_v7, %v168_v45  ;;  %v169_v54 = vmul.f32 %v972_v38, %v1306_v1  ;;  %v1096_v56 = vpack.c.bf16 %v427_v51, %v426_v47  ;;  %v170_v59 = vmul.f32 %v973_v48, %v1306_v1 }
  0x21   :  { %v428_v57 = vsel %vm300_vm0, %v236_v42, %v364_v49  ;;  %v429_v58 = vsel %vm301_vm1, %v237_v43, %v365_v50  ;;  %vm302_vm2 = vcmp.ge.f32.partialorder %v238_v52, 0.0  ;;  %v366_v62 = vmul.f32 0.2, %v238_v52  ;;  %v1233_v42 = vld [vmem:[%s1631_s0 + $0x80] sm:$0xff]   ;;  %v1234_v50 = vld [vmem:[%s1631_s0 + $0x88] sm:$0xff]  }
  0x22   :  { %v1101_v61 = vpack.c.bf16 %v429_v58, %v428_v57  ;;  %vm303_vm3 = vcmp.ge.f32.partialorder %v239_v53, 0.0  ;;  %1255 = vst [vmem:[%s1634_s3 + $0x38] sm:$0xff] %v1096_v56   ;;  %v367_v63 = vmul.f32 0.2, %v239_v53  ;;  %v240_v0 = vadd.f32 %v1320_v7, %v169_v54 }
  0x23   :  { %v241_v2 = vadd.f32 %v1320_v7, %v170_v59  ;;  %v976_v3 = vunpack.c.l.bf16 %v1228_v55  ;;  %v430_v4 = vsel %vm302_vm2, %v238_v52, %v366_v62  ;;  %v977_v5 = vunpack.c.h.bf16 %v1228_v55 }
  0x24   :  { %1256 = vst [vmem:[%s1634_s3 + $0x40] sm:$0xff] %v1101_v61   ;;  %v980_v6 = vunpack.c.l.bf16 %v1229_v60  ;;  %v981_v8 = vunpack.c.h.bf16 %v1229_v60  ;;  %v431_v10 = vsel %vm303_vm3, %v239_v53, %v367_v63  ;;  %vm304_vm4 = vcmp.ge.f32.partialorder %v240_v0, 0.0 }
  0x25   :  { %vm305_vm5 = vcmp.ge.f32.partialorder %v241_v2, 0.0  ;;  %v368_v11 = vmul.f32 0.2, %v240_v0  ;;  %v1106_v12 = vpack.c.bf16 %v431_v10, %v430_v4  ;;  %v369_v13 = vmul.f32 0.2, %v241_v2 }
  0x26   :  { %v171_v14 = vmul.f32 %v976_v3, %v1306_v1  ;;  %v172_v15 = vmul.f32 %v977_v5, %v1306_v1  ;;  %v173_v17 = vmul.f32 %v980_v6, %v1306_v1  ;;  %v174_v18 = vmul.f32 %v981_v8, %v1306_v1 }
  0x27   :  { %v432_v16 = vsel %vm304_vm4, %v240_v0, %v368_v11  ;;  %v984_v19 = vunpack.c.l.bf16 %v1230_v9  ;;  %1257 = vst [vmem:[%s1634_s3 + $0x48] sm:$0xff] %v1106_v12   ;;  %v433_v20 = vsel %vm305_vm5, %v241_v2, %v369_v13  ;;  %v985_v23 = vunpack.c.h.bf16 %v1230_v9 }
  0x28   :  { %v242_v21 = vadd.f32 %v1320_v7, %v171_v14  ;;  %v243_v22 = vadd.f32 %v1320_v7, %v172_v15  ;;  %v1111_v24 = vpack.c.bf16 %v433_v20, %v432_v16  ;;  %v244_v25 = vadd.f32 %v1320_v7, %v173_v17  ;;  %v1235_v15 = vld [vmem:[%s1631_s0 + $0x90] sm:$0xff]   ;;  %v1236_v20 = vld [vmem:[%s1631_s0 + $0x98] sm:$0xff]  }
  0x29   :  { %v245_v26 = vadd.f32 %v1320_v7, %v174_v18  ;;  %v175_v27 = vmul.f32 %v984_v19, %v1306_v1  ;;  %v176_v35 = vmul.f32 %v985_v23, %v1306_v1  ;;  %v988_v41 = vunpack.c.l.bf16 %v1231_v28 }
  0x2a   :  { %vm306_vm6 = vcmp.ge.f32.partialorder %v242_v21, 0.0  ;;  %vm307_vm7 = vcmp.ge.f32.partialorder %v243_v22, 0.0  ;;  %v370_v29 = vmul.f32 0.2, %v242_v21  ;;  %v371_v30 = vmul.f32 0.2, %v243_v22 }
  0x2b   :  { %1258 = vst [vmem:[%s1634_s3 + $0x50] sm:$0xff] %v1111_v24   ;;  %vm308_vm8 = vcmp.ge.f32.partialorder %v244_v25, 0.0  ;;  %vm309_vm9 = vcmp.ge.f32.partialorder %v245_v26, 0.0  ;;  %v372_v31 = vmul.f32 0.2, %v244_v25  ;;  %v246_v36 = vadd.f32 %v1320_v7, %v175_v27 }
  0x2c   :  { %v373_v32 = vmul.f32 0.2, %v245_v26  ;;  %v434_v33 = vsel %vm306_vm6, %v242_v21, %v370_v29  ;;  %v435_v34 = vsel %vm307_vm7, %v243_v22, %v371_v30  ;;  %v247_v44 = vadd.f32 %v1320_v7, %v176_v35  ;;  %v1237_v21 = vld [vmem:[%s1631_s0 + $0xa0] sm:$0xff]  }
  0x2d   :  { %v1116_v38 = vpack.c.bf16 %v435_v34, %v434_v33  ;;  %v436_v39 = vsel %vm308_vm8, %v244_v25, %v372_v31  ;;  %vm310_vm10 = vcmp.ge.f32.partialorder %v246_v36, 0.0  ;;  %v374_v45 = vmul.f32 0.2, %v246_v36 }
  0x2e   :  { %v437_v40 = vsel %vm309_vm9, %v245_v26, %v373_v32  ;;  %v989_v46 = vunpack.c.h.bf16 %v1231_v28  ;;  %v177_v47 = vmul.f32 %v988_v41, %v1306_v1  ;;  %v992_v48 = vunpack.c.l.bf16 %v1232_v37 }
  0x2f   :  { %v1121_v43 = vpack.c.bf16 %v437_v40, %v436_v39  ;;  %1259 = vst [vmem:[%s1634_s3 + $0x58] sm:$0xff] %v1116_v38   ;;  %v993_v49 = vunpack.c.h.bf16 %v1232_v37  ;;  %vm311_vm11 = vcmp.ge.f32.partialorder %v247_v44, 0.0  ;;  %v375_v51 = vmul.f32 0.2, %v247_v44  ;;  %v1238_v40 = vld [vmem:[%s1631_s0 + $0xa8] sm:$0xff]  }
  0x30   :  { %v438_v52 = vsel %vm310_vm10, %v246_v36, %v374_v45  ;;  %v996_v53 = vunpack.c.l.bf16 %v1233_v42  ;;  %v178_v54 = vmul.f32 %v989_v46, %v1306_v1  ;;  %v248_v55 = vadd.f32 %v1320_v7, %v177_v47 }
  0x31   :  { %1260 = vst [vmem:[%s1634_s3 + $0x60] sm:$0xff] %v1121_v43   ;;  %v179_v56 = vmul.f32 %v992_v48, %v1306_v1  ;;  %v180_v57 = vmul.f32 %v993_v49, %v1306_v1  ;;  %v439_v58 = vsel %vm311_vm11, %v247_v44, %v375_v51  ;;  %v997_v59 = vunpack.c.h.bf16 %v1233_v42 }
  0x32   :  { %v181_v60 = vmul.f32 %v996_v53, %v1306_v1  ;;  %v1000_v61 = vunpack.c.l.bf16 %v1234_v50  ;;  %v1126_v62 = vpack.c.bf16 %v439_v58, %v438_v52  ;;  %v249_v63 = vadd.f32 %v1320_v7, %v178_v54 }
  0x33   :  { %vm312_vm12 = vcmp.ge.f32.partialorder %v248_v55, 0.0  ;;  %v376_v0 = vmul.f32 0.2, %v248_v55  ;;  %v250_v2 = vadd.f32 %v1320_v7, %v179_v56  ;;  %v251_v3 = vadd.f32 %v1320_v7, %v180_v57 }
  0x34   :  { %v182_v4 = vmul.f32 %v997_v59, %v1306_v1  ;;  %v252_v5 = vadd.f32 %v1320_v7, %v181_v60  ;;  %1261 = vst [vmem:[%s1634_s3 + $0x68] sm:$0xff] %v1126_v62   ;;  %vm313_vm13 = vcmp.ge.f32.partialorder %v249_v63, 0.0  ;;  %v377_v6 = vmul.f32 0.2, %v249_v63 }
  0x35   :  { %v440_v8 = vsel %vm312_vm12, %v248_v55, %v376_v0  ;;  %v1001_v9 = vunpack.c.h.bf16 %v1234_v50  ;;  %vm314_vm14 = vcmp.ge.f32.partialorder %v250_v2, 0.0  ;;  %vm315_vm15 = vcmp.ge.f32.partialorder %v251_v3, 0.0  ;;  %v1239_v0 = vld [vmem:[%s1631_s0 + $0xb0] sm:$0xff]  }
  0x36   :  { %v378_v10 = vmul.f32 0.2, %v250_v2  ;;  %v379_v11 = vmul.f32 0.2, %v251_v3  ;;  %v441_v12 = vsel %vm313_vm13, %v249_v63, %v377_v6  ;;  %v253_v13 = vadd.f32 %v1320_v7, %v182_v4 }
  0x37   :  { %vm316_vm0 = vcmp.ge.f32.partialorder %v252_v5, 0.0  ;;  %v380_v14 = vmul.f32 0.2, %v252_v5  ;;  %v1131_v16 = vpack.c.bf16 %v441_v12, %v440_v8  ;;  %v183_v19 = vmul.f32 %v1000_v61, %v1306_v1 }
  0x38   :  { %v442_v17 = vsel %vm314_vm14, %v250_v2, %v378_v10  ;;  %v443_v18 = vsel %vm315_vm15, %v251_v3, %v379_v11  ;;  %vm317_vm1 = vcmp.ge.f32.partialorder %v253_v13, 0.0  ;;  %v381_v23 = vmul.f32 0.2, %v253_v13  ;;  %v1240_v2 = vld [vmem:[%s1631_s0 + $0xb8] sm:$0xff]  }
  0x39   :  { %v1136_v22 = vpack.c.bf16 %v443_v18, %v442_v17  ;;  %v444_v24 = vsel %vm316_vm0, %v252_v5, %v380_v14  ;;  %1262 = vst [vmem:[%s1634_s3 + $0x70] sm:$0xff] %v1131_v16   ;;  %v184_v25 = vmul.f32 %v1001_v9, %v1306_v1  ;;  %v254_v26 = vadd.f32 %v1320_v7, %v183_v19  ;;  %v1241_v18 = vld [vmem:[%s1631_s0 + $0xc0] sm:$0xff]  }
  0x3a   :  { %v1004_v27 = vunpack.c.l.bf16 %v1235_v15  ;;  %v1005_v28 = vunpack.c.h.bf16 %v1235_v15  ;;  %v445_v29 = vsel %vm317_vm1, %v253_v13, %v381_v23  ;;  %v1008_v30 = vunpack.c.l.bf16 %v1236_v20 }
  0x3b   :  { %1263 = vst [vmem:[%s1634_s3 + $0x78] sm:$0xff] %v1136_v22   ;;  %v1009_v31 = vunpack.c.h.bf16 %v1236_v20  ;;  %v1012_v32 = vunpack.c.l.bf16 %v1237_v21  ;;  %v1141_v33 = vpack.c.bf16 %v445_v29, %v444_v24  ;;  %v255_v34 = vadd.f32 %v1320_v7, %v184_v25 }
  0x3c   :  { %vm318_vm2 = vcmp.ge.f32.partialorder %v254_v26, 0.0  ;;  %v382_v35 = vmul.f32 0.2, %v254_v26  ;;  %v185_v36 = vmul.f32 %v1004_v27, %v1306_v1  ;;  %v186_v37 = vmul.f32 %v1005_v28, %v1306_v1 }
  0x3d   :  { %v187_v38 = vmul.f32 %v1008_v30, %v1306_v1  ;;  %v188_v39 = vmul.f32 %v1009_v31, %v1306_v1  ;;  %1264 = vst [vmem:[%s1634_s3 + $0x80] sm:$0xff] %v1141_v33   ;;  %vm319_vm3 = vcmp.ge.f32.partialorder %v255_v34, 0.0  ;;  %v383_v41 = vmul.f32 0.2, %v255_v34 }
  0x3e   :  { %v446_v42 = vsel %vm318_vm2, %v254_v26, %v382_v35  ;;  %v1013_v43 = vunpack.c.h.bf16 %v1237_v21  ;;  %v256_v44 = vadd.f32 %v1320_v7, %v185_v36  ;;  %v257_v45 = vadd.f32 %v1320_v7, %v186_v37  ;;  %v1242_v36 = vld [vmem:[%s1631_s0 + $0xc8] sm:$0xff]  }
  0x3f   :  { %v258_v46 = vadd.f32 %v1320_v7, %v187_v38  ;;  %v259_v47 = vadd.f32 %v1320_v7, %v188_v39  ;;  %v447_v48 = vsel %vm319_vm3, %v255_v34, %v383_v41  ;;  %v189_v49 = vmul.f32 %v1012_v32, %v1306_v1 }
  0x40   :  { %v190_v50 = vmul.f32 %v1013_v43, %v1306_v1  ;;  %v1016_v51 = vunpack.c.l.bf16 %v1238_v40  ;;  %v1146_v52 = vpack.c.bf16 %v447_v48, %v446_v42  ;;  %vm320_vm4 = vcmp.ge.f32.partialorder %v256_v44, 0.0  ;;  %v1243_v42 = vld [vmem:[%s1631_s0 + $0xd0] sm:$0xff]  }
  0x41   :  { %vm321_vm5 = vcmp.ge.f32.partialorder %v257_v45, 0.0  ;;  %v384_v53 = vmul.f32 0.2, %v256_v44  ;;  %v385_v54 = vmul.f32 0.2, %v257_v45  ;;  %vm322_vm6 = vcmp.ge.f32.partialorder %v258_v46, 0.0 }
  0x42   :  { %vm323_vm7 = vcmp.ge.f32.partialorder %v259_v47, 0.0  ;;  %v386_v55 = vmul.f32 0.2, %v258_v46  ;;  %1265 = vst [vmem:[%s1634_s3 + $0x88] sm:$0xff] %v1146_v52   ;;  %v387_v57 = vmul.f32 0.2, %v259_v47  ;;  %v260_v58 = vadd.f32 %v1320_v7, %v189_v49 }
  0x43   :  { %v448_v56 = vsel %vm320_vm4, %v256_v44, %v384_v53  ;;  %v261_v59 = vadd.f32 %v1320_v7, %v190_v50  ;;  %v449_v60 = vsel %vm321_vm5, %v257_v45, %v385_v54  ;;  %v1017_v62 = vunpack.c.h.bf16 %v1238_v40 }
  0x44   :  { %v450_v61 = vsel %vm322_vm6, %v258_v46, %v386_v55  ;;  %v191_v63 = vmul.f32 %v1016_v51, %v1306_v1  ;;  %v1151_v3 = vpack.c.bf16 %v449_v60, %v448_v56  ;;  %v451_v4 = vsel %vm323_vm7, %v259_v47, %v387_v57  ;;  %v1244_v55 = vld [vmem:[%s1631_s0 + $0xd8] sm:$0xff]  }
  0x45   :  { %vm324_vm8 = vcmp.ge.f32.partialorder %v260_v58, 0.0  ;;  %vm325_vm9 = vcmp.ge.f32.partialorder %v261_v59, 0.0  ;;  %v1156_v5 = vpack.c.bf16 %v451_v4, %v450_v61  ;;  %v388_v6 = vmul.f32 0.2, %v260_v58 }
  0x46   :  { %v389_v8 = vmul.f32 0.2, %v261_v59  ;;  %v192_v9 = vmul.f32 %v1017_v62, %v1306_v1  ;;  %1266 = vst [vmem:[%s1634_s3 + $0x90] sm:$0xff] %v1151_v3   ;;  %v262_v10 = vadd.f32 %v1320_v7, %v191_v63  ;;  %v1020_v11 = vunpack.c.l.bf16 %v1239_v0 }
  0x47   :  { %v1021_v12 = vunpack.c.h.bf16 %v1239_v0  ;;  %v1024_v13 = vunpack.c.l.bf16 %v1240_v2  ;;  %1267 = vst [vmem:[%s1634_s3 + $0x98] sm:$0xff] %v1156_v5   ;;  %v452_v14 = vsel %vm324_vm8, %v260_v58, %v388_v6  ;;  %v1025_v17 = vunpack.c.h.bf16 %v1240_v2 }
  0x48   :  { %v453_v15 = vsel %vm325_vm9, %v261_v59, %v389_v8  ;;  %v263_v16 = vadd.f32 %v1320_v7, %v192_v9  ;;  %vm326_vm10 = vcmp.ge.f32.partialorder %v262_v10, 0.0  ;;  %v390_v20 = vmul.f32 0.2, %v262_v10 }
  0x49   :  { %v1161_v19 = vpack.c.bf16 %v453_v15, %v452_v14  ;;  %v193_v21 = vmul.f32 %v1020_v11, %v1306_v1  ;;  %v194_v23 = vmul.f32 %v1021_v12, %v1306_v1  ;;  %v195_v24 = vmul.f32 %v1024_v13, %v1306_v1  ;;  %v1246_v14 = vld [vmem:[%s1631_s0 + $0xe8] sm:$0xff]  }
  0x4a   :  { %vm327_vm11 = vcmp.ge.f32.partialorder %v263_v16, 0.0  ;;  %v391_v22 = vmul.f32 0.2, %v263_v16  ;;  %v454_v25 = vsel %vm326_vm10, %v262_v10, %v390_v20  ;;  %v196_v27 = vmul.f32 %v1025_v17, %v1306_v1  ;;  %v1245_v10 = vld [vmem:[%s1631_s0 + $0xe0] sm:$0xff]  }
  0x4b   :  { %1268 = vst [vmem:[%s1634_s3 + $0xa0] sm:$0xff] %v1161_v19   ;;  %v264_v26 = vadd.f32 %v1320_v7, %v193_v21  ;;  %v1028_v28 = vunpack.c.l.bf16 %v1241_v18  ;;  %v265_v30 = vadd.f32 %v1320_v7, %v194_v23  ;;  %v266_v31 = vadd.f32 %v1320_v7, %v195_v24 }
  0x4c   :  { %v455_v29 = vsel %vm327_vm11, %v263_v16, %v391_v22  ;;  %v1029_v32 = vunpack.c.h.bf16 %v1241_v18  ;;  %v267_v35 = vadd.f32 %v1320_v7, %v196_v27  ;;  %v1032_v46 = vunpack.c.l.bf16 %v1242_v36 }
  0x4d   :  { %v1166_v33 = vpack.c.bf16 %v455_v29, %v454_v25  ;;  %vm328_vm12 = vcmp.ge.f32.partialorder %v264_v26, 0.0  ;;  %v392_v34 = vmul.f32 0.2, %v264_v26  ;;  %vm329_vm13 = vcmp.ge.f32.partialorder %v265_v30, 0.0 }
  0x4e   :  { %v393_v37 = vmul.f32 0.2, %v265_v30  ;;  %vm330_vm14 = vcmp.ge.f32.partialorder %v266_v31, 0.0  ;;  %v394_v38 = vmul.f32 0.2, %v266_v31  ;;  %vm331_vm15 = vcmp.ge.f32.partialorder %v267_v35, 0.0 }
  0x4f   :  { %1269 = vst [vmem:[%s1634_s3 + $0xa8] sm:$0xff] %v1166_v33   ;;  %v456_v39 = vsel %vm328_vm12, %v264_v26, %v392_v34  ;;  %v395_v40 = vmul.f32 0.2, %v267_v35  ;;  %v197_v41 = vmul.f32 %v1028_v28, %v1306_v1  ;;  %v198_v45 = vmul.f32 %v1029_v32, %v1306_v1 }
  0x50   :  { %v457_v43 = vsel %vm329_vm13, %v265_v30, %v393_v37  ;;  %v458_v44 = vsel %vm330_vm14, %v266_v31, %v394_v38  ;;  %v1033_v50 = vunpack.c.h.bf16 %v1242_v36  ;;  %v199_v53 = vmul.f32 %v1032_v46, %v1306_v1  ;;  %v1247_v30 = vld [vmem:[%s1631_s0 + $0xf0] sm:$0xff]  }
  0x51   :  { %v1171_v47 = vpack.c.bf16 %v457_v43, %v456_v39  ;;  %v459_v48 = vsel %vm331_vm15, %v267_v35, %v395_v40  ;;  %v268_v49 = vadd.f32 %v1320_v7, %v197_v41  ;;  %v269_v52 = vadd.f32 %v1320_v7, %v198_v45 }
  0x52   :  { %v1176_v51 = vpack.c.bf16 %v459_v48, %v458_v44  ;;  %v1036_v54 = vunpack.c.l.bf16 %v1243_v42  ;;  %v200_v57 = vmul.f32 %v1033_v50, %v1306_v1  ;;  %v1037_v58 = vunpack.c.h.bf16 %v1243_v42  ;;  %v1248_v44 = vld [vmem:[%s1631_s0 + $0xf8] sm:$0xff]  }
  0x53   :  { %1270 = vst [vmem:[%s1634_s3 + $0xb0] sm:$0xff] %v1171_v47   ;;  %vm332_vm0 = vcmp.ge.f32.partialorder %v268_v49, 0.0  ;;  %v396_v56 = vmul.f32 0.2, %v268_v49  ;;  %vm333_vm1 = vcmp.ge.f32.partialorder %v269_v52, 0.0  ;;  %v270_v60 = vadd.f32 %v1320_v7, %v199_v53 }
  0x54   :  { %1271 = vst [vmem:[%s1634_s3 + $0xb8] sm:$0xff] %v1176_v51   ;;  %v397_v59 = vmul.f32 0.2, %v269_v52  ;;  %v201_v61 = vmul.f32 %v1036_v54, %v1306_v1  ;;  %v271_v63 = vadd.f32 %v1320_v7, %v200_v57  ;;  %v202_v0 = vmul.f32 %v1037_v58, %v1306_v1 }
  0x55   :  { %v460_v62 = vsel %vm332_vm0, %v268_v49, %v396_v56  ;;  %v1040_v2 = vunpack.c.l.bf16 %v1244_v55  ;;  %vm334_vm2 = vcmp.ge.f32.partialorder %v270_v60, 0.0  ;;  %v398_v4 = vmul.f32 0.2, %v270_v60 }
  0x56   :  { %v461_v3 = vsel %vm333_vm1, %v269_v52, %v397_v59  ;;  %v272_v5 = vadd.f32 %v1320_v7, %v201_v61  ;;  %vm335_vm3 = vcmp.ge.f32.partialorder %v271_v63, 0.0  ;;  %v399_v8 = vmul.f32 0.2, %v271_v63 }
  0x57   :  { %v1181_v6 = vpack.c.bf16 %v461_v3, %v460_v62  ;;  %v273_v9 = vadd.f32 %v1320_v7, %v202_v0  ;;  %v462_v11 = vsel %vm334_vm2, %v270_v60, %v398_v4  ;;  %v1041_v13 = vunpack.c.h.bf16 %v1244_v55 }
  0x58   :  { %vm336_vm4 = vcmp.ge.f32.partialorder %v272_v5, 0.0  ;;  %v400_v12 = vmul.f32 0.2, %v272_v5  ;;  %v463_v15 = vsel %vm335_vm3, %v271_v63, %v399_v8  ;;  %v203_v17 = vmul.f32 %v1040_v2, %v1306_v1 }
  0x59   :  { %1272 = vst [vmem:[%s1634_s3 + $0xc0] sm:$0xff] %v1181_v6   ;;  %vm337_vm5 = vcmp.ge.f32.partialorder %v273_v9, 0.0  ;;  %v401_v16 = vmul.f32 0.2, %v273_v9  ;;  %v1186_v18 = vpack.c.bf16 %v463_v15, %v462_v11  ;;  %v204_v20 = vmul.f32 %v1041_v13, %v1306_v1 }
  0x5a   :  { %v464_v19 = vsel %vm336_vm4, %v272_v5, %v400_v12  ;;  %v1044_v21 = vunpack.c.l.bf16 %v1245_v10  ;;  %v274_v23 = vadd.f32 %v1320_v7, %v203_v17  ;;  %v1045_v24 = vunpack.c.h.bf16 %v1245_v10 }
  0x5b   :  { %v465_v22 = vsel %vm337_vm5, %v273_v9, %v401_v16  ;;  %v1048_v25 = vunpack.c.l.bf16 %v1246_v14  ;;  %1273 = vst [vmem:[%s1634_s3 + $0xc8] sm:$0xff] %v1186_v18   ;;  %v275_v27 = vadd.f32 %v1320_v7, %v204_v20  ;;  %v1049_v29 = vunpack.c.h.bf16 %v1246_v14 }
  0x5c   :  { %v1191_v26 = vpack.c.bf16 %v465_v22, %v464_v19  ;;  %v205_v28 = vmul.f32 %v1044_v21, %v1306_v1  ;;  %vm338_vm6 = vcmp.ge.f32.partialorder %v274_v23, 0.0  ;;  %v402_v31 = vmul.f32 0.2, %v274_v23 }
  0x5d   :  { %v206_v32 = vmul.f32 %v1045_v24, %v1306_v1  ;;  %v207_v33 = vmul.f32 %v1048_v25, %v1306_v1  ;;  %vm339_vm7 = vcmp.ge.f32.partialorder %v275_v27, 0.0  ;;  %v403_v34 = vmul.f32 0.2, %v275_v27 }
  0x5e   :  { %1274 = vst [vmem:[%s1634_s3 + $0xd0] sm:$0xff] %v1191_v26   ;;  %v276_v35 = vadd.f32 %v1320_v7, %v205_v28  ;;  %v208_v36 = vmul.f32 %v1049_v29, %v1306_v1  ;;  %v466_v37 = vsel %vm338_vm6, %v274_v23, %v402_v31  ;;  %v1052_v40 = vunpack.c.l.bf16 %v1247_v30 }
  0x5f   :  { %v277_v38 = vadd.f32 %v1320_v7, %v206_v32  ;;  %v278_v39 = vadd.f32 %v1320_v7, %v207_v33  ;;  %v467_v41 = vsel %vm339_vm7, %v275_v27, %v403_v34  ;;  %v1053_v51 = vunpack.c.h.bf16 %v1247_v30 }
  0x60   :  { %vm340_vm8 = vcmp.ge.f32.partialorder %v276_v35, 0.0  ;;  %v404_v42 = vmul.f32 0.2, %v276_v35  ;;  %v279_v43 = vadd.f32 %v1320_v7, %v208_v36  ;;  %v1196_v45 = vpack.c.bf16 %v467_v41, %v466_v37 }
  0x61   :  { %vm341_vm9 = vcmp.ge.f32.partialorder %v277_v38, 0.0  ;;  %v405_v46 = vmul.f32 0.2, %v277_v38  ;;  %vm342_vm10 = vcmp.ge.f32.partialorder %v278_v39, 0.0  ;;  %v406_v48 = vmul.f32 0.2, %v278_v39 }
  0x62   :  { %v468_v47 = vsel %vm340_vm8, %v276_v35, %v404_v42  ;;  %vm343_vm11 = vcmp.ge.f32.partialorder %v279_v43, 0.0  ;;  %v407_v49 = vmul.f32 0.2, %v279_v43  ;;  %1275 = vst [vmem:[%s1634_s3 + $0xd8] sm:$0xff] %v1196_v45   ;;  %v209_v52 = vmul.f32 %v1052_v40, %v1306_v1 }
  0x63   :  { %v469_v50 = vsel %vm341_vm9, %v277_v38, %v405_v46  ;;  %v1056_v53 = vunpack.c.l.bf16 %v1248_v44  ;;  %v470_v55 = vsel %vm342_vm10, %v278_v39, %v406_v48  ;;  %v1057_v57 = vunpack.c.h.bf16 %v1248_v44 }
  0x64   :  { %v1201_v54 = vpack.c.bf16 %v469_v50, %v468_v47  ;;  %v471_v56 = vsel %vm343_vm11, %v279_v43, %v407_v49  ;;  %v210_v59 = vmul.f32 %v1053_v51, %v1306_v1  ;;  %v280_v60 = vadd.f32 %v1320_v7, %v209_v52 }
  0x65   :  { %v1206_v58 = vpack.c.bf16 %v471_v56, %v470_v55  ;;  %v211_v61 = vmul.f32 %v1056_v53, %v1306_v1  ;;  %v212_v62 = vmul.f32 %v1057_v57, %v1306_v1 }
  0x66   :  { %1276 = vst [vmem:[%s1634_s3 + $0xe0] sm:$0xff] %v1201_v54   ;;  %v281_v63 = vadd.f32 %v1320_v7, %v210_v59  ;;  %vm344_vm12 = vcmp.ge.f32.partialorder %v280_v60, 0.0  ;;  %v408_v0 = vmul.f32 0.2, %v280_v60 }
  0x67   :  { %1277 = vst [vmem:[%s1634_s3 + $0xe8] sm:$0xff] %v1206_v58   ;;  %v282_v2 = vadd.f32 %v1320_v7, %v211_v61  ;;  %v283_v3 = vadd.f32 %v1320_v7, %v212_v62 }
  0x68   :  { %vm345_vm13 = vcmp.ge.f32.partialorder %v281_v63, 0.0  ;;  %v409_v4 = vmul.f32 0.2, %v281_v63  ;;  %v472_v5 = vsel %vm344_vm12, %v280_v60, %v408_v0 }
  0x69   :  { %vm346_vm14 = vcmp.ge.f32.partialorder %v282_v2, 0.0  ;;  %vm347_vm15 = vcmp.ge.f32.partialorder %v283_v3, 0.0  ;;  %v410_v6 = vmul.f32 0.2, %v282_v2  ;;  %v411_v8 = vmul.f32 0.2, %v283_v3 }
  0x6a   :  { %v473_v1 = vsel %vm345_vm13, %v281_v63, %v409_v4 }
  0x6b   :  { %v1211_v9 = vpack.c.bf16 %v473_v1, %v472_v5  ;;  %v474_v10 = vsel %vm346_vm14, %v282_v2, %v410_v6  ;;  %v475_v11 = vsel %vm347_vm15, %v283_v3, %v411_v8 }
  0x6c   :  { %v1216_v12 = vpack.c.bf16 %v475_v11, %v474_v10 }
  0x6d   :  { %1278 = vst [vmem:[%s1634_s3 + $0xf0] sm:$0xff] %v1211_v9  }
  0x6e   :  { %1279 = vst [vmem:[%s1634_s3 + $0xf8] sm:$0xff] %v1216_v12  }

// kernel: dc_discriminator.12
= control target key start
LH: loop header
LB: loop body
LE: loop exit
PB: predicated region body
PF: predicated region fallthrough
CT: control target
= control target key end

     0   :  { %s455_s0 = inlined_call_operand.vmem [shape: bf16[128,128], index: 0, kind: input, shape index: {}]   ;;  %s456_s1 = inlined_call_operand.vmem [shape: f32[1,128], index: 1, kind: input, shape index: {}]   ;;  %s457_s2 = inlined_call_operand.vmem [shape: f32[1,128], index: 2, kind: input, shape index: {}]   ;;  %s458_s3 = inlined_call_operand.vmem [shape: bf16[128,128], index: 3, kind: output, shape index: {}]  }
   0x1   :  { %v259_v0 = vld [vmem:[%s455_s0] sm:$0xff]   ;;  %v330_v4 = vld [vmem:[%s455_s0 + $0x8] sm:$0xff]   ;;  %v331_v5 = vld [vmem:[%s455_s0 + $0x10] sm:$0xff]  }
   0x2   :  { %v370_v1 = vld [vmem:[%s456_s1] ss:$0 sm:$0xff]  ;;  %v260_v2 = vunpack.c.l.bf16 %v259_v0  ;;  %v261_v3 = vunpack.c.h.bf16 %v259_v0  ;;  %v332_v6 = vld [vmem:[%s455_s0 + $0x18] sm:$0xff]   ;;  %v264_v8 = vunpack.c.l.bf16 %v330_v4  ;;  %v265_v9 = vunpack.c.h.bf16 %v330_v4  ;;  %v334_v35 = vld [vmem:[%s455_s0 + $0x28] sm:$0xff]  }
   0x3   :  { %v384_v7 = vld [vmem:[%s457_s2] ss:$0 sm:$0xff]  ;;  %v268_v10 = vunpack.c.l.bf16 %v331_v5  ;;  %v269_v11 = vunpack.c.h.bf16 %v331_v5  ;;  %v272_v14 = vunpack.c.l.bf16 %v332_v6  ;;  %v273_v15 = vunpack.c.h.bf16 %v332_v6  ;;  %v335_v48 = vld [vmem:[%s455_s0 + $0x30] sm:$0xff]   ;;  %v336_v4 = vld [vmem:[%s455_s0 + $0x38] sm:$0xff]  }
   0x4   :  { %v53_v12 = vmul.f32 %v260_v2, %v370_v1  ;;  %v54_v13 = vmul.f32 %v261_v3, %v370_v1  ;;  %v55_v16 = vmul.f32 %v264_v8, %v370_v1  ;;  %v56_v17 = vmul.f32 %v265_v9, %v370_v1  ;;  %v333_v34 = vld [vmem:[%s455_s0 + $0x20] sm:$0xff]  }
   0x5   :  { %v57_v18 = vmul.f32 %v268_v10, %v370_v1  ;;  %v58_v19 = vmul.f32 %v269_v11, %v370_v1  ;;  %v59_v22 = vmul.f32 %v272_v14, %v370_v1  ;;  %v60_v23 = vmul.f32 %v273_v15, %v370_v1 }
   0x6   :  { %v76_v20 = vadd.f32 %v384_v7, %v53_v12  ;;  %v77_v21 = vadd.f32 %v384_v7, %v54_v13  ;;  %v78_v24 = vadd.f32 %v384_v7, %v55_v16  ;;  %v79_v25 = vadd.f32 %v384_v7, %v56_v17 }
   0x7   :  { %v80_v26 = vadd.f32 %v384_v7, %v57_v18  ;;  %v81_v27 = vadd.f32 %v384_v7, %v58_v19  ;;  %v82_v42 = vadd.f32 %v384_v7, %v59_v22  ;;  %v83_v43 = vadd.f32 %v384_v7, %v60_v23 }
   0x8   :  { %vm92_vm0 = vcmp.ge.f32.partialorder %v76_v20, 0.0  ;;  %vm93_vm1 = vcmp.ge.f32.partialorder %v77_v21, 0.0  ;;  %v108_v28 = vmul.f32 0.2, %v76_v20  ;;  %v109_v29 = vmul.f32 0.2, %v77_v21 }
   0x9   :  { %vm94_vm2 = vcmp.ge.f32.partialorder %v78_v24, 0.0  ;;  %vm95_vm3 = vcmp.ge.f32.partialorder %v79_v25, 0.0  ;;  %v110_v30 = vmul.f32 0.2, %v78_v24  ;;  %v111_v31 = vmul.f32 0.2, %v79_v25 }
   0xa   :  { %v124_v32 = vsel %vm92_vm0, %v76_v20, %v108_v28  ;;  %v125_v33 = vsel %vm93_vm1, %v77_v21, %v109_v29  ;;  %vm96_vm4 = vcmp.ge.f32.partialorder %v80_v26, 0.0  ;;  %vm97_vm5 = vcmp.ge.f32.partialorder %v81_v27, 0.0 }
   0xb   :  { %v293_v36 = vpack.c.bf16 %v125_v33, %v124_v32  ;;  %v126_v37 = vsel %vm94_vm2, %v78_v24, %v110_v30  ;;  %v127_v38 = vsel %vm95_vm3, %v79_v25, %v111_v31  ;;  %v112_v39 = vmul.f32 0.2, %v80_v26 }
   0xc   :  { %v298_v40 = vpack.c.bf16 %v127_v38, %v126_v37  ;;  %v113_v41 = vmul.f32 0.2, %v81_v27  ;;  %v276_v45 = vunpack.c.l.bf16 %v333_v34  ;;  %v277_v46 = vunpack.c.h.bf16 %v333_v34 }
   0xd   :  { %294 = vst [vmem:[%s458_s3] sm:$0xff] %v293_v36   ;;  %v128_v44 = vsel %vm96_vm4, %v80_v26, %v112_v39  ;;  %v280_v47 = vunpack.c.l.bf16 %v334_v35  ;;  %vm98_vm6 = vcmp.ge.f32.partialorder %v82_v42, 0.0  ;;  %vm99_vm7 = vcmp.ge.f32.partialorder %v83_v43, 0.0 }
   0xe   :  { %337 = vst [vmem:[%s458_s3 + $0x8] sm:$0xff] %v298_v40   ;;  %v129_v49 = vsel %vm97_vm5, %v81_v27, %v113_v41  ;;  %v114_v50 = vmul.f32 0.2, %v82_v42  ;;  %v115_v52 = vmul.f32 0.2, %v83_v43  ;;  %v61_v53 = vmul.f32 %v276_v45, %v370_v1 }
   0xf   :  { %v303_v51 = vpack.c.bf16 %v129_v49, %v128_v44  ;;  %v62_v54 = vmul.f32 %v277_v46, %v370_v1  ;;  %v281_v56 = vunpack.c.h.bf16 %v334_v35  ;;  %v63_v57 = vmul.f32 %v280_v47, %v370_v1 }
  0x10   :  { %v130_v55 = vsel %vm98_vm6, %v82_v42, %v114_v50  ;;  %v284_v58 = vunpack.c.l.bf16 %v335_v48  ;;  %v131_v59 = vsel %vm99_vm7, %v83_v43, %v115_v52  ;;  %v84_v60 = vadd.f32 %v384_v7, %v61_v53 }
  0x11   :  { %338 = vst [vmem:[%s458_s3 + $0x10] sm:$0xff] %v303_v51   ;;  %v85_v61 = vadd.f32 %v384_v7, %v62_v54  ;;  %v285_v62 = vunpack.c.h.bf16 %v335_v48  ;;  %v308_v63 = vpack.c.bf16 %v131_v59, %v130_v55  ;;  %v64_v0 = vmul.f32 %v281_v56, %v370_v1 }
  0x12   :  { %v86_v2 = vadd.f32 %v384_v7, %v63_v57  ;;  %v65_v3 = vmul.f32 %v284_v58, %v370_v1  ;;  %vm100_vm8 = vcmp.ge.f32.partialorder %v84_v60, 0.0  ;;  %v116_v5 = vmul.f32 0.2, %v84_v60 }
  0x13   :  { %vm101_vm9 = vcmp.ge.f32.partialorder %v85_v61, 0.0  ;;  %v117_v6 = vmul.f32 0.2, %v85_v61  ;;  %339 = vst [vmem:[%s458_s3 + $0x18] sm:$0xff] %v308_v63   ;;  %v87_v8 = vadd.f32 %v384_v7, %v64_v0  ;;  %v66_v10 = vmul.f32 %v285_v62, %v370_v1 }
  0x14   :  { %vm102_vm10 = vcmp.ge.f32.partialorder %v86_v2, 0.0  ;;  %v118_v9 = vmul.f32 0.2, %v86_v2  ;;  %v132_v11 = vsel %vm100_vm8, %v84_v60, %v116_v5  ;;  %v88_v13 = vadd.f32 %v384_v7, %v65_v3 }
  0x15   :  { %v133_v12 = vsel %vm101_vm9, %v85_v61, %v117_v6  ;;  %v288_v14 = vunpack.c.l.bf16 %v336_v4  ;;  %vm103_vm11 = vcmp.ge.f32.partialorder %v87_v8, 0.0  ;;  %v119_v16 = vmul.f32 0.2, %v87_v8 }
  0x16   :  { %v313_v15 = vpack.c.bf16 %v133_v12, %v132_v11  ;;  %v134_v17 = vsel %vm102_vm10, %v86_v2, %v118_v9  ;;  %v89_v18 = vadd.f32 %v384_v7, %v66_v10  ;;  %vm104_vm12 = vcmp.ge.f32.partialorder %v88_v13, 0.0 }
  0x17   :  { %v120_v19 = vmul.f32 0.2, %v88_v13  ;;  %v289_v20 = vunpack.c.h.bf16 %v336_v4  ;;  %v135_v21 = vsel %vm103_vm11, %v87_v8, %v119_v16  ;;  %v67_v22 = vmul.f32 %v288_v14, %v370_v1 }
  0x18   :  { %340 = vst [vmem:[%s458_s3 + $0x20] sm:$0xff] %v313_v15   ;;  %v318_v23 = vpack.c.bf16 %v135_v21, %v134_v17  ;;  %vm105_vm13 = vcmp.ge.f32.partialorder %v89_v18, 0.0  ;;  %v121_v24 = vmul.f32 0.2, %v89_v18 }
  0x19   :  { %v136_v25 = vsel %vm104_vm12, %v88_v13, %v120_v19  ;;  %v68_v26 = vmul.f32 %v289_v20, %v370_v1  ;;  %v90_v27 = vadd.f32 %v384_v7, %v67_v22 }
  0x1a   :  { %341 = vst [vmem:[%s458_s3 + $0x28] sm:$0xff] %v318_v23   ;;  %v137_v28 = vsel %vm105_vm13, %v89_v18, %v121_v24 }
  0x1b   :  { %v323_v29 = vpack.c.bf16 %v137_v28, %v136_v25  ;;  %v91_v30 = vadd.f32 %v384_v7, %v68_v26  ;;  %vm106_vm14 = vcmp.ge.f32.partialorder %v90_v27, 0.0  ;;  %v122_v31 = vmul.f32 0.2, %v90_v27 }
  0x1d   :  { %342 = vst [vmem:[%s458_s3 + $0x30] sm:$0xff] %v323_v29   ;;  %vm107_vm15 = vcmp.ge.f32.partialorder %v91_v30, 0.0  ;;  %v123_v32 = vmul.f32 0.2, %v91_v30  ;;  %v138_v33 = vsel %vm106_vm14, %v90_v27, %v122_v31 }
  0x1f   :  { %v139_v1 = vsel %vm107_vm15, %v91_v30, %v123_v32 }
  0x20   :  { %v328_v34 = vpack.c.bf16 %v139_v1, %v138_v33 }
  0x22   :  { %343 = vst [vmem:[%s458_s3 + $0x38] sm:$0xff] %v328_v34  }

// kernel: dc_discriminator.11
= control target key start
LH: loop header
LB: loop body
LE: loop exit
PB: predicated region body
PF: predicated region fallthrough
CT: control target
= control target key end

     0   :  { %s975_s1 = inlined_call_operand.vmem [shape: bf16[256,128], index: 1, kind: input, shape index: {}]   ;;  %s976_s0 = inlined_call_operand.vmem [shape: bf16[128,256], index: 0, kind: input, shape index: {}]   ;;  %s977_s2 = inlined_call_operand.vmem [shape: bf16[128,128], index: 2, kind: output, shape index: {0}]   ;;  %s978_s3 = inlined_call_operand.vmem [shape: f32[1,8,128], index: 3, kind: output, shape index: {1}]   ;;  %s979_s4 = inlined_call_operand.vmem [shape: f32[1,8,128], index: 4, kind: output, shape index: {2}]  }
   0x1   :  { %v766_v0 = vld [vmem:[%s975_s1 + $0x40] sm:$0xff]   ;;  %v768_v2 = vld [vmem:[%s975_s1 + $0x48] sm:$0xff]   ;;  %v770_v4 = vld [vmem:[%s975_s1 + $0x50] sm:$0xff]  }
   0x2   :  { %v767_v1 = vld [vmem:[%s975_s1] sm:$0xff]   ;;  %686 = vmatprep.subr.bf16.mxu0 %v766_v0  ;;  %750 = vmatprep.subr.bf16.mxu1 %v766_v0  ;;  %v769_v3 = vld [vmem:[%s975_s1 + $0x8] sm:$0xff]   ;;  %v771_v5 = vld [vmem:[%s975_s1 + $0x10] sm:$0xff]  }
   0x3   :  { %687 = vmatpush3.bf16.msra.mxu0 %v767_v1  ;;  %758 = vmatpush3.bf16.msra.mxu1 %v767_v1  ;;  %v772_v6 = vld [vmem:[%s975_s1 + $0x58] sm:$0xff]   ;;  %v774_v8 = vld [vmem:[%s975_s1 + $0x60] sm:$0xff]   ;;  %v776_v10 = vld [vmem:[%s975_s1 + $0x68] sm:$0xff]  }
   0x4   :  { %688 = vmatprep.subr.bf16.mxu0 %v768_v2  ;;  %751 = vmatprep.subr.bf16.mxu1 %v768_v2  ;;  %v773_v7 = vld [vmem:[%s975_s1 + $0x18] sm:$0xff]   ;;  %v775_v9 = vld [vmem:[%s975_s1 + $0x20] sm:$0xff]   ;;  %v777_v12 = vld [vmem:[%s975_s1 + $0x28] sm:$0xff]  }
   0x5   :  { %v784_v11 = vld [vmem:[%s976_s0 + $0x4] ss:$8 sps:$4 sm:$0xff]   ;;  %v778_v14 = vld [vmem:[%s975_s1 + $0x70] sm:$0xff]   ;;  %v780_v16 = vld [vmem:[%s975_s1 + $0x78] sm:$0xff]  }
   0x6   :  { %v790_v13 = vld [vmem:[%s976_s0 + $0x44] ss:$8 sps:$4 sm:$0xff]   ;;  %307 = vmatprep.mubr.bf16.mxu0 %v784_v11  ;;  %v779_v15 = vld [vmem:[%s975_s1 + $0x30] sm:$0xff]   ;;  %v781_v17 = vld [vmem:[%s975_s1 + $0x38] sm:$0xff]  }
   0x7   :  { %689 = vmatpush3.bf16.msra.mxu0 %v769_v3  ;;  %759 = vmatpush3.bf16.msra.mxu1 %v769_v3  ;;  %v782_v18 = vld [vmem:[%s976_s0] ss:$8 sps:$4 sm:$0xff]   ;;  %v785_v20 = vld [vmem:[%s976_s0 + $0x14] ss:$8 sps:$4 sm:$0xff]   ;;  %v787_v22 = vld [vmem:[%s976_s0 + $0x10] ss:$8 sps:$4 sm:$0xff]  }
   0x8   :  { %690 = vmatprep.subr.bf16.mxu0 %v770_v4  ;;  %752 = vmatprep.subr.bf16.mxu1 %v770_v4  ;;  %v788_v19 = vld [vmem:[%s976_s0 + $0x40] ss:$8 sps:$4 sm:$0xff]   ;;  %v794_v21 = vld [vmem:[%s976_s0 + $0x54] ss:$8 sps:$4 sm:$0xff]   ;;  %v796_v23 = vld [vmem:[%s976_s0 + $0x50] ss:$8 sps:$4 sm:$0xff]  }
   0x9   :  { %339 = vmatprep.mubr.bf16.mxu1 %v790_v13  ;;  %v791_v24 = vld [vmem:[%s976_s0 + $0x24] ss:$8 sps:$4 sm:$0xff]   ;;  %v793_v26 = vld [vmem:[%s976_s0 + $0x20] ss:$8 sps:$4 sm:$0xff]   ;;  %v797_v28 = vld [vmem:[%s976_s0 + $0x34] ss:$8 sps:$4 sm:$0xff]  }
   0xa   :  { %v800_v25 = vld [vmem:[%s976_s0 + $0x64] ss:$8 sps:$4 sm:$0xff]   ;;  %v802_v27 = vld [vmem:[%s976_s0 + $0x60] ss:$8 sps:$4 sm:$0xff]   ;;  %v803_v29 = vld [vmem:[%s976_s0 + $0x74] ss:$8 sps:$4 sm:$0xff]  }
   0xb   :  { %691 = vmatpush3.bf16.msra.mxu0 %v771_v5  ;;  %760 = vmatpush3.bf16.msra.mxu1 %v771_v5  ;;  %v799_v30 = vld [vmem:[%s976_s0 + $0x30] ss:$8 sps:$4 sm:$0xff]  }
   0xc   :  { %692 = vmatprep.subr.bf16.mxu0 %v772_v6  ;;  %753 = vmatprep.subr.bf16.mxu1 %v772_v6  ;;  %v805_v31 = vld [vmem:[%s976_s0 + $0x70] ss:$8 sps:$4 sm:$0xff]  }
   0xf   :  { %693 = vmatpush3.bf16.msra.mxu0 %v773_v7  ;;  %761 = vmatpush3.bf16.msra.mxu1 %v773_v7 }
  0x10   :  { %694 = vmatprep.subr.bf16.mxu0 %v774_v8  ;;  %754 = vmatprep.subr.bf16.mxu1 %v774_v8 }
  0x13   :  { %695 = vmatpush3.bf16.msra.mxu0 %v775_v9  ;;  %762 = vmatpush3.bf16.msra.mxu1 %v775_v9 }
  0x14   :  { %696 = vmatprep.subr.bf16.mxu0 %v776_v10  ;;  %755 = vmatprep.subr.bf16.mxu1 %v776_v10 }
  0x17   :  { %697 = vmatpush3.bf16.msra.mxu0 %v777_v12  ;;  %763 = vmatpush3.bf16.msra.mxu1 %v777_v12 }
  0x18   :  { %698 = vmatprep.subr.bf16.mxu0 %v778_v14  ;;  %756 = vmatprep.subr.bf16.mxu1 %v778_v14 }
  0x1b   :  { %699 = vmatpush3.bf16.msra.mxu0 %v779_v15  ;;  %764 = vmatpush3.bf16.msra.mxu1 %v779_v15 }
  0x1c   :  { %700 = vmatprep.subr.bf16.mxu0 %v780_v16  ;;  %757 = vmatprep.subr.bf16.mxu1 %v780_v16 }
  0x1f   :  { %701 = vmatpush3.bf16.msra.mxu0 %v781_v17  ;;  %765 = vmatpush3.bf16.msra.mxu1 %v781_v17 }
  0x22   :  { %308 = vmatmul.mubr.bf16.vlgmr.msra.gmra.mrb[0].mxu0 %v782_v18  ;;  %340 = vmatmul.mubr.bf16.vlgmr.msra.gmra.mrb[0].mxu1 %v788_v19 }
  0x23   :  { %315 = vmatprep.mubr.bf16.mxu0 %v785_v20  ;;  %347 = vmatprep.mubr.bf16.mxu1 %v794_v21 }
  0x2a   :  { %316 = vmatmul.mubr.bf16.gmra.mrb[4].mxu0 %v787_v22  ;;  %348 = vmatmul.mubr.bf16.gmra.mrb[4].mxu1 %v796_v23 }
  0x2b   :  { %323 = vmatprep.mubr.bf16.mxu0 %v791_v24  ;;  %355 = vmatprep.mubr.bf16.mxu1 %v800_v25 }
  0x32   :  { %324 = vmatmul.mubr.bf16.gmra.mrb[8].mxu0 %v793_v26  ;;  %356 = vmatmul.mubr.bf16.gmra.mrb[8].mxu1 %v802_v27 }
  0x33   :  { %331 = vmatprep.mubr.bf16.mxu0 %v797_v28  ;;  %363 = vmatprep.mubr.bf16.mxu1 %v803_v29 }
  0x3a   :  { %332 = vmatmul.mubr.bf16.gmra.mrb[12].mxu0 %v799_v30  ;;  %364 = vmatmul.mubr.bf16.gmra.mrb[12].mxu1 %v805_v31 }
  0xf5   :  { %v702_v32 = vpop.f32.mrb[0].mxu0  ;;  %v726_v33 = vpop.f32.mrb[0].mxu1 }
  0xf6   :  { %v703_v34 = vpop.f32.mrb[1].mxu0  ;;  %v727_v35 = vpop.f32.mrb[1].mxu1 }
  0xf7   :  { %v704_v36 = vadd.f32 %v703_v34, %v702_v32  ;;  %v705_v37 = vpop.f32.mrb[2].mxu0  ;;  %v927_v38 = vadd.f32 %v727_v35, %v726_v33  ;;  %v729_v39 = vpop.f32.mrb[2].mxu1 }
  0xf8   :  { %v706_v40 = vpop.f32.mrb[3].mxu0  ;;  %v730_v41 = vpop.f32.mrb[3].mxu1 }
  0xf9   :  { %v707_v42 = vadd.f32 %v706_v40, %v705_v37  ;;  %v929_v43 = vadd.f32 %v730_v41, %v729_v39  ;;  %v524_v44 = vmul.f32 %v704_v36, %v704_v36 }
  0xfb   :  { %v642_v45 = vpack.c.bf16 %v707_v42, %v704_v36  ;;  %v503_v46 = vadd.f32 %v707_v42, %v704_v36  ;;  %v525_v47 = vmul.f32 %v707_v42, %v707_v42  ;;  %v662_v48 = vpack.c.bf16 %v929_v43, %v927_v38 }
  0xfd   :  { %643 = vst [vmem:[%s977_s2] sm:$0xff] %v642_v45   ;;  %v540_v49 = vadd.f32 %v525_v47, %v524_v44  ;;  %v708_v50 = vpop.f32.mrb[4].mxu0  ;;  %682 = vst [vmem:[%s977_s2 + $0x20] sm:$0xff] %v662_v48   ;;  %v732_v51 = vpop.f32.mrb[4].mxu1  ;;  %v532_v47 = vmul.f32 %v927_v38, %v927_v38 }
  0xfe   :  { %v709_v52 = vpop.f32.mrb[5].mxu0  ;;  %v733_v53 = vpop.f32.mrb[5].mxu1 }
  0xff   :  { %v710_v54 = vadd.f32 %v709_v52, %v708_v50  ;;  %v711_v55 = vpop.f32.mrb[6].mxu0  ;;  %v939_v56 = vadd.f32 %v733_v53, %v732_v51  ;;  %v735_v57 = vpop.f32.mrb[6].mxu1  ;;  %v533_v50 = vmul.f32 %v929_v43, %v929_v43 }
 0x100   :  { %v712_v58 = vpop.f32.mrb[7].mxu0  ;;  %v736_v59 = vpop.f32.mrb[7].mxu1 }
 0x101   :  { %v504_v60 = vadd.f32 %v710_v54, %v503_v46  ;;  %v526_v61 = vmul.f32 %v710_v54, %v710_v54  ;;  %v713_v62 = vadd.f32 %v712_v58, %v711_v55  ;;  %v737_v63 = vadd.f32 %v736_v59, %v735_v57 }
 0x102   :  { %v534_v53 = vmul.f32 %v939_v56, %v939_v56 }
 0x103   :  { %v541_v0 = vadd.f32 %v540_v49, %v526_v61  ;;  %v647_v1 = vpack.c.bf16 %v713_v62, %v710_v54  ;;  %v505_v2 = vadd.f32 %v713_v62, %v504_v60  ;;  %v527_v3 = vmul.f32 %v713_v62, %v713_v62 }
 0x104   :  { %v667_v4 = vpack.c.bf16 %v737_v63, %v939_v56  ;;  %v535_v57 = vmul.f32 %v737_v63, %v737_v63 }
 0x105   :  { %679 = vst [vmem:[%s977_s2 + $0x8] sm:$0xff] %v647_v1   ;;  %v542_v5 = vadd.f32 %v541_v0, %v527_v3  ;;  %v714_v6 = vpop.f32.mrb[8].mxu0  ;;  %v738_v7 = vpop.f32.mrb[8].mxu1 }
 0x106   :  { %v715_v8 = vpop.f32.mrb[9].mxu0  ;;  %683 = vst [vmem:[%s977_s2 + $0x28] sm:$0xff] %v667_v4   ;;  %v739_v9 = vpop.f32.mrb[9].mxu1 }
 0x107   :  { %v716_v10 = vadd.f32 %v715_v8, %v714_v6  ;;  %v717_v11 = vpop.f32.mrb[10].mxu0  ;;  %v740_v12 = vadd.f32 %v739_v9, %v738_v7  ;;  %v741_v13 = vpop.f32.mrb[10].mxu1 }
 0x108   :  { %v718_v14 = vpop.f32.mrb[11].mxu0  ;;  %v742_v15 = vpop.f32.mrb[11].mxu1 }
 0x109   :  { %v506_v16 = vadd.f32 %v716_v10, %v505_v2  ;;  %v528_v17 = vmul.f32 %v716_v10, %v716_v10  ;;  %v719_v18 = vadd.f32 %v718_v14, %v717_v11  ;;  %v743_v19 = vadd.f32 %v742_v15, %v741_v13 }
 0x10a   :  { %v536_v60 = vmul.f32 %v740_v12, %v740_v12 }
 0x10b   :  { %v543_v20 = vadd.f32 %v542_v5, %v528_v17  ;;  %v652_v21 = vpack.c.bf16 %v719_v18, %v716_v10  ;;  %v507_v22 = vadd.f32 %v719_v18, %v506_v16  ;;  %v529_v23 = vmul.f32 %v719_v18, %v719_v18 }
 0x10c   :  { %v672_v24 = vpack.c.bf16 %v743_v19, %v740_v12  ;;  %v537_v1 = vmul.f32 %v743_v19, %v743_v19 }
 0x10d   :  { %680 = vst [vmem:[%s977_s2 + $0x10] sm:$0xff] %v652_v21   ;;  %v544_v25 = vadd.f32 %v543_v20, %v529_v23  ;;  %v720_v26 = vpop.f32.mrb[12].mxu0  ;;  %v744_v27 = vpop.f32.mrb[12].mxu1 }
 0x10e   :  { %v721_v28 = vpop.f32.mrb[13].mxu0  ;;  %684 = vst [vmem:[%s977_s2 + $0x30] sm:$0xff] %v672_v24   ;;  %v745_v29 = vpop.f32.mrb[13].mxu1 }
 0x10f   :  { %v722_v30 = vadd.f32 %v721_v28, %v720_v26  ;;  %v723_v31 = vpop.f32.mrb[14].mxu0  ;;  %v746_v32 = vadd.f32 %v745_v29, %v744_v27  ;;  %v747_v33 = vpop.f32.mrb[14].mxu1 }
 0x110   :  { %v724_v34 = vpop.f32.mrb[15].mxu0  ;;  %v748_v35 = vpop.f32.mrb[15].mxu1 }
 0x111   :  { %v508_v36 = vadd.f32 %v722_v30, %v507_v22  ;;  %v530_v37 = vmul.f32 %v722_v30, %v722_v30  ;;  %v725_v39 = vadd.f32 %v724_v34, %v723_v31  ;;  %v749_v40 = vadd.f32 %v748_v35, %v747_v33 }
 0x112   :  { %v538_v2 = vmul.f32 %v746_v32, %v746_v32 }
 0x113   :  { %v545_v41 = vadd.f32 %v544_v25, %v530_v37  ;;  %v657_v42 = vpack.c.bf16 %v725_v39, %v722_v30  ;;  %v509_v44 = vadd.f32 %v725_v39, %v508_v36  ;;  %v531_v45 = vmul.f32 %v725_v39, %v725_v39 }
 0x114   :  { %v677_v46 = vpack.c.bf16 %v749_v40, %v746_v32  ;;  %v539_v6 = vmul.f32 %v749_v40, %v749_v40 }
 0x115   :  { %681 = vst [vmem:[%s977_s2 + $0x18] sm:$0xff] %v657_v42   ;;  %v510_v48 = vadd.f32 %v927_v38, %v509_v44  ;;  %v546_v49 = vadd.f32 %v545_v41, %v531_v45 }
 0x116   :  { %685 = vst [vmem:[%s977_s2 + $0x38] sm:$0xff] %v677_v46  }
 0x117   :  { %v511_v51 = vadd.f32 %v929_v43, %v510_v48  ;;  %v547_v52 = vadd.f32 %v546_v49, %v532_v47 }
 0x119   :  { %v548_v54 = vadd.f32 %v547_v52, %v533_v50  ;;  %v512_v55 = vadd.f32 %v939_v56, %v511_v51 }
 0x11b   :  { %v513_v58 = vadd.f32 %v737_v63, %v512_v55  ;;  %v549_v38 = vadd.f32 %v548_v54, %v534_v53 }
 0x11d   :  { %v514_v59 = vadd.f32 %v740_v12, %v513_v58  ;;  %v550_v61 = vadd.f32 %v549_v38, %v535_v57 }
 0x11f   :  { %v551_v62 = vadd.f32 %v550_v61, %v536_v60  ;;  %v515_v0 = vadd.f32 %v743_v19, %v514_v59 }
 0x121   :  { %v552_v3 = vadd.f32 %v551_v62, %v537_v1  ;;  %v516_v4 = vadd.f32 %v746_v32, %v515_v0 }
 0x123   :  { %v553_v43 = vadd.f32 %v552_v3, %v538_v2  ;;  %v517_v5 = vadd.f32 %v749_v40, %v516_v4 }
 0x125   :  { %v518_v7 = vrot.slane %v517_v5, 4  ;;  %v554_v8 = vadd.f32 %v553_v43, %v539_v6 }
 0x127   :  { %v519_v9 = vadd.f32 %v518_v7, %v517_v5  ;;  %v555_v10 = vrot.slane %v554_v8, 4 }
 0x129   :  { %v520_v56 = vrot.slane %v519_v9, 2  ;;  %v556_v11 = vadd.f32 %v555_v10, %v554_v8 }
 0x12b   :  { %v521_v63 = vadd.f32 %v520_v56, %v519_v9  ;;  %v557_v13 = vrot.slane %v556_v11, 2 }
 0x12d   :  { %v522_v14 = vrot.slane %v521_v63, 1  ;;  %v558_v12 = vadd.f32 %v557_v13, %v556_v11 }
 0x12f   :  { %v523_v15 = vadd.f32 %v522_v14, %v521_v63  ;;  %v559_v16 = vrot.slane %v558_v12, 1 }
 0x131   :  { %v560_v17 = vadd.f32 %v559_v16, %v558_v12  ;;  %561 = vst [vmem:[%s978_s3] sm:$0xff] %v523_v15 }
 0x133   :  { %562 = vst [vmem:[%s979_s4] sm:$0xff] %v560_v17 }

// kernel: dc_discriminator.14
= control target key start
LH: loop header
LB: loop body
LE: loop exit
PB: predicated region body
PF: predicated region fallthrough
CT: control target
= control target key end

     0   :  { %s148_s0 = inlined_call_operand.vmem [shape: bf16[32,128], index: 0, kind: input, shape index: {}]   ;;  %s149_s1 = inlined_call_operand.vmem [shape: f32[1,128], index: 1, kind: input, shape index: {}]   ;;  %s150_s2 = inlined_call_operand.vmem [shape: f32[1,128], index: 2, kind: input, shape index: {}]   ;;  %s151_s3 = inlined_call_operand.vmem [shape: bf16[32,128], index: 3, kind: output, shape index: {}]  }
   0x1   :  { %v91_v0 = vld [vmem:[%s148_s0] sm:$0xff]   ;;  %v108_v4 = vld [vmem:[%s148_s0 + $0x8] sm:$0xff]  }
   0x2   :  { %v80_v1 = vld [vmem:[%s149_s1] ss:$0 sm:$0xff]  ;;  %v92_v2 = vunpack.c.l.bf16 %v91_v0  ;;  %v93_v3 = vunpack.c.h.bf16 %v91_v0  ;;  %v96_v6 = vunpack.c.l.bf16 %v108_v4  ;;  %v97_v7 = vunpack.c.h.bf16 %v108_v4 }
   0x3   :  { %v81_v5 = vld [vmem:[%s150_s2] ss:$0 sm:$0xff] }
   0x4   :  { %v29_v8 = vmul.f32 %v92_v2, %v80_v1  ;;  %v30_v9 = vmul.f32 %v93_v3, %v80_v1  ;;  %v31_v10 = vmul.f32 %v96_v6, %v80_v1  ;;  %v32_v11 = vmul.f32 %v97_v7, %v80_v1 }
   0x6   :  { %v40_v12 = vadd.f32 %v81_v5, %v29_v8  ;;  %v41_v13 = vadd.f32 %v81_v5, %v30_v9  ;;  %v42_v14 = vadd.f32 %v81_v5, %v31_v10  ;;  %v43_v15 = vadd.f32 %v81_v5, %v32_v11 }
   0x8   :  { %vm44_vm0 = vcmp.ge.f32.partialorder %v40_v12, 0.0  ;;  %vm45_vm1 = vcmp.ge.f32.partialorder %v41_v13, 0.0  ;;  %v48_v16 = vmul.f32 0.2, %v40_v12  ;;  %v49_v17 = vmul.f32 0.2, %v41_v13 }
   0x9   :  { %vm46_vm2 = vcmp.ge.f32.partialorder %v42_v14, 0.0  ;;  %vm47_vm3 = vcmp.ge.f32.partialorder %v43_v15, 0.0  ;;  %v50_v18 = vmul.f32 0.2, %v42_v14  ;;  %v51_v19 = vmul.f32 0.2, %v43_v15 }
   0xa   :  { %v52_v20 = vsel %vm44_vm0, %v40_v12, %v48_v16  ;;  %v53_v21 = vsel %vm45_vm1, %v41_v13, %v49_v17 }
   0xb   :  { %v101_v22 = vpack.c.bf16 %v53_v21, %v52_v20  ;;  %v54_v23 = vsel %vm46_vm2, %v42_v14, %v50_v18  ;;  %v55_v24 = vsel %vm47_vm3, %v43_v15, %v51_v19 }
   0xc   :  { %v106_v25 = vpack.c.bf16 %v55_v24, %v54_v23 }
   0xd   :  { %102 = vst [vmem:[%s151_s3] sm:$0xff] %v101_v22  }
   0xe   :  { %109 = vst [vmem:[%s151_s3 + $0x8] sm:$0xff] %v106_v25  }

// kernel: dc_discriminator.13
= control target key start
LH: loop header
LB: loop body
LE: loop exit
PB: predicated region body
PF: predicated region fallthrough
CT: control target
= control target key end

     0   :  { %s816_s1 = inlined_call_operand.vmem [shape: bf16[512,128], index: 1, kind: input, shape index: {}]   ;;  %s817_s0 = inlined_call_operand.vmem [shape: bf16[32,512], index: 0, kind: input, shape index: {}]   ;;  %s818_s2 = inlined_call_operand.vmem [shape: bf16[32,128], index: 2, kind: output, shape index: {0}]   ;;  %s819_s3 = inlined_call_operand.vmem [shape: f32[1,8,128], index: 3, kind: output, shape index: {1}]   ;;  %s820_s4 = inlined_call_operand.vmem [shape: f32[1,8,128], index: 4, kind: output, shape index: {2}]  }
   0x1   :  { %v615_v0 = vld [vmem:[%s816_s1 + $0x40] sm:$0xff]   ;;  %v619_v4 = vld [vmem:[%s816_s1 + $0x48] sm:$0xff]   ;;  %v623_v8 = vld [vmem:[%s816_s1 + $0x50] sm:$0xff]  }
   0x2   :  { %v616_v1 = vld [vmem:[%s816_s1 + $0xc0] sm:$0xff]   ;;  %559 = vmatprep.subr.bf16.mxu0 %v615_v0  ;;  %v620_v5 = vld [vmem:[%s816_s1 + $0xc8] sm:$0xff]   ;;  %v624_v9 = vld [vmem:[%s816_s1 + $0xd0] sm:$0xff]  }
   0x3   :  { %v617_v2 = vld [vmem:[%s816_s1] sm:$0xff]   ;;  %587 = vmatprep.subr.bf16.mxu1 %v616_v1  ;;  %v621_v6 = vld [vmem:[%s816_s1 + $0x8] sm:$0xff]   ;;  %v625_v10 = vld [vmem:[%s816_s1 + $0x10] sm:$0xff]  }
   0x4   :  { %v618_v3 = vld [vmem:[%s816_s1 + $0x80] sm:$0xff]   ;;  %560 = vmatpush3.bf16.msra.mxu0 %v617_v2  ;;  %v622_v7 = vld [vmem:[%s816_s1 + $0x88] sm:$0xff]   ;;  %v626_v11 = vld [vmem:[%s816_s1 + $0x90] sm:$0xff]  }
   0x5   :  { %588 = vmatpush3.bf16.msra.mxu1 %v618_v3  ;;  %561 = vmatprep.subr.bf16.mxu0 %v619_v4  ;;  %v627_v12 = vld [vmem:[%s816_s1 + $0x58] sm:$0xff]   ;;  %v631_v16 = vld [vmem:[%s816_s1 + $0x60] sm:$0xff]   ;;  %v635_v20 = vld [vmem:[%s816_s1 + $0x68] sm:$0xff]  }
   0x6   :  { %589 = vmatprep.subr.bf16.mxu1 %v620_v5  ;;  %v628_v13 = vld [vmem:[%s816_s1 + $0xd8] sm:$0xff]   ;;  %v632_v17 = vld [vmem:[%s816_s1 + $0xe0] sm:$0xff]   ;;  %v636_v21 = vld [vmem:[%s816_s1 + $0xe8] sm:$0xff]  }
   0x7   :  { %v629_v14 = vld [vmem:[%s816_s1 + $0x18] sm:$0xff]   ;;  %v633_v18 = vld [vmem:[%s816_s1 + $0x20] sm:$0xff]   ;;  %v637_v22 = vld [vmem:[%s816_s1 + $0x28] sm:$0xff]  }
   0x8   :  { %562 = vmatpush3.bf16.msra.mxu0 %v621_v6  ;;  %v630_v15 = vld [vmem:[%s816_s1 + $0x98] sm:$0xff]   ;;  %v634_v19 = vld [vmem:[%s816_s1 + $0xa0] sm:$0xff]   ;;  %v638_v23 = vld [vmem:[%s816_s1 + $0xa8] sm:$0xff]  }
   0x9   :  { %590 = vmatpush3.bf16.msra.mxu1 %v622_v7  ;;  %563 = vmatprep.subr.bf16.mxu0 %v623_v8  ;;  %v639_v24 = vld [vmem:[%s816_s1 + $0x70] sm:$0xff]   ;;  %v643_v28 = vld [vmem:[%s816_s1 + $0x78] sm:$0xff]  }
   0xa   :  { %591 = vmatprep.subr.bf16.mxu1 %v624_v9  ;;  %v640_v25 = vld [vmem:[%s816_s1 + $0xf0] sm:$0xff]   ;;  %v644_v29 = vld [vmem:[%s816_s1 + $0xf8] sm:$0xff]  }
   0xb   :  { %v641_v26 = vld [vmem:[%s816_s1 + $0x30] sm:$0xff]   ;;  %v645_v30 = vld [vmem:[%s816_s1 + $0x38] sm:$0xff]  }
   0xc   :  { %564 = vmatpush3.bf16.msra.mxu0 %v625_v10  ;;  %v642_v27 = vld [vmem:[%s816_s1 + $0xb0] sm:$0xff]   ;;  %v646_v31 = vld [vmem:[%s816_s1 + $0xb8] sm:$0xff]  }
   0xd   :  { %592 = vmatpush3.bf16.msra.mxu1 %v626_v11  ;;  %565 = vmatprep.subr.bf16.mxu0 %v627_v12  ;;  %v647_v32 = vld [vmem:[%s817_s0] ss:$16 sps:$4 sm:$0xff]   ;;  %v649_v33 = vld [vmem:[%s817_s0 + $0x4] ss:$16 sps:$4 sm:$0xff]   ;;  %v650_v34 = vld [vmem:[%s817_s0 + $0x8] ss:$16 sps:$4 sm:$0xff]  }
   0xe   :  { %593 = vmatprep.subr.bf16.mxu1 %v628_v13  ;;  %v652_v35 = vld [vmem:[%s817_s0 + $0xc] ss:$16 sps:$4 sm:$0xff]   ;;  %363 = vmatprep.mubr.bf16.mxu0 %v649_v33  ;;  %v653_v36 = vld [vmem:[%s817_s0 + $0x24] ss:$16 sps:$4 sm:$0xff]   ;;  %v657_v38 = vld [vmem:[%s817_s0 + $0x20] ss:$16 sps:$4 sm:$0xff]  }
   0xf   :  { %412 = vmatprep.mubr.bf16.mxu1 %v652_v35  ;;  %v655_v37 = vld [vmem:[%s817_s0 + $0x2c] ss:$16 sps:$4 sm:$0xff]   ;;  %v658_v39 = vld [vmem:[%s817_s0 + $0x28] ss:$16 sps:$4 sm:$0xff]  }
  0x10   :  { %566 = vmatpush3.bf16.msra.mxu0 %v629_v14 }
  0x11   :  { %594 = vmatpush3.bf16.msra.mxu1 %v630_v15  ;;  %567 = vmatprep.subr.bf16.mxu0 %v631_v16 }
  0x12   :  { %595 = vmatprep.subr.bf16.mxu1 %v632_v17 }
  0x14   :  { %568 = vmatpush3.bf16.msra.mxu0 %v633_v18 }
  0x15   :  { %596 = vmatpush3.bf16.msra.mxu1 %v634_v19  ;;  %569 = vmatprep.subr.bf16.mxu0 %v635_v20 }
  0x16   :  { %597 = vmatprep.subr.bf16.mxu1 %v636_v21 }
  0x18   :  { %570 = vmatpush3.bf16.msra.mxu0 %v637_v22 }
  0x19   :  { %598 = vmatpush3.bf16.msra.mxu1 %v638_v23  ;;  %571 = vmatprep.subr.bf16.mxu0 %v639_v24 }
  0x1a   :  { %599 = vmatprep.subr.bf16.mxu1 %v640_v25 }
  0x1c   :  { %572 = vmatpush3.bf16.msra.mxu0 %v641_v26 }
  0x1d   :  { %600 = vmatpush3.bf16.msra.mxu1 %v642_v27  ;;  %573 = vmatprep.subr.bf16.mxu0 %v643_v28 }
  0x1e   :  { %601 = vmatprep.subr.bf16.mxu1 %v644_v29 }
  0x20   :  { %574 = vmatpush3.bf16.msra.mxu0 %v645_v30 }
  0x21   :  { %602 = vmatpush3.bf16.msra.mxu1 %v646_v31 }
  0x23   :  { %364 = vmatmul.mubr.bf16.vlgmr.msra.gmra.mrb[0].mxu0 %v647_v32 }
  0x24   :  { %413 = vmatmul.mubr.bf16.vlgmr.msra.gmra.mrb[0].mxu1 %v650_v34  ;;  %371 = vmatprep.mubr.bf16.mxu0 %v653_v36 }
  0x25   :  { %420 = vmatprep.mubr.bf16.mxu1 %v655_v37 }
  0x2b   :  { %372 = vmatmul.mubr.bf16.gmra.mrb[4].mxu0 %v657_v38 }
  0x2c   :  { %421 = vmatmul.mubr.bf16.gmra.mrb[4].mxu1 %v658_v39 }
  0xf6   :  { %v575_v40 = vpop.f32.mrb[0].mxu0 }
  0xf7   :  { %v603_v41 = vpop.f32.mrb[0].mxu1  ;;  %v576_v42 = vpop.f32.mrb[1].mxu0 }
  0xf8   :  { %v577_v43 = vadd.f32 %v576_v42, %v575_v40  ;;  %v604_v44 = vpop.f32.mrb[1].mxu1  ;;  %v578_v45 = vpop.f32.mrb[2].mxu0 }
  0xf9   :  { %v605_v46 = vadd.f32 %v604_v44, %v603_v41  ;;  %v606_v47 = vpop.f32.mrb[2].mxu1  ;;  %v579_v48 = vpop.f32.mrb[3].mxu0 }
  0xfa   :  { %v580_v49 = vadd.f32 %v579_v48, %v578_v45  ;;  %v607_v50 = vpop.f32.mrb[3].mxu1 }
  0xfb   :  { %v415_v51 = vadd.f32 %v605_v46, %v577_v43  ;;  %v608_v52 = vadd.f32 %v607_v50, %v606_v47 }
  0xfd   :  { %v418_v53 = vadd.f32 %v608_v52, %v580_v49  ;;  %v473_v55 = vmul.f32 %v415_v51, %v415_v51 }
  0xfe   :  { %v581_v54 = vpop.f32.mrb[4].mxu0 }
  0xff   :  { %v551_v56 = vpack.c.bf16 %v418_v53, %v415_v51  ;;  %v464_v57 = vadd.f32 %v418_v53, %v415_v51  ;;  %v474_v58 = vmul.f32 %v418_v53, %v418_v53  ;;  %v609_v59 = vpop.f32.mrb[4].mxu1  ;;  %v582_v60 = vpop.f32.mrb[5].mxu0 }
 0x100   :  { %v583_v61 = vadd.f32 %v582_v60, %v581_v54  ;;  %v610_v62 = vpop.f32.mrb[5].mxu1  ;;  %v584_v63 = vpop.f32.mrb[6].mxu0 }
 0x101   :  { %552 = vst [vmem:[%s818_s2] sm:$0xff] %v551_v56   ;;  %v477_v0 = vadd.f32 %v474_v58, %v473_v55  ;;  %v611_v1 = vadd.f32 %v610_v62, %v609_v59  ;;  %v612_v2 = vpop.f32.mrb[6].mxu1  ;;  %v585_v3 = vpop.f32.mrb[7].mxu0 }
 0x102   :  { %v586_v4 = vadd.f32 %v585_v3, %v584_v63  ;;  %v613_v5 = vpop.f32.mrb[7].mxu1 }
 0x103   :  { %v423_v6 = vadd.f32 %v611_v1, %v583_v61  ;;  %v614_v7 = vadd.f32 %v613_v5, %v612_v2 }
 0x105   :  { %v465_v8 = vadd.f32 %v464_v57, %v423_v6  ;;  %v475_v9 = vmul.f32 %v423_v6, %v423_v6  ;;  %v426_v10 = vadd.f32 %v614_v7, %v586_v4 }
 0x107   :  { %v478_v11 = vadd.f32 %v477_v0, %v475_v9  ;;  %v556_v12 = vpack.c.bf16 %v426_v10, %v423_v6  ;;  %v466_v13 = vadd.f32 %v465_v8, %v426_v10  ;;  %v476_v14 = vmul.f32 %v426_v10, %v426_v10 }
 0x109   :  { %558 = vst [vmem:[%s818_s2 + $0x8] sm:$0xff] %v556_v12   ;;  %v467_v15 = vrot.slane %v466_v13, 4  ;;  %v479_v16 = vadd.f32 %v478_v11, %v476_v14 }
 0x10b   :  { %v468_v17 = vadd.f32 %v467_v15, %v466_v13  ;;  %v480_v18 = vrot.slane %v479_v16, 4 }
 0x10d   :  { %v469_v19 = vrot.slane %v468_v17, 2  ;;  %v481_v20 = vadd.f32 %v480_v18, %v479_v16 }
 0x10f   :  { %v470_v21 = vadd.f32 %v469_v19, %v468_v17  ;;  %v482_v22 = vrot.slane %v481_v20, 2 }
 0x111   :  { %v471_v23 = vrot.slane %v470_v21, 1  ;;  %v483_v24 = vadd.f32 %v482_v22, %v481_v20 }
 0x113   :  { %v472_v25 = vadd.f32 %v471_v23, %v470_v21  ;;  %v484_v26 = vrot.slane %v483_v24, 1 }
 0x115   :  { %v485_v27 = vadd.f32 %v484_v26, %v483_v24  ;;  %486 = vst [vmem:[%s819_s3] sm:$0xff] %v472_v25 }
 0x117   :  { %487 = vst [vmem:[%s820_s4] sm:$0xff] %v485_v27 }

// kernel: dc_discriminator.15
= control target key start
LH: loop header
LB: loop body
LE: loop exit
PB: predicated region body
PF: predicated region fallthrough
CT: control target
= control target key end

     0   :  { %v28_v0 = vlaneseq  ;;  %vm124_vm0 = vcmask 7168   ;;  %s167_s1 = inlined_call_operand.vmem [shape: bf16[1,1024], index: 1, kind: input, shape index: {}]   ;;  %s168_s0 = inlined_call_operand.vmem [shape: bf16[8,1024], index: 0, kind: input, shape index: {}]   ;;  %s169_s2 = inlined_call_operand.vmem [shape: f32[8,1], index: 2, kind: output, shape index: {}]  }
   0x1   :  { %v23_v1 = vld [vmem:[%s167_s1] sm:$0xff]  ;;  %v12_v3 = vld [vmem:[%s168_s0 + $0x8] sm:$0xff]  ;;  %v13_v14 = vld [vmem:[%s168_s0 + $0x10] sm:$0xff] }
   0x2   :  { %v11_v2 = vld [vmem:[%s168_s0] sm:$0xff]  ;;  %v24_v4 = vunpack.c.l.bf16 %v23_v1  ;;  %v29_v5 = vshrl.u32 %v28_v0, 7  ;;  %v25_v6 = vunpack.c.h.bf16 %v23_v1  ;;  %v17_v13 = vunpack.c.l.bf16 %v12_v3  ;;  %v14_v32 = vld [vmem:[%s168_s0 + $0x18] sm:$0xff] }
   0x3   :  { %v15_v11 = vunpack.c.l.bf16 %v11_v2  ;;  %v16_v12 = vunpack.c.h.bf16 %v11_v2  ;;  %v18_v19 = vunpack.c.h.bf16 %v12_v3  ;;  %v19_v26 = vunpack.c.l.bf16 %v13_v14 }
   0x4   :  { %v30_v7 = vsub.s32 0, %v29_v5  ;;  %v34_v8 = vsub.s32 2, %v29_v5  ;;  %v38_v9 = vsub.s32 4, %v29_v5  ;;  %v42_v10 = vsub.s32 6, %v29_v5 }
   0x5   :  { %v20_v33 = vunpack.c.h.bf16 %v13_v14  ;;  %v21_v38 = vunpack.c.l.bf16 %v14_v32  ;;  %v22_v42 = vunpack.c.h.bf16 %v14_v32 }
   0x6   :  { %v31_v15 = vrot.slane %v24_v4, %v30_v7  ;;  %v35_v16 = vrot.slane %v24_v4, %v34_v8  ;;  %v39_v17 = vrot.slane %v24_v4, %v38_v9  ;;  %v43_v18 = vrot.slane %v24_v4, %v42_v10 }
   0x7   :  { %v47_v20 = vrot.slane %v25_v6, %v30_v7  ;;  %v51_v21 = vrot.slane %v25_v6, %v34_v8  ;;  %v55_v27 = vrot.slane %v25_v6, %v38_v9  ;;  %v59_v34 = vrot.slane %v25_v6, %v42_v10 }
   0x8   :  { %v71_v22 = vrot.slane %v31_v15, %v30_v7  ;;  %v75_v23 = vrot.slane %v35_v16, %v30_v7  ;;  %v79_v24 = vrot.slane %v39_v17, %v30_v7  ;;  %v83_v25 = vrot.slane %v43_v18, %v30_v7 }
   0x9   :  { %v87_v28 = vrot.slane %v47_v20, %v30_v7  ;;  %v91_v35 = vrot.slane %v51_v21, %v30_v7  ;;  %v95_v39 = vrot.slane %v55_v27, %v30_v7  ;;  %v99_v43 = vrot.slane %v59_v34, %v30_v7 }
   0xa   :  { %v100_v29 = vmul.f32 %v71_v22, %v15_v11  ;;  %v101_v30 = vmul.f32 %v75_v23, %v16_v12  ;;  %v102_v31 = vmul.f32 %v79_v24, %v17_v13  ;;  %v103_v36 = vmul.f32 %v83_v25, %v18_v19 }
   0xb   :  { %v104_v40 = vmul.f32 %v87_v28, %v19_v26  ;;  %v105_v44 = vmul.f32 %v91_v35, %v20_v33  ;;  %v106_v46 = vmul.f32 %v95_v39, %v21_v38  ;;  %v107_v48 = vmul.f32 %v99_v43, %v22_v42 }
   0xc   :  { %v108_v37 = vadd.f32 %v101_v30, %v100_v29 }
   0xe   :  { %v109_v41 = vadd.f32 %v108_v37, %v102_v31 }
  0x10   :  { %v110_v45 = vadd.f32 %v109_v41, %v103_v36 }
  0x12   :  { %v111_v47 = vadd.f32 %v110_v45, %v104_v40 }
  0x14   :  { %v112_v49 = vadd.f32 %v111_v47, %v105_v44 }
  0x16   :  { %v113_v50 = vadd.f32 %v112_v49, %v106_v46 }
  0x18   :  { %v114_v51 = vadd.f32 %v113_v50, %v107_v48 }
  0x1a   :  { %115 = vadd.xlane.f32.xlu0 %v114_v51 }
  0xa7   :  { %v116_v52 = vpop.xlane.xlu0 %115 }
  0xa8   :  { %v117_v53 = vsub.f32 0.0, %v116_v52 }
  0xaa   :  { %v118_v54 = vmul.f32 1.442695, %v117_v53 }
  0xac   :  { %130 = vpow2.f32 %v118_v54 }
  0xb6   :  { %v131_v55 = vpop.eup %130 }
  0xb7   :  { %v120_v56 = vadd.f32 1.0, %v131_v55 }
  0xb9   :  { %132 = vrcp.f32 %v120_v56 }
  0xc3   :  { %v133_v57 = vpop.eup %132 }
  0xc4   :  { %v122_v58 = vmax.f32 %v133_v57, 0.0 }
  0xc6   :  { %v123_v59 = vmin.f32 %v122_v58, 1.0 }
  0xc8   :  { %125 = vst.msk [vmem:[%s169_s2] sm:$0xff] %vm124_vm0, %v123_v59 }

</bundles_post_ra>
